<compile_context>
chip_gen: v6e
topology: v6e:2x2x1
jax: 0.10.0
libtpu: 0.0.40
codegen_flags: <defaults>
</compile_context>

<pallas_src>
import functools

import jax
import jax.numpy as jnp
import numpy as np
from jax.experimental import pallas as pl
from jax.experimental.pallas import tpu as pltpu

EPS = 1e-5  # nn.BatchNorm2d default


# ----------------------------- Pallas kernels ------------------------------

def _conv3x3_stats_kernel(xpad_ref, w_ref, yc_ref, s_ref, ss_ref, *, H, W):
    """Implicit 3x3 conv (stride 1, pad 1) for one image + per-image BN partials.

    xpad_ref : (H+2, W+2, Cp) bf16  spatially padded, channel-padded activations
    w_ref    : (9, Cp, Cp)    bf16  weight slab per tap t = dy*3+dx, [Cin, Cout]
    yc_ref   : (H*W, Cp)      f32   raw conv output (pre-BN), lane-dense
    s_ref    : (1, Cp)        f32   per-image per-channel sum
    ss_ref   : (1, Cp)        f32   per-image per-channel sum of squares
    """
    cp = w_ref.shape[-1]
    acc = jnp.zeros((H * W, cp), jnp.float32)
    for t in range(9):                       # static, fully unrolled taps
        dy, dx = t // 3, t % 3
        patch = xpad_ref[dy:dy + H, dx:dx + W, :].reshape(H * W, cp)
        acc = acc + jnp.dot(patch, w_ref[t], preferred_element_type=jnp.float32)
    yc_ref[...] = acc
    s_ref[...] = jnp.sum(acc, axis=0, keepdims=True)
    ss_ref[...] = jnp.sum(acc * acc, axis=0, keepdims=True)


def _bn_prelu_kernel(yc_ref, s_ref, ss_ref, g_ref, b_ref, a_ref, h_ref, *, count):
    """BatchNorm (training-mode batch stats from cross-image partials) + PReLU."""
    inv_n = 1.0 / count
    mean = jnp.sum(s_ref[...], axis=0) * inv_n                        # (1, Cp)
    var = jnp.maximum(jnp.sum(ss_ref[...], axis=0) * inv_n - mean * mean, 0.0)
    scale = jax.lax.rsqrt(var + EPS) * g_ref[...]
    shift = b_ref[...] - mean * scale
    y = yc_ref[...] * scale + shift
    h_ref[...] = jnp.where(y >= 0.0, y, a_ref[...] * y).astype(h_ref.dtype)


def _bn_residual_kernel(yc_ref, s_ref, ss_ref, g_ref, b_ref, xres_ref, out_ref,
                        *, count):
    """BatchNorm (training-mode batch stats) + residual add."""
    inv_n = 1.0 / count
    mean = jnp.sum(s_ref[...], axis=0) * inv_n
    var = jnp.maximum(jnp.sum(ss_ref[...], axis=0) * inv_n - mean * mean, 0.0)
    scale = jax.lax.rsqrt(var + EPS) * g_ref[...]
    shift = b_ref[...] - mean * scale
    out_ref[...] = yc_ref[...] * scale + shift + xres_ref[...]


# --------------------------- pallas_call wrappers ---------------------------

def _conv3x3(xpad, wmat, n, h, w, cp):
    kernel = functools.partial(_conv3x3_stats_kernel, H=h, W=w)
    return pl.pallas_call(
        kernel,
        grid=(n,),
        in_specs=[
            pl.BlockSpec((None, h + 2, w + 2, cp), lambda i: (i, 0, 0, 0)),
            pl.BlockSpec((9, cp, cp), lambda i: (0, 0, 0)),   # weights resident
        ],
        out_specs=(
            pl.BlockSpec((None, h * w, cp), lambda i: (i, 0, 0)),
            pl.BlockSpec((None, 1, cp), lambda i: (i, 0, 0)),
            pl.BlockSpec((None, 1, cp), lambda i: (i, 0, 0)),
        ),
        out_shape=(
            jax.ShapeDtypeStruct((n, h * w, cp), jnp.float32),
            jax.ShapeDtypeStruct((n, 1, cp), jnp.float32),
            jax.ShapeDtypeStruct((n, 1, cp), jnp.float32),
        ),
        compiler_params=pltpu.CompilerParams(dimension_semantics=("parallel",)),
    )(xpad, wmat)


def _bn_prelu(yc, s, ss, g, b, a, n, h, w, cp):
    kernel = functools.partial(_bn_prelu_kernel, count=float(n * h * w))
    return pl.pallas_call(
        kernel,
        grid=(n,),
        in_specs=[
            pl.BlockSpec((None, h * w, cp), lambda i: (i, 0, 0)),
            pl.BlockSpec((n, 1, cp), lambda i: (0, 0, 0)),
            pl.BlockSpec((n, 1, cp), lambda i: (0, 0, 0)),
            pl.BlockSpec((1, cp), lambda i: (0, 0)),
            pl.BlockSpec((1, cp), lambda i: (0, 0)),
            pl.BlockSpec((1, cp), lambda i: (0, 0)),
        ],
        out_specs=pl.BlockSpec((None, h * w, cp), lambda i: (i, 0, 0)),
        out_shape=jax.ShapeDtypeStruct((n, h * w, cp), jnp.bfloat16),
        compiler_params=pltpu.CompilerParams(dimension_semantics=("parallel",)),
    )(yc, s, ss, g, b, a)


def _bn_residual(yc, s, ss, g, b, xres, n, h, w, cp):
    kernel = functools.partial(_bn_residual_kernel, count=float(n * h * w))
    return pl.pallas_call(
        kernel,
        grid=(n,),
        in_specs=[
            pl.BlockSpec((None, h * w, cp), lambda i: (i, 0, 0)),
            pl.BlockSpec((n, 1, cp), lambda i: (0, 0, 0)),
            pl.BlockSpec((n, 1, cp), lambda i: (0, 0, 0)),
            pl.BlockSpec((1, cp), lambda i: (0, 0)),
            pl.BlockSpec((1, cp), lambda i: (0, 0)),
            pl.BlockSpec((None, h * w, cp), lambda i: (i, 0, 0)),
        ],
        out_specs=pl.BlockSpec((None, h * w, cp), lambda i: (i, 0, 0)),
        out_shape=jax.ShapeDtypeStruct((n, h * w, cp), jnp.float32),
        compiler_params=pltpu.CompilerParams(dimension_semantics=("parallel",)),
    )(yc, s, ss, g, b, xres)


# ------------------------------- glue (JAX) --------------------------------

def _pack_weight(w_oihw, cp):
    """PyTorch (Cout, Cin, 3, 3) -> (9, Cp, Cp) bf16, tap index t = dy*3 + dx."""
    cout, cin = w_oihw.shape[0], w_oihw.shape[1]
    wt = jnp.transpose(w_oihw, (2, 3, 1, 0)).reshape(9, cin, cout)
    wt = jnp.pad(wt, ((0, 0), (0, cp - cin), (0, cp - cout)))
    return wt.astype(jnp.bfloat16)


def _pad_row(v, cp):
    v = v.astype(jnp.float32).reshape(1, -1)
    return jnp.pad(v, ((0, 0), (0, cp - v.shape[1])))


def residual_block_forward(x_nchw, params):
    n, c, h, w = x_nchw.shape
    cp = ((c + 127) // 128) * 128            # lane-dense channel padding

    x = jnp.transpose(x_nchw, (0, 2, 3, 1)).astype(jnp.float32)       # NHWC
    xc = jnp.pad(x, ((0, 0), (0, 0), (0, 0), (0, cp - c)))            # channel pad
    x_res = xc.reshape(n, h * w, cp)                                  # residual (f32)
    xpad = jnp.pad(xc, ((0, 0), (1, 1), (1, 1), (0, 0))).astype(jnp.bfloat16)

    w1 = _pack_weight(params["w1"], cp)
    w2 = _pack_weight(params["w2"], cp)
    g1, b1 = _pad_row(params["gamma1"], cp), _pad_row(params["beta1"], cp)
    g2, b2 = _pad_row(params["gamma2"], cp), _pad_row(params["beta2"], cp)
    al = _pad_row(params["alpha"], cp)
    # NOTE: conv biases params["b1"] / params["b2"] are intentionally unused in
    # the kernels: training-mode BatchNorm subtracts the batch mean right after
    # the conv, so the bias cancels exactly.

    # conv1 (implicit 3x3, bf16 MXU) + per-image BN partial stats
    yc1, s1, ss1 = _conv3x3(xpad, w1, n, h, w, cp)
    # bn1 (whole-batch stats) + PReLU -> bf16 NHWC intermediate
    h1 = _bn_prelu(yc1, s1, ss1, g1, b1, al, n, h, w, cp)
    h1pad = jnp.pad(h1.reshape(n, h, w, cp), ((0, 0), (1, 1), (1, 1), (0, 0)))
    # conv2 (implicit 3x3) + partial stats
    yc2, s2, ss2 = _conv3x3(h1pad, w2, n, h, w, cp)
    # bn2 + residual add
    out = _bn_residual(yc2, s2, ss2, g2, b2, x_res, n, h, w, cp)

    out = out.reshape(n, h, w, cp)[..., :c]
    return jnp.transpose(out, (0, 3, 1, 2))                           # NCHW


# ---------------------------- pure-JAX reference ----------------------------

def _reference(x_nchw, params):
    def conv(x, wt, b):
        y = jax.lax.conv_general_dilated(
            x, wt, (1, 1), ((1, 1), (1, 1)),
            dimension_numbers=("NCHW", "OIHW", "NCHW"))
        return y + b.reshape(1, -1, 1, 1)

    def bn(x, g, bt):
        mean = jnp.mean(x, axis=(0, 2, 3), keepdims=True)
        var = jnp.mean((x - mean) ** 2, axis=(0, 2, 3), keepdims=True)
        return ((x - mean) * jax.lax.rsqrt(var + EPS)
                * g.reshape(1, -1, 1, 1) + bt.reshape(1, -1, 1, 1))

    out = conv(x_nchw, params["w1"], params["b1"])
    out = bn(out, params["gamma1"], params["beta1"])
    a = params["alpha"].reshape(1, -1, 1, 1)
    out = jnp.where(out >= 0.0, out, a * out)
    out = conv(out, params["w2"], params["b2"])
    out = bn(out, params["gamma2"], params["beta2"])
    return out + x_nchw


# ----------------------------------- main -----------------------------------

if __name__ == "__main__":
    N, C, H, W = 2, 4, 16, 16            # in_channels == out_channels (residual add)
    key = jax.random.PRNGKey(0)
    kx, k1, k2, k3, k4 = jax.random.split(key, 5)

    x = jax.random.normal(kx, (N, C, H, W), dtype=jnp.float32)

    params = {
        "w1": 0.1 * jax.random.normal(k1, (C, C, 3, 3), dtype=jnp.float32),
        "b1": 0.1 * jax.random.normal(k2, (C,), dtype=jnp.float32),
        "gamma1": jnp.ones((C,), jnp.float32),       # BatchNorm2d default init
        "beta1": jnp.zeros((C,), jnp.float32),
        "alpha": jnp.full((C,), 0.25, jnp.float32),  # PReLU default init
        "w2": 0.1 * jax.random.normal(k3, (C, C, 3, 3), dtype=jnp.float32),
        "b2": 0.1 * jax.random.normal(k4, (C,), dtype=jnp.float32),
        "gamma2": jnp.ones((C,), jnp.float32),
        "beta2": jnp.zeros((C,), jnp.float32),
    }

    out = jax.block_until_ready(jax.jit(residual_block_forward)(x, params))
    ref = jax.block_until_ready(_reference(x, params))

    if out.shape != (N, C, H, W):
        raise RuntimeError(f"bad output shape {out.shape}")
    # Tolerance accounts for bf16 MXU operands (f32 accumulation / BN math).
    if not np.allclose(np.asarray(out), np.asarray(ref), rtol=3e-2, atol=3e-2):
        err = float(np.max(np.abs(np.asarray(out) - np.asarray(ref))))
        raise RuntimeError(f"Pallas result does not match reference (max abs err {err})")

    print("KERNEL_OK")
</pallas_src>

<mosaic_0001>
module attributes {stable_mosaic.version = 11 : i64} {
  func.func @_conv3x3_stats_kernel(%arg0: i32, %arg1: memref<1x18x18x128xbf16, #tpu.memory_space<vmem>>, %arg2: memref<9x128x128xbf16, #tpu.memory_space<vmem>>, %arg3: memref<1x256x128xf32, #tpu.memory_space<vmem>>, %arg4: memref<1x1x128xf32, #tpu.memory_space<vmem>>, %arg5: memref<1x1x128xf32, #tpu.memory_space<vmem>>) attributes {dimension_semantics = [#tpu.dimension_semantics<parallel>], iteration_bounds = array<i64: 2>, scalar_prefetch = 0 : i64, scratch_operands = 0 : i64, tpu.core_type = #tpu.core_type<tc>, window_params = [{transform_indices = @transform_0, window_bounds = array<i64: 1, 18, 18, 128>}, {pipeline_mode = #tpu.pipeline_mode<synchronous>, transform_indices = @transform_1, window_bounds = array<i64: 9, 128, 128>}, {transform_indices = @transform_2, window_bounds = array<i64: 1, 256, 128>}, {transform_indices = @transform_3, window_bounds = array<i64: 1, 1, 128>}, {transform_indices = @transform_4, window_bounds = array<i64: 1, 1, 128>}]} {
    %cst = arith.constant 0.000000e+00 : f32
    %0 = vector.broadcast %cst : f32 to vector<256x128xf32>
    %c0 = arith.constant 0 : index
    %c0_0 = arith.constant 0 : index
    %c0_1 = arith.constant 0 : index
    %c0_2 = arith.constant 0 : index
    %1 = vector.load %arg1[%c0, %c0_0, %c0_1, %c0_2] : memref<1x18x18x128xbf16, #tpu.memory_space<vmem>>, vector<1x16x16x128xbf16>
    %2 = vector.shape_cast %1 : vector<1x16x16x128xbf16> to vector<16x16x128xbf16>
    %3 = vector.shape_cast %2 : vector<16x16x128xbf16> to vector<256x128xbf16>
    %c0_3 = arith.constant 0 : index
    %c0_4 = arith.constant 0 : index
    %c0_5 = arith.constant 0 : index
    %4 = vector.load %arg2[%c0_3, %c0_4, %c0_5] : memref<9x128x128xbf16, #tpu.memory_space<vmem>>, vector<1x128x128xbf16>
    %5 = vector.shape_cast %4 : vector<1x128x128xbf16> to vector<128x128xbf16>
    %cst_6 = arith.constant dense<0.000000e+00> : vector<256x128xf32>
    %6 = tpu.matmul %3, %5, %cst_6 {dimension_numbers = #tpu.dot_dimension_numbers<[1], [0], [0], [1], [0, 0, 1, 1], [], []>} : vector<256x128xbf16>, vector<128x128xbf16>, vector<256x128xf32> -> vector<256x128xf32>
    %7 = arith.addf %0, %6 : vector<256x128xf32>
    %c0_7 = arith.constant 0 : index
    %c0_8 = arith.constant 0 : index
    %c1 = arith.constant 1 : index
    %c0_9 = arith.constant 0 : index
    %8 = vector.load %arg1[%c0_7, %c0_8, %c1, %c0_9] : memref<1x18x18x128xbf16, #tpu.memory_space<vmem>>, vector<1x16x16x128xbf16>
    %9 = vector.shape_cast %8 : vector<1x16x16x128xbf16> to vector<16x16x128xbf16>
    %10 = vector.shape_cast %9 : vector<16x16x128xbf16> to vector<256x128xbf16>
    %c1_10 = arith.constant 1 : index
    %c0_11 = arith.constant 0 : index
    %c0_12 = arith.constant 0 : index
    %11 = vector.load %arg2[%c1_10, %c0_11, %c0_12] : memref<9x128x128xbf16, #tpu.memory_space<vmem>>, vector<1x128x128xbf16>
    %12 = vector.shape_cast %11 : vector<1x128x128xbf16> to vector<128x128xbf16>
    %cst_13 = arith.constant dense<0.000000e+00> : vector<256x128xf32>
    %13 = tpu.matmul %10, %12, %cst_13 {dimension_numbers = #tpu.dot_dimension_numbers<[1], [0], [0], [1], [0, 0, 1, 1], [], []>} : vector<256x128xbf16>, vector<128x128xbf16>, vector<256x128xf32> -> vector<256x128xf32>
    %14 = arith.addf %7, %13 : vector<256x128xf32>
    %c0_14 = arith.constant 0 : index
    %c0_15 = arith.constant 0 : index
    %c2 = arith.constant 2 : index
    %c0_16 = arith.constant 0 : index
    %15 = vector.load %arg1[%c0_14, %c0_15, %c2, %c0_16] : memref<1x18x18x128xbf16, #tpu.memory_space<vmem>>, vector<1x16x16x128xbf16>
    %16 = vector.shape_cast %15 : vector<1x16x16x128xbf16> to vector<16x16x128xbf16>
    %17 = vector.shape_cast %16 : vector<16x16x128xbf16> to vector<256x128xbf16>
    %c2_17 = arith.constant 2 : index
    %c0_18 = arith.constant 0 : index
    %c0_19 = arith.constant 0 : index
    %18 = vector.load %arg2[%c2_17, %c0_18, %c0_19] : memref<9x128x128xbf16, #tpu.memory_space<vmem>>, vector<1x128x128xbf16>
    %19 = vector.shape_cast %18 : vector<1x128x128xbf16> to vector<128x128xbf16>
    %cst_20 = arith.constant dense<0.000000e+00> : vector<256x128xf32>
    %20 = tpu.matmul %17, %19, %cst_20 {dimension_numbers = #tpu.dot_dimension_numbers<[1], [0], [0], [1], [0, 0, 1, 1], [], []>} : vector<256x128xbf16>, vector<128x128xbf16>, vector<256x128xf32> -> vector<256x128xf32>
    %21 = arith.addf %14, %20 : vector<256x128xf32>
    %c0_21 = arith.constant 0 : index
    %c1_22 = arith.constant 1 : index
    %c0_23 = arith.constant 0 : index
    %c0_24 = arith.constant 0 : index
    %22 = vector.load %arg1[%c0_21, %c1_22, %c0_23, %c0_24] : memref<1x18x18x128xbf16, #tpu.memory_space<vmem>>, vector<1x16x16x128xbf16>
    %23 = vector.shape_cast %22 : vector<1x16x16x128xbf16> to vector<16x16x128xbf16>
    %24 = vector.shape_cast %23 : vector<16x16x128xbf16> to vector<256x128xbf16>
    %c3 = arith.constant 3 : index
    %c0_25 = arith.constant 0 : index
    %c0_26 = arith.constant 0 : index
    %25 = vector.load %arg2[%c3, %c0_25, %c0_26] : memref<9x128x128xbf16, #tpu.memory_space<vmem>>, vector<1x128x128xbf16>
    %26 = vector.shape_cast %25 : vector<1x128x128xbf16> to vector<128x128xbf16>
    %cst_27 = arith.constant dense<0.000000e+00> : vector<256x128xf32>
    %27 = tpu.matmul %24, %26, %cst_27 {dimension_numbers = #tpu.dot_dimension_numbers<[1], [0], [0], [1], [0, 0, 1, 1], [], []>} : vector<256x128xbf16>, vector<128x128xbf16>, vector<256x128xf32> -> vector<256x128xf32>
    %28 = arith.addf %21, %27 : vector<256x128xf32>
    %c0_28 = arith.constant 0 : index
    %c1_29 = arith.constant 1 : index
    %c1_30 = arith.constant 1 : index
    %c0_31 = arith.constant 0 : index
    %29 = vector.load %arg1[%c0_28, %c1_29, %c1_30, %c0_31] : memref<1x18x18x128xbf16, #tpu.memory_space<vmem>>, vector<1x16x16x128xbf16>
    %30 = vector.shape_cast %29 : vector<1x16x16x128xbf16> to vector<16x16x128xbf16>
    %31 = vector.shape_cast %30 : vector<16x16x128xbf16> to vector<256x128xbf16>
    %c4 = arith.constant 4 : index
    %c0_32 = arith.constant 0 : index
    %c0_33 = arith.constant 0 : index
    %32 = vector.load %arg2[%c4, %c0_32, %c0_33] : memref<9x128x128xbf16, #tpu.memory_space<vmem>>, vector<1x128x128xbf16>
    %33 = vector.shape_cast %32 : vector<1x128x128xbf16> to vector<128x128xbf16>
    %cst_34 = arith.constant dense<0.000000e+00> : vector<256x128xf32>
    %34 = tpu.matmul %31, %33, %cst_34 {dimension_numbers = #tpu.dot_dimension_numbers<[1], [0], [0], [1], [0, 0, 1, 1], [], []>} : vector<256x128xbf16>, vector<128x128xbf16>, vector<256x128xf32> -> vector<256x128xf32>
    %35 = arith.addf %28, %34 : vector<256x128xf32>
    %c0_35 = arith.constant 0 : index
    %c1_36 = arith.constant 1 : index
    %c2_37 = arith.constant 2 : index
    %c0_38 = arith.constant 0 : index
    %36 = vector.load %arg1[%c0_35, %c1_36, %c2_37, %c0_38] : memref<1x18x18x128xbf16, #tpu.memory_space<vmem>>, vector<1x16x16x128xbf16>
    %37 = vector.shape_cast %36 : vector<1x16x16x128xbf16> to vector<16x16x128xbf16>
    %38 = vector.shape_cast %37 : vector<16x16x128xbf16> to vector<256x128xbf16>
    %c5 = arith.constant 5 : index
    %c0_39 = arith.constant 0 : index
    %c0_40 = arith.constant 0 : index
    %39 = vector.load %arg2[%c5, %c0_39, %c0_40] : memref<9x128x128xbf16, #tpu.memory_space<vmem>>, vector<1x128x128xbf16>
    %40 = vector.shape_cast %39 : vector<1x128x128xbf16> to vector<128x128xbf16>
    %cst_41 = arith.constant dense<0.000000e+00> : vector<256x128xf32>
    %41 = tpu.matmul %38, %40, %cst_41 {dimension_numbers = #tpu.dot_dimension_numbers<[1], [0], [0], [1], [0, 0, 1, 1], [], []>} : vector<256x128xbf16>, vector<128x128xbf16>, vector<256x128xf32> -> vector<256x128xf32>
    %42 = arith.addf %35, %41 : vector<256x128xf32>
    %c0_42 = arith.constant 0 : index
    %c2_43 = arith.constant 2 : index
    %c0_44 = arith.constant 0 : index
    %c0_45 = arith.constant 0 : index
    %43 = vector.load %arg1[%c0_42, %c2_43, %c0_44, %c0_45] : memref<1x18x18x128xbf16, #tpu.memory_space<vmem>>, vector<1x16x16x128xbf16>
    %44 = vector.shape_cast %43 : vector<1x16x16x128xbf16> to vector<16x16x128xbf16>
    %45 = vector.shape_cast %44 : vector<16x16x128xbf16> to vector<256x128xbf16>
    %c6 = arith.constant 6 : index
    %c0_46 = arith.constant 0 : index
    %c0_47 = arith.constant 0 : index
    %46 = vector.load %arg2[%c6, %c0_46, %c0_47] : memref<9x128x128xbf16, #tpu.memory_space<vmem>>, vector<1x128x128xbf16>
    %47 = vector.shape_cast %46 : vector<1x128x128xbf16> to vector<128x128xbf16>
    %cst_48 = arith.constant dense<0.000000e+00> : vector<256x128xf32>
    %48 = tpu.matmul %45, %47, %cst_48 {dimension_numbers = #tpu.dot_dimension_numbers<[1], [0], [0], [1], [0, 0, 1, 1], [], []>} : vector<256x128xbf16>, vector<128x128xbf16>, vector<256x128xf32> -> vector<256x128xf32>
    %49 = arith.addf %42, %48 : vector<256x128xf32>
    %c0_49 = arith.constant 0 : index
    %c2_50 = arith.constant 2 : index
    %c1_51 = arith.constant 1 : index
    %c0_52 = arith.constant 0 : index
    %50 = vector.load %arg1[%c0_49, %c2_50, %c1_51, %c0_52] : memref<1x18x18x128xbf16, #tpu.memory_space<vmem>>, vector<1x16x16x128xbf16>
    %51 = vector.shape_cast %50 : vector<1x16x16x128xbf16> to vector<16x16x128xbf16>
    %52 = vector.shape_cast %51 : vector<16x16x128xbf16> to vector<256x128xbf16>
    %c7 = arith.constant 7 : index
    %c0_53 = arith.constant 0 : index
    %c0_54 = arith.constant 0 : index
    %53 = vector.load %arg2[%c7, %c0_53, %c0_54] : memref<9x128x128xbf16, #tpu.memory_space<vmem>>, vector<1x128x128xbf16>
    %54 = vector.shape_cast %53 : vector<1x128x128xbf16> to vector<128x128xbf16>
    %cst_55 = arith.constant dense<0.000000e+00> : vector<256x128xf32>
    %55 = tpu.matmul %52, %54, %cst_55 {dimension_numbers = #tpu.dot_dimension_numbers<[1], [0], [0], [1], [0, 0, 1, 1], [], []>} : vector<256x128xbf16>, vector<128x128xbf16>, vector<256x128xf32> -> vector<256x128xf32>
    %56 = arith.addf %49, %55 : vector<256x128xf32>
    %c0_56 = arith.constant 0 : index
    %c2_57 = arith.constant 2 : index
    %c2_58 = arith.constant 2 : index
    %c0_59 = arith.constant 0 : index
    %57 = vector.load %arg1[%c0_56, %c2_57, %c2_58, %c0_59] : memref<1x18x18x128xbf16, #tpu.memory_space<vmem>>, vector<1x16x16x128xbf16>
    %58 = vector.shape_cast %57 : vector<1x16x16x128xbf16> to vector<16x16x128xbf16>
    %59 = vector.shape_cast %58 : vector<16x16x128xbf16> to vector<256x128xbf16>
    %c8 = arith.constant 8 : index
    %c0_60 = arith.constant 0 : index
    %c0_61 = arith.constant 0 : index
    %60 = vector.load %arg2[%c8, %c0_60, %c0_61] : memref<9x128x128xbf16, #tpu.memory_space<vmem>>, vector<1x128x128xbf16>
    %61 = vector.shape_cast %60 : vector<1x128x128xbf16> to vector<128x128xbf16>
    %cst_62 = arith.constant dense<0.000000e+00> : vector<256x128xf32>
    %62 = tpu.matmul %59, %61, %cst_62 {dimension_numbers = #tpu.dot_dimension_numbers<[1], [0], [0], [1], [0, 0, 1, 1], [], []>} : vector<256x128xbf16>, vector<128x128xbf16>, vector<256x128xf32> -> vector<256x128xf32>
    %63 = arith.addf %56, %62 : vector<256x128xf32>
    %c0_63 = arith.constant 0 : index
    %c0_64 = arith.constant 0 : index
    %c0_65 = arith.constant 0 : index
    %64 = vector.load %arg3[%c0_63, %c0_64, %c0_65] : memref<1x256x128xf32, #tpu.memory_space<vmem>>, vector<1x256x128xf32>
    %65 = vector.shape_cast %64 : vector<1x256x128xf32> to vector<256x128xf32>
    %66 = vector.shape_cast %63 : vector<256x128xf32> to vector<1x256x128xf32>
    tpu.vector_store %arg3[%c0_63, %c0_64, %c0_65], %66 {strides = array<i32>} : memref<1x256x128xf32, #tpu.memory_space<vmem>>, vector<1x256x128xf32>,
    %cst_66 = arith.constant dense<0.000000e+00> : vector<128xf32>
    %67 = vector.multi_reduction <add>, %63, %cst_66 [0] : vector<256x128xf32> to vector<128xf32>
    %68 = vector.shape_cast %67 : vector<128xf32> to vector<1x128xf32>
    %c0_67 = arith.constant 0 : index
    %c0_68 = arith.constant 0 : index
    %c0_69 = arith.constant 0 : index
    %69 = vector.load %arg4[%c0_67, %c0_68, %c0_69] : memref<1x1x128xf32, #tpu.memory_space<vmem>>, vector<1x1x128xf32>
    %70 = vector.shape_cast %69 : vector<1x1x128xf32> to vector<1x128xf32>
    %71 = vector.shape_cast %68 : vector<1x128xf32> to vector<1x1x128xf32>
    tpu.vector_store %arg4[%c0_67, %c0_68, %c0_69], %71 {strides = array<i32>} : memref<1x1x128xf32, #tpu.memory_space<vmem>>, vector<1x1x128xf32>,
    %72 = arith.mulf %63, %63 : vector<256x128xf32>
    %cst_70 = arith.constant dense<0.000000e+00> : vector<128xf32>
    %73 = vector.multi_reduction <add>, %72, %cst_70 [0] : vector<256x128xf32> to vector<128xf32>
    %74 = vector.shape_cast %73 : vector<128xf32> to vector<1x128xf32>
    %c0_71 = arith.constant 0 : index
    %c0_72 = arith.constant 0 : index
    %c0_73 = arith.constant 0 : index
    %75 = vector.load %arg5[%c0_71, %c0_72, %c0_73] : memref<1x1x128xf32, #tpu.memory_space<vmem>>, vector<1x1x128xf32>
    %76 = vector.shape_cast %75 : vector<1x1x128xf32> to vector<1x128xf32>
    %77 = vector.shape_cast %74 : vector<1x128xf32> to vector<1x1x128xf32>
    tpu.vector_store %arg5[%c0_71, %c0_72, %c0_73], %77 {strides = array<i32>} : memref<1x1x128xf32, #tpu.memory_space<vmem>>, vector<1x1x128xf32>,
    return
  }
  func.func @transform_0(%arg0: i32) -> (i32, i32, i32, i32) {
    %c0_i32 = arith.constant 0 : i32
    %c0_i32_0 = arith.constant 0 : i32
    %c0_i32_1 = arith.constant 0 : i32
    %c0_i32_2 = arith.constant 0 : i32
    return %arg0, %c0_i32, %c0_i32_0, %c0_i32_1 : i32, i32, i32, i32
  }
  func.func @transform_1(%arg0: i32) -> (i32, i32, i32) {
    %c0_i32 = arith.constant 0 : i32
    %c0_i32_0 = arith.constant 0 : i32
    %c0_i32_1 = arith.constant 0 : i32
    %c0_i32_2 = arith.constant 0 : i32
    return %c0_i32, %c0_i32_0, %c0_i32_1 : i32, i32, i32
  }
  func.func @transform_2(%arg0: i32) -> (i32, i32, i32) {
    %c0_i32 = arith.constant 0 : i32
    %c0_i32_0 = arith.constant 0 : i32
    %c0_i32_1 = arith.constant 0 : i32
    return %arg0, %c0_i32, %c0_i32_0 : i32, i32, i32
  }
  func.func @transform_3(%arg0: i32) -> (i32, i32, i32) {
    %c0_i32 = arith.constant 0 : i32
    %c0_i32_0 = arith.constant 0 : i32
    %c0_i32_1 = arith.constant 0 : i32
    return %arg0, %c0_i32, %c0_i32_0 : i32, i32, i32
  }
  func.func @transform_4(%arg0: i32) -> (i32, i32, i32) {
    %c0_i32 = arith.constant 0 : i32
    %c0_i32_0 = arith.constant 0 : i32
    %c0_i32_1 = arith.constant 0 : i32
    return %arg0, %c0_i32, %c0_i32_0 : i32, i32, i32
  }
}

module attributes {stable_mosaic.version = 11 : i64} {
  func.func @_bn_prelu_kernel(%arg0: i32, %arg1: memref<1x256x128xf32, #tpu.memory_space<vmem>>, %arg2: memref<2x1x128xf32, #tpu.memory_space<vmem>>, %arg3: memref<2x1x128xf32, #tpu.memory_space<vmem>>, %arg4: memref<1x128xf32, #tpu.memory_space<vmem>>, %arg5: memref<1x128xf32, #tpu.memory_space<vmem>>, %arg6: memref<1x128xf32, #tpu.memory_space<vmem>>, %arg7: memref<1x256x128xbf16, #tpu.memory_space<vmem>>) attributes {dimension_semantics = [#tpu.dimension_semantics<parallel>], iteration_bounds = array<i64: 2>, scalar_prefetch = 0 : i64, scratch_operands = 0 : i64, tpu.core_type = #tpu.core_type<tc>, window_params = [{transform_indices = @transform_0, window_bounds = array<i64: 1, 256, 128>}, {pipeline_mode = #tpu.pipeline_mode<synchronous>, transform_indices = @transform_1, window_bounds = array<i64: 2, 1, 128>}, {pipeline_mode = #tpu.pipeline_mode<synchronous>, transform_indices = @transform_2, window_bounds = array<i64: 2, 1, 128>}, {pipeline_mode = #tpu.pipeline_mode<synchronous>, transform_indices = @transform_3, window_bounds = array<i64: 1, 128>}, {pipeline_mode = #tpu.pipeline_mode<synchronous>, transform_indices = @transform_4, window_bounds = array<i64: 1, 128>}, {pipeline_mode = #tpu.pipeline_mode<synchronous>, transform_indices = @transform_5, window_bounds = array<i64: 1, 128>}, {transform_indices = @transform_6, window_bounds = array<i64: 1, 256, 128>}]} {
    %c0 = arith.constant 0 : index
    %c0_0 = arith.constant 0 : index
    %c0_1 = arith.constant 0 : index
    %0 = vector.load %arg2[%c0, %c0_0, %c0_1] : memref<2x1x128xf32, #tpu.memory_space<vmem>>, vector<2x1x128xf32>
    %cst = arith.constant dense<0.000000e+00> : vector<1x128xf32>
    %1 = vector.multi_reduction <add>, %0, %cst [0] : vector<2x1x128xf32> to vector<1x128xf32>
    %cst_2 = arith.constant 0.001953125 : f32
    %2 = vector.broadcast %cst_2 : f32 to vector<1x128xf32>
    %3 = arith.mulf %1, %2 : vector<1x128xf32>
    %c0_3 = arith.constant 0 : index
    %c0_4 = arith.constant 0 : index
    %c0_5 = arith.constant 0 : index
    %4 = vector.load %arg3[%c0_3, %c0_4, %c0_5] : memref<2x1x128xf32, #tpu.memory_space<vmem>>, vector<2x1x128xf32>
    %cst_6 = arith.constant dense<0.000000e+00> : vector<1x128xf32>
    %5 = vector.multi_reduction <add>, %4, %cst_6 [0] : vector<2x1x128xf32> to vector<1x128xf32>
    %cst_7 = arith.constant 0.001953125 : f32
    %6 = vector.broadcast %cst_7 : f32 to vector<1x128xf32>
    %7 = arith.mulf %5, %6 : vector<1x128xf32>
    %8 = arith.mulf %3, %3 : vector<1x128xf32>
    %9 = arith.subf %7, %8 : vector<1x128xf32>
    %cst_8 = arith.constant 0.000000e+00 : f32
    %10 = vector.broadcast %cst_8 : f32 to vector<1x128xf32>
    %11 = arith.maximumf %9, %10 : vector<1x128xf32>
    %cst_9 = arith.constant 9.99999974E-6 : f32
    %12 = vector.broadcast %cst_9 : f32 to vector<1x128xf32>
    %13 = arith.addf %11, %12 : vector<1x128xf32>
    %14 = math.rsqrt %13 : vector<1x128xf32>
    %c0_10 = arith.constant 0 : index
    %c0_11 = arith.constant 0 : index
    %15 = vector.load %arg4[%c0_10, %c0_11] : memref<1x128xf32, #tpu.memory_space<vmem>>, vector<1x128xf32>
    %16 = arith.mulf %14, %15 : vector<1x128xf32>
    %c0_12 = arith.constant 0 : index
    %c0_13 = arith.constant 0 : index
    %17 = vector.load %arg5[%c0_12, %c0_13] : memref<1x128xf32, #tpu.memory_space<vmem>>, vector<1x128xf32>
    %18 = arith.mulf %3, %16 : vector<1x128xf32>
    %19 = arith.subf %17, %18 : vector<1x128xf32>
    %c0_14 = arith.constant 0 : index
    %c0_15 = arith.constant 0 : index
    %c0_16 = arith.constant 0 : index
    %20 = vector.load %arg1[%c0_14, %c0_15, %c0_16] : memref<1x256x128xf32, #tpu.memory_space<vmem>>, vector<1x256x128xf32>
    %21 = vector.shape_cast %20 : vector<1x256x128xf32> to vector<256x128xf32>
    %22 = vector.broadcast %16 : vector<1x128xf32> to vector<256x128xf32>
    %23 = arith.mulf %21, %22 : vector<256x128xf32>
    %24 = vector.broadcast %19 : vector<1x128xf32> to vector<256x128xf32>
    %25 = arith.addf %23, %24 : vector<256x128xf32>
    %cst_17 = arith.constant 0.000000e+00 : f32
    %26 = vector.broadcast %cst_17 : f32 to vector<256x128xf32>
    %27 = arith.cmpf oge, %25, %26 : vector<256x128xf32>
    %c0_18 = arith.constant 0 : index
    %c0_19 = arith.constant 0 : index
    %28 = vector.load %arg6[%c0_18, %c0_19] : memref<1x128xf32, #tpu.memory_space<vmem>>, vector<1x128xf32>
    %29 = vector.broadcast %28 : vector<1x128xf32> to vector<256x128xf32>
    %30 = arith.mulf %29, %25 : vector<256x128xf32>
    %31 = arith.select %27, %25, %30 : vector<256x128xi1>, vector<256x128xf32>
    %32 = arith.truncf %31 : vector<256x128xf32> to vector<256x128xbf16>
    %c0_20 = arith.constant 0 : index
    %c0_21 = arith.constant 0 : index
    %c0_22 = arith.constant 0 : index
    %33 = vector.load %arg7[%c0_20, %c0_21, %c0_22] : memref<1x256x128xbf16, #tpu.memory_space<vmem>>, vector<1x256x128xbf16>
    %34 = vector.shape_cast %33 : vector<1x256x128xbf16> to vector<256x128xbf16>
    %35 = vector.shape_cast %32 : vector<256x128xbf16> to vector<1x256x128xbf16>
    tpu.vector_store %arg7[%c0_20, %c0_21, %c0_22], %35 {strides = array<i32>} : memref<1x256x128xbf16, #tpu.memory_space<vmem>>, vector<1x256x128xbf16>,
    return
  }
  func.func @transform_0(%arg0: i32) -> (i32, i32, i32) {
    %c0_i32 = arith.constant 0 : i32
    %c0_i32_0 = arith.constant 0 : i32
    %c0_i32_1 = arith.constant 0 : i32
    return %arg0, %c0_i32, %c0_i32_0 : i32, i32, i32
  }
  func.func @transform_1(%arg0: i32) -> (i32, i32, i32) {
    %c0_i32 = arith.constant 0 : i32
    %c0_i32_0 = arith.constant 0 : i32
    %c0_i32_1 = arith.constant 0 : i32
    %c0_i32_2 = arith.constant 0 : i32
    return %c0_i32, %c0_i32_0, %c0_i32_1 : i32, i32, i32
  }
  func.func @transform_2(%arg0: i32) -> (i32, i32, i32) {
    %c0_i32 = arith.constant 0 : i32
    %c0_i32_0 = arith.constant 0 : i32
    %c0_i32_1 = arith.constant 0 : i32
    %c0_i32_2 = arith.constant 0 : i32
    return %c0_i32, %c0_i32_0, %c0_i32_1 : i32, i32, i32
  }
  func.func @transform_3(%arg0: i32) -> (i32, i32) {
    %c0_i32 = arith.constant 0 : i32
    %c0_i32_0 = arith.constant 0 : i32
    %c0_i32_1 = arith.constant 0 : i32
    return %c0_i32, %c0_i32_0 : i32, i32
  }
  func.func @transform_4(%arg0: i32) -> (i32, i32) {
    %c0_i32 = arith.constant 0 : i32
    %c0_i32_0 = arith.constant 0 : i32
    %c0_i32_1 = arith.constant 0 : i32
    return %c0_i32, %c0_i32_0 : i32, i32
  }
  func.func @transform_5(%arg0: i32) -> (i32, i32) {
    %c0_i32 = arith.constant 0 : i32
    %c0_i32_0 = arith.constant 0 : i32
    %c0_i32_1 = arith.constant 0 : i32
    return %c0_i32, %c0_i32_0 : i32, i32
  }
  func.func @transform_6(%arg0: i32) -> (i32, i32, i32) {
    %c0_i32 = arith.constant 0 : i32
    %c0_i32_0 = arith.constant 0 : i32
    %c0_i32_1 = arith.constant 0 : i32
    return %arg0, %c0_i32, %c0_i32_0 : i32, i32, i32
  }
}

module attributes {stable_mosaic.version = 11 : i64} {
  func.func @_bn_residual_kernel(%arg0: i32, %arg1: memref<1x256x128xf32, #tpu.memory_space<vmem>>, %arg2: memref<2x1x128xf32, #tpu.memory_space<vmem>>, %arg3: memref<2x1x128xf32, #tpu.memory_space<vmem>>, %arg4: memref<1x128xf32, #tpu.memory_space<vmem>>, %arg5: memref<1x128xf32, #tpu.memory_space<vmem>>, %arg6: memref<1x256x128xf32, #tpu.memory_space<vmem>>, %arg7: memref<1x256x128xf32, #tpu.memory_space<vmem>>) attributes {dimension_semantics = [#tpu.dimension_semantics<parallel>], iteration_bounds = array<i64: 2>, scalar_prefetch = 0 : i64, scratch_operands = 0 : i64, tpu.core_type = #tpu.core_type<tc>, window_params = [{transform_indices = @transform_0, window_bounds = array<i64: 1, 256, 128>}, {pipeline_mode = #tpu.pipeline_mode<synchronous>, transform_indices = @transform_1, window_bounds = array<i64: 2, 1, 128>}, {pipeline_mode = #tpu.pipeline_mode<synchronous>, transform_indices = @transform_2, window_bounds = array<i64: 2, 1, 128>}, {pipeline_mode = #tpu.pipeline_mode<synchronous>, transform_indices = @transform_3, window_bounds = array<i64: 1, 128>}, {pipeline_mode = #tpu.pipeline_mode<synchronous>, transform_indices = @transform_4, window_bounds = array<i64: 1, 128>}, {transform_indices = @transform_5, window_bounds = array<i64: 1, 256, 128>}, {transform_indices = @transform_6, window_bounds = array<i64: 1, 256, 128>}]} {
    %c0 = arith.constant 0 : index
    %c0_0 = arith.constant 0 : index
    %c0_1 = arith.constant 0 : index
    %0 = vector.load %arg2[%c0, %c0_0, %c0_1] : memref<2x1x128xf32, #tpu.memory_space<vmem>>, vector<2x1x128xf32>
    %cst = arith.constant dense<0.000000e+00> : vector<1x128xf32>
    %1 = vector.multi_reduction <add>, %0, %cst [0] : vector<2x1x128xf32> to vector<1x128xf32>
    %cst_2 = arith.constant 0.001953125 : f32
    %2 = vector.broadcast %cst_2 : f32 to vector<1x128xf32>
    %3 = arith.mulf %1, %2 : vector<1x128xf32>
    %c0_3 = arith.constant 0 : index
    %c0_4 = arith.constant 0 : index
    %c0_5 = arith.constant 0 : index
    %4 = vector.load %arg3[%c0_3, %c0_4, %c0_5] : memref<2x1x128xf32, #tpu.memory_space<vmem>>, vector<2x1x128xf32>
    %cst_6 = arith.constant dense<0.000000e+00> : vector<1x128xf32>
    %5 = vector.multi_reduction <add>, %4, %cst_6 [0] : vector<2x1x128xf32> to vector<1x128xf32>
    %cst_7 = arith.constant 0.001953125 : f32
    %6 = vector.broadcast %cst_7 : f32 to vector<1x128xf32>
    %7 = arith.mulf %5, %6 : vector<1x128xf32>
    %8 = arith.mulf %3, %3 : vector<1x128xf32>
    %9 = arith.subf %7, %8 : vector<1x128xf32>
    %cst_8 = arith.constant 0.000000e+00 : f32
    %10 = vector.broadcast %cst_8 : f32 to vector<1x128xf32>
    %11 = arith.maximumf %9, %10 : vector<1x128xf32>
    %cst_9 = arith.constant 9.99999974E-6 : f32
    %12 = vector.broadcast %cst_9 : f32 to vector<1x128xf32>
    %13 = arith.addf %11, %12 : vector<1x128xf32>
    %14 = math.rsqrt %13 : vector<1x128xf32>
    %c0_10 = arith.constant 0 : index
    %c0_11 = arith.constant 0 : index
    %15 = vector.load %arg4[%c0_10, %c0_11] : memref<1x128xf32, #tpu.memory_space<vmem>>, vector<1x128xf32>
    %16 = arith.mulf %14, %15 : vector<1x128xf32>
    %c0_12 = arith.constant 0 : index
    %c0_13 = arith.constant 0 : index
    %17 = vector.load %arg5[%c0_12, %c0_13] : memref<1x128xf32, #tpu.memory_space<vmem>>, vector<1x128xf32>
    %18 = arith.mulf %3, %16 : vector<1x128xf32>
    %19 = arith.subf %17, %18 : vector<1x128xf32>
    %c0_14 = arith.constant 0 : index
    %c0_15 = arith.constant 0 : index
    %c0_16 = arith.constant 0 : index
    %20 = vector.load %arg1[%c0_14, %c0_15, %c0_16] : memref<1x256x128xf32, #tpu.memory_space<vmem>>, vector<1x256x128xf32>
    %21 = vector.shape_cast %20 : vector<1x256x128xf32> to vector<256x128xf32>
    %22 = vector.broadcast %16 : vector<1x128xf32> to vector<256x128xf32>
    %23 = arith.mulf %21, %22 : vector<256x128xf32>
    %24 = vector.broadcast %19 : vector<1x128xf32> to vector<256x128xf32>
    %25 = arith.addf %23, %24 : vector<256x128xf32>
    %c0_17 = arith.constant 0 : index
    %c0_18 = arith.constant 0 : index
    %c0_19 = arith.constant 0 : index
    %26 = vector.load %arg6[%c0_17, %c0_18, %c0_19] : memref<1x256x128xf32, #tpu.memory_space<vmem>>, vector<1x256x128xf32>
    %27 = vector.shape_cast %26 : vector<1x256x128xf32> to vector<256x128xf32>
    %28 = arith.addf %25, %27 : vector<256x128xf32>
    %c0_20 = arith.constant 0 : index
    %c0_21 = arith.constant 0 : index
    %c0_22 = arith.constant 0 : index
    %29 = vector.load %arg7[%c0_20, %c0_21, %c0_22] : memref<1x256x128xf32, #tpu.memory_space<vmem>>, vector<1x256x128xf32>
    %30 = vector.shape_cast %29 : vector<1x256x128xf32> to vector<256x128xf32>
    %31 = vector.shape_cast %28 : vector<256x128xf32> to vector<1x256x128xf32>
    tpu.vector_store %arg7[%c0_20, %c0_21, %c0_22], %31 {strides = array<i32>} : memref<1x256x128xf32, #tpu.memory_space<vmem>>, vector<1x256x128xf32>,
    return
  }
  func.func @transform_0(%arg0: i32) -> (i32, i32, i32) {
    %c0_i32 = arith.constant 0 : i32
    %c0_i32_0 = arith.constant 0 : i32
    %c0_i32_1 = arith.constant 0 : i32
    return %arg0, %c0_i32, %c0_i32_0 : i32, i32, i32
  }
  func.func @transform_1(%arg0: i32) -> (i32, i32, i32) {
    %c0_i32 = arith.constant 0 : i32
    %c0_i32_0 = arith.constant 0 : i32
    %c0_i32_1 = arith.constant 0 : i32
    %c0_i32_2 = arith.constant 0 : i32
    return %c0_i32, %c0_i32_0, %c0_i32_1 : i32, i32, i32
  }
  func.func @transform_2(%arg0: i32) -> (i32, i32, i32) {
    %c0_i32 = arith.constant 0 : i32
    %c0_i32_0 = arith.constant 0 : i32
    %c0_i32_1 = arith.constant 0 : i32
    %c0_i32_2 = arith.constant 0 : i32
    return %c0_i32, %c0_i32_0, %c0_i32_1 : i32, i32, i32
  }
  func.func @transform_3(%arg0: i32) -> (i32, i32) {
    %c0_i32 = arith.constant 0 : i32
    %c0_i32_0 = arith.constant 0 : i32
    %c0_i32_1 = arith.constant 0 : i32
    return %c0_i32, %c0_i32_0 : i32, i32
  }
  func.func @transform_4(%arg0: i32) -> (i32, i32) {
    %c0_i32 = arith.constant 0 : i32
    %c0_i32_0 = arith.constant 0 : i32
    %c0_i32_1 = arith.constant 0 : i32
    return %c0_i32, %c0_i32_0 : i32, i32
  }
  func.func @transform_5(%arg0: i32) -> (i32, i32, i32) {
    %c0_i32 = arith.constant 0 : i32
    %c0_i32_0 = arith.constant 0 : i32
    %c0_i32_1 = arith.constant 0 : i32
    return %arg0, %c0_i32, %c0_i32_0 : i32, i32, i32
  }
  func.func @transform_6(%arg0: i32) -> (i32, i32, i32) {
    %c0_i32 = arith.constant 0 : i32
    %c0_i32_0 = arith.constant 0 : i32
    %c0_i32_1 = arith.constant 0 : i32
    return %arg0, %c0_i32, %c0_i32_0 : i32, i32, i32
  }
}

</mosaic_0001>

<bundles_post_ra>
// kernel: residual_block_forward.7
= control target key start
LH: loop header
LB: loop body
LE: loop exit
PB: predicated region body
PF: predicated region fallthrough
CT: control target
= control target key end

     0   :  { %s633_s21 = smov 0   ;;  %s846_s0 = inlined_call_operand.vmem [shape: f32[2,256,128], index: 0, kind: input, shape index: {}]   ;;  %s847_s1 = inlined_call_operand.vmem [shape: f32[2,1,128], index: 1, kind: input, shape index: {}]   ;;  %s848_s2 = inlined_call_operand.vmem [shape: f32[2,1,128], index: 2, kind: input, shape index: {}]   ;;  %s849_s3 = inlined_call_operand.vmem [shape: f32[1,128], index: 3, kind: input, shape index: {}]   ;;  %s850_s4 = inlined_call_operand.vmem [shape: f32[1,128], index: 4, kind: input, shape index: {}]   ;;  %s851_s5 = inlined_call_operand.vmem [shape: f32[2,256,128], index: 5, kind: input, shape index: {}]   ;;  %s852_s6 = inlined_call_operand.vmem [shape: f32[2,256,128], index: 6, kind: output, shape index: {}]  }
   0x1 LB: > { %s564_s22 = sadd.s32 4294967295, %s596_s21   ;;  %p568_p0 = scmp.ge.s32.totalorder %s596_s21, 1  ;;  %s596_s21 = sphi %s633_s21, %s16_s21  }
   0x2   : > { %p222_p1 = scmp.lt.s32.totalorder %s596_s21, 3 }
   0x4   : > { %p223_p2 = pnand %p568_p0, %p222_p1 }
   0x5   : > { %p257_p3 = scmp.lt.s32.totalorder (!%p223_p2), %s564_s22, 1 }
   0x6   : > { %226 = sbr.rel (%p223_p2) target bundleno = 74 (0x4a), region = 44 }
   0xb   : > { %v272_v0 = vld [vmem:[%s847_s1] sm:$0x1]  ;;  %v273_v1 = vld [vmem:[%s847_s1 + $0x1] sm:$0x1]  ;;  %vm274_vm0 = vcmask 1040384   ;;  %s854_s22 = smov (!%p257_p3, %s564_s22), 1  ;;  %v327_v16 = vlaneseq }
   0xc   : > { %v275_v2 = vsel %vm274_vm0, %v272_v0, 0.0  ;;  %v276_v3 = vsel %vm274_vm0, %v273_v1, 0.0  ;;  %v279_v4 = vld [vmem:[%s848_s2] sm:$0x1]  ;;  %v280_v5 = vld [vmem:[%s848_s2 + $0x1] sm:$0x1] }
   0xd   : > { %v277_v6 = vadd.f32 %v276_v3, %v275_v2  ;;  %v281_v7 = vsel %vm274_vm0, %v279_v4, 0.0  ;;  %v282_v8 = vsel %vm274_vm0, %v280_v5, 0.0  ;;  %s653_s7 = sshll.u32 %s854_s22, 8  ;;  %v328_v17 = vshrl.u32 %v327_v16, 7  ;;  %v290_v18 = vld [vmem:[%s849_s3] sm:$0x1] }
   0xe   : > { %v283_v9 = vadd.f32 %v282_v8, %v281_v7  ;;  %s659_s10 = scalar_lea.vmem %s846_s0, %s653_s7  ;;  %v292_v22 = vld [vmem:[%s850_s4] sm:$0x1]  ;;  %s681_s17 = scalar_lea.vmem %s851_s5, %s653_s7 }
   0xf   : > { %v278_v10 = vmul.f32 0.001953125, %v277_v6  ;;  %v329_v19 = vsub.s32 0, %v328_v17  ;;  %v295_v23 = vld [vmem:[%s659_s10] sm:$0xff]  ;;  %v296_v24 = vld [vmem:[%s659_s10 + $0x8] sm:$0xff]  ;;  %v297_v25 = vld [vmem:[%s659_s10 + $0x10] sm:$0xff]  ;;  %s721_s20 = scalar_lea.vmem %s852_s6, %s653_s7 }
  0x10   : > { %v284_v11 = vmul.f32 0.001953125, %v283_v9  ;;  %v298_v26 = vld [vmem:[%s659_s10 + $0x18] sm:$0xff]  ;;  %v299_v27 = vld [vmem:[%s659_s10 + $0x20] sm:$0xff]  ;;  %v300_v30 = vld [vmem:[%s659_s10 + $0x28] sm:$0xff] }
  0x11   : > { %v285_v12 = vmul.f32 %v278_v10, %v278_v10  ;;  %v301_v31 = vld [vmem:[%s659_s10 + $0x30] sm:$0xff]  ;;  %v302_v32 = vld [vmem:[%s659_s10 + $0x38] sm:$0xff]  ;;  %v303_v33 = vld [vmem:[%s659_s10 + $0x40] sm:$0xff] }
  0x12   : > { %v304_v34 = vld [vmem:[%s659_s10 + $0x48] sm:$0xff]  ;;  %v305_v35 = vld [vmem:[%s659_s10 + $0x50] sm:$0xff]  ;;  %v306_v40 = vld [vmem:[%s659_s10 + $0x58] sm:$0xff] }
  0x13   : > { %v286_v13 = vsub.f32 %v284_v11, %v285_v12  ;;  %v307_v41 = vld [vmem:[%s659_s10 + $0x60] sm:$0xff]  ;;  %v308_v42 = vld [vmem:[%s659_s10 + $0x68] sm:$0xff]  ;;  %v403_v53 = vld [vmem:[%s681_s17 + $0x10] sm:$0xff] }
  0x14   : > { %v401_v48 = vld [vmem:[%s681_s17] sm:$0xff]  ;;  %v402_v49 = vld [vmem:[%s681_s17 + $0x8] sm:$0xff]  ;;  %v404_v54 = vld [vmem:[%s681_s17 + $0x18] sm:$0xff] }
  0x15   : > { %v287_v14 = vmax.f32 %v286_v13, 0.0  ;;  %v405_v55 = vld [vmem:[%s681_s17 + $0x20] sm:$0xff]  ;;  %v406_v0 = vld [vmem:[%s681_s17 + $0x28] sm:$0xff]  ;;  %v407_v1 = vld [vmem:[%s681_s17 + $0x30] sm:$0xff] }
  0x16   : > { %v408_v2 = vld [vmem:[%s681_s17 + $0x38] sm:$0xff]  ;;  %v409_v7 = vld [vmem:[%s681_s17 + $0x40] sm:$0xff]  ;;  %v410_v12 = vld [vmem:[%s681_s17 + $0x48] sm:$0xff] }
  0x17   : > { %v288_v15 = vadd.f32 1e-05, %v287_v14  ;;  %v309_v13 = vld [vmem:[%s659_s10 + $0x70] sm:$0xff]  ;;  %v310_v14 = vld [vmem:[%s659_s10 + $0x78] sm:$0xff] }
  0x19   : > { %588 = vrsqrt.f32 %v288_v15 }
  0x26   : > { %v589_v20 = vpop.eup %588 }
  0x27   : > { %v291_v21 = vmul.f32 %v589_v20, %v290_v18  ;;  %v412_v20 = vld [vmem:[%s681_s17 + $0x58] sm:$0xff] }
  0x29   : > { %v293_v28 = vmul.f32 %v291_v21, %v278_v10  ;;  %v672_v29 = vrot.slane %v291_v21, %v329_v19  ;;  %v413_v21 = vld [vmem:[%s681_s17 + $0x60] sm:$0xff] }
  0x2b   : > { %v294_v36 = vsub.f32 %v292_v22, %v293_v28  ;;  %v331_v37 = vmul.f32 %v672_v29, %v295_v23  ;;  %v332_v38 = vmul.f32 %v672_v29, %v296_v24  ;;  %v333_v39 = vmul.f32 %v672_v29, %v297_v25  ;;  %v311_v28 = vld [vmem:[%s659_s10 + $0x80] sm:$0xff] }
  0x2c   : > { %v334_v43 = vmul.f32 %v672_v29, %v298_v26  ;;  %v335_v44 = vmul.f32 %v672_v29, %v299_v27  ;;  %v336_v45 = vmul.f32 %v672_v29, %v300_v30  ;;  %v337_v46 = vmul.f32 %v672_v29, %v301_v31  ;;  %v414_v26 = vld [vmem:[%s681_s17 + $0x68] sm:$0xff]  ;;  %v415_v27 = vld [vmem:[%s681_s17 + $0x70] sm:$0xff] }
  0x2d   : > { %v696_v47 = vrot.slane %v294_v36, %v329_v19  ;;  %v338_v50 = vmul.f32 %v672_v29, %v302_v32  ;;  %v339_v51 = vmul.f32 %v672_v29, %v303_v33  ;;  %v340_v52 = vmul.f32 %v672_v29, %v304_v34  ;;  %v411_v19 = vld [vmem:[%s681_s17 + $0x50] sm:$0xff]  ;;  %v312_v34 = vld [vmem:[%s659_s10 + $0x88] sm:$0xff]  ;;  %v314_v36 = vld [vmem:[%s659_s10 + $0x98] sm:$0xff] }
  0x2e   : > { %v341_v56 = vmul.f32 %v672_v29, %v305_v35  ;;  %v342_v57 = vmul.f32 %v672_v29, %v306_v40  ;;  %v343_v58 = vmul.f32 %v672_v29, %v307_v41  ;;  %v344_v59 = vmul.f32 %v672_v29, %v308_v42  ;;  %v313_v35 = vld [vmem:[%s659_s10 + $0x90] sm:$0xff]  ;;  %v416_v41 = vld [vmem:[%s681_s17 + $0x78] sm:$0xff]  ;;  %v315_v42 = vld [vmem:[%s659_s10 + $0xa0] sm:$0xff] }
  0x2f   : > { %v369_v60 = vadd.f32 %v696_v47, %v331_v37  ;;  %v370_v61 = vadd.f32 %v696_v47, %v332_v38  ;;  %v371_v62 = vadd.f32 %v696_v47, %v333_v39  ;;  %v372_v63 = vadd.f32 %v696_v47, %v334_v43  ;;  %v316_v43 = vld [vmem:[%s659_s10 + $0xa8] sm:$0xff] }
  0x30   : > { %v373_v3 = vadd.f32 %v696_v47, %v335_v44  ;;  %v374_v4 = vadd.f32 %v696_v47, %v336_v45  ;;  %v375_v5 = vadd.f32 %v696_v47, %v337_v46  ;;  %v376_v6 = vadd.f32 %v696_v47, %v338_v50 }
  0x31   : > { %v433_v8 = vadd.f32 %v401_v48, %v369_v60  ;;  %v434_v9 = vadd.f32 %v402_v49, %v370_v61  ;;  %v435_v10 = vadd.f32 %v403_v53, %v371_v62  ;;  %v436_v11 = vadd.f32 %v404_v54, %v372_v63  ;;  %v417_v49 = vld [vmem:[%s681_s17 + $0x80] sm:$0xff]  ;;  %v420_v60 = vld [vmem:[%s681_s17 + $0x98] sm:$0xff] }
  0x32   : > { %v437_v15 = vadd.f32 %v405_v55, %v373_v3  ;;  %v438_v16 = vadd.f32 %v406_v0, %v374_v4  ;;  %v439_v17 = vadd.f32 %v407_v1, %v375_v5  ;;  %v440_v18 = vadd.f32 %v408_v2, %v376_v6  ;;  %v317_v55 = vld [vmem:[%s659_s10 + $0xb0] sm:$0xff]  ;;  %v421_v62 = vld [vmem:[%s681_s17 + $0xa0] sm:$0xff]  ;;  %v422_v4 = vld [vmem:[%s681_s17 + $0xa8] sm:$0xff] }
  0x33   : > { %465 = vst [vmem:[%s721_s20] sm:$0xff] %v433_v8  ;;  %466 = vst [vmem:[%s721_s20 + $0x8] sm:$0xff] %v434_v9  ;;  %v377_v22 = vadd.f32 %v696_v47, %v339_v51  ;;  %v378_v23 = vadd.f32 %v696_v47, %v340_v52  ;;  %v379_v24 = vadd.f32 %v696_v47, %v341_v56  ;;  %v418_v52 = vld [vmem:[%s681_s17 + $0x88] sm:$0xff]  ;;  %v318_v56 = vld [vmem:[%s659_s10 + $0xb8] sm:$0xff] }
  0x34   : > { %467 = vst [vmem:[%s721_s20 + $0x10] sm:$0xff] %v435_v10  ;;  %468 = vst [vmem:[%s721_s20 + $0x18] sm:$0xff] %v436_v11  ;;  %v380_v25 = vadd.f32 %v696_v47, %v342_v57  ;;  %v381_v30 = vadd.f32 %v696_v47, %v343_v58  ;;  %v382_v31 = vadd.f32 %v696_v47, %v344_v59  ;;  %v419_v59 = vld [vmem:[%s681_s17 + $0x90] sm:$0xff]  ;;  %v319_v6 = vld [vmem:[%s659_s10 + $0xc0] sm:$0xff] }
  0x35   : > { %469 = vst [vmem:[%s721_s20 + $0x20] sm:$0xff] %v437_v15  ;;  %470 = vst [vmem:[%s721_s20 + $0x28] sm:$0xff] %v438_v16  ;;  %v345_v32 = vmul.f32 %v672_v29, %v309_v13  ;;  %v346_v33 = vmul.f32 %v672_v29, %v310_v14  ;;  %v441_v37 = vadd.f32 %v409_v7, %v377_v22  ;;  %v423_v5 = vld [vmem:[%s681_s17 + $0xb0] sm:$0xff]  ;;  %v320_v11 = vld [vmem:[%s659_s10 + $0xc8] sm:$0xff] }
  0x36   : > { %471 = vst [vmem:[%s721_s20 + $0x30] sm:$0xff] %v439_v17  ;;  %472 = vst [vmem:[%s721_s20 + $0x38] sm:$0xff] %v440_v18  ;;  %v442_v38 = vadd.f32 %v410_v12, %v378_v23  ;;  %v443_v39 = vadd.f32 %v411_v19, %v379_v24  ;;  %v444_v40 = vadd.f32 %v412_v20, %v380_v25  ;;  %v321_v12 = vld [vmem:[%s659_s10 + $0xd0] sm:$0xff]  ;;  %v322_v13 = vld [vmem:[%s659_s10 + $0xd8] sm:$0xff] }
  0x37   : > { %v445_v44 = vadd.f32 %v413_v21, %v381_v30  ;;  %v446_v45 = vadd.f32 %v414_v26, %v382_v31  ;;  %v383_v46 = vadd.f32 %v696_v47, %v345_v32  ;;  %v384_v48 = vadd.f32 %v696_v47, %v346_v33  ;;  %473 = vst [vmem:[%s721_s20 + $0x40] sm:$0xff] %v441_v37  ;;  %v424_v18 = vld [vmem:[%s681_s17 + $0xb8] sm:$0xff]  ;;  %v323_v19 = vld [vmem:[%s659_s10 + $0xe0] sm:$0xff]  ;;  %v324_v20 = vld [vmem:[%s659_s10 + $0xe8] sm:$0xff] }
  0x38   : > { %474 = vst [vmem:[%s721_s20 + $0x48] sm:$0xff] %v442_v38  ;;  %475 = vst [vmem:[%s721_s20 + $0x50] sm:$0xff] %v443_v39  ;;  %v347_v50 = vmul.f32 %v672_v29, %v311_v28  ;;  %v348_v51 = vmul.f32 %v672_v29, %v312_v34  ;;  %v349_v53 = vmul.f32 %v672_v29, %v313_v35  ;;  %v425_v26 = vld [vmem:[%s681_s17 + $0xc0] sm:$0xff]  ;;  %v325_v31 = vld [vmem:[%s659_s10 + $0xf0] sm:$0xff] }
  0x39   : > { %476 = vst [vmem:[%s721_s20 + $0x58] sm:$0xff] %v444_v40  ;;  %v350_v54 = vmul.f32 %v672_v29, %v314_v36  ;;  %477 = vst [vmem:[%s721_s20 + $0x60] sm:$0xff] %v445_v44  ;;  %v447_v57 = vadd.f32 %v415_v27, %v383_v46  ;;  %v448_v58 = vadd.f32 %v416_v41, %v384_v48  ;;  %v326_v32 = vld [vmem:[%s659_s10 + $0xf8] sm:$0xff]  ;;  %v426_v35 = vld [vmem:[%s681_s17 + $0xc8] sm:$0xff] }
  0x3a   : > { %478 = vst [vmem:[%s721_s20 + $0x68] sm:$0xff] %v446_v45  ;;  %v351_v61 = vmul.f32 %v672_v29, %v315_v42  ;;  %v352_v63 = vmul.f32 %v672_v29, %v316_v43  ;;  %v385_v0 = vadd.f32 %v696_v47, %v347_v50  ;;  %v386_v1 = vadd.f32 %v696_v47, %v348_v51  ;;  %v427_v36 = vld [vmem:[%s681_s17 + $0xd0] sm:$0xff]  ;;  %v428_v37 = vld [vmem:[%s681_s17 + $0xd8] sm:$0xff]  ;;  %v429_v44 = vld [vmem:[%s681_s17 + $0xe0] sm:$0xff] }
  0x3b   : > { %v387_v2 = vadd.f32 %v696_v47, %v349_v53  ;;  %v388_v3 = vadd.f32 %v696_v47, %v350_v54  ;;  %479 = vst [vmem:[%s721_s20 + $0x70] sm:$0xff] %v447_v57  ;;  %480 = vst [vmem:[%s721_s20 + $0x78] sm:$0xff] %v448_v58  ;;  %v353_v9 = vmul.f32 %v672_v29, %v317_v55  ;;  %v430_v45 = vld [vmem:[%s681_s17 + $0xe8] sm:$0xff]  ;;  %v431_v55 = vld [vmem:[%s681_s17 + $0xf0] sm:$0xff] }
  0x3c   : > { %v389_v7 = vadd.f32 %v696_v47, %v351_v61  ;;  %v390_v8 = vadd.f32 %v696_v47, %v352_v63  ;;  %v354_v10 = vmul.f32 %v672_v29, %v318_v56  ;;  %v449_v14 = vadd.f32 %v417_v49, %v385_v0  ;;  %v432_v56 = vld [vmem:[%s681_s17 + $0xf8] sm:$0xff] }
  0x3d   : > { %v450_v15 = vadd.f32 %v418_v52, %v386_v1  ;;  %v451_v16 = vadd.f32 %v419_v59, %v387_v2  ;;  %v452_v17 = vadd.f32 %v420_v60, %v388_v3  ;;  %v391_v23 = vadd.f32 %v696_v47, %v353_v9 }
  0x3e   : > { %v453_v21 = vadd.f32 %v421_v62, %v389_v7  ;;  %v454_v22 = vadd.f32 %v422_v4, %v390_v8  ;;  %v392_v24 = vadd.f32 %v696_v47, %v354_v10  ;;  %481 = vst [vmem:[%s721_s20 + $0x80] sm:$0xff] %v449_v14  ;;  %v355_v25 = vmul.f32 %v672_v29, %v319_v6 }
  0x3f   : > { %482 = vst [vmem:[%s721_s20 + $0x88] sm:$0xff] %v450_v15  ;;  %483 = vst [vmem:[%s721_s20 + $0x90] sm:$0xff] %v451_v16  ;;  %v356_v27 = vmul.f32 %v672_v29, %v320_v11  ;;  %v357_v28 = vmul.f32 %v672_v29, %v321_v12  ;;  %v358_v30 = vmul.f32 %v672_v29, %v322_v13 }
  0x40   : > { %484 = vst [vmem:[%s721_s20 + $0x98] sm:$0xff] %v452_v17  ;;  %485 = vst [vmem:[%s721_s20 + $0xa0] sm:$0xff] %v453_v21  ;;  %v455_v33 = vadd.f32 %v423_v5, %v391_v23  ;;  %v456_v34 = vadd.f32 %v424_v18, %v392_v24  ;;  %v359_v38 = vmul.f32 %v672_v29, %v323_v19 }
  0x41   : > { %486 = vst [vmem:[%s721_s20 + $0xa8] sm:$0xff] %v454_v22  ;;  %v360_v39 = vmul.f32 %v672_v29, %v324_v20  ;;  %v393_v40 = vadd.f32 %v696_v47, %v355_v25  ;;  %v394_v41 = vadd.f32 %v696_v47, %v356_v27  ;;  %v395_v42 = vadd.f32 %v696_v47, %v357_v28 }
  0x42   : > { %v396_v43 = vadd.f32 %v696_v47, %v358_v30  ;;  %487 = vst [vmem:[%s721_s20 + $0xb0] sm:$0xff] %v455_v33  ;;  %488 = vst [vmem:[%s721_s20 + $0xb8] sm:$0xff] %v456_v34  ;;  %v397_v46 = vadd.f32 %v696_v47, %v359_v38  ;;  %v361_v49 = vmul.f32 %v672_v29, %v325_v31 }
  0x43   : > { %v398_v48 = vadd.f32 %v696_v47, %v360_v39  ;;  %v362_v50 = vmul.f32 %v672_v29, %v326_v32  ;;  %v457_v51 = vadd.f32 %v425_v26, %v393_v40  ;;  %v458_v52 = vadd.f32 %v426_v35, %v394_v41 }
  0x44   : > { %v459_v53 = vadd.f32 %v427_v36, %v395_v42  ;;  %v460_v54 = vadd.f32 %v428_v37, %v396_v43  ;;  %v461_v57 = vadd.f32 %v429_v44, %v397_v46  ;;  %v399_v59 = vadd.f32 %v696_v47, %v361_v49 }
  0x45   : > { %v462_v58 = vadd.f32 %v430_v45, %v398_v48  ;;  %v400_v60 = vadd.f32 %v696_v47, %v362_v50  ;;  %489 = vst [vmem:[%s721_s20 + $0xc0] sm:$0xff] %v457_v51  ;;  %490 = vst [vmem:[%s721_s20 + $0xc8] sm:$0xff] %v458_v52 }
  0x46   : > { %491 = vst [vmem:[%s721_s20 + $0xd0] sm:$0xff] %v459_v53  ;;  %492 = vst [vmem:[%s721_s20 + $0xd8] sm:$0xff] %v460_v54  ;;  %v463_v29 = vadd.f32 %v431_v55, %v399_v59 }
  0x47   : > { %493 = vst [vmem:[%s721_s20 + $0xe0] sm:$0xff] %v461_v57  ;;  %494 = vst [vmem:[%s721_s20 + $0xe8] sm:$0xff] %v462_v58  ;;  %v464_v61 = vadd.f32 %v432_v56, %v400_v60 }
  0x48   : > { %495 = vst [vmem:[%s721_s20 + $0xf0] sm:$0xff] %v463_v29 }
  0x49   : > { %496 = vst [vmem:[%s721_s20 + $0xf8] sm:$0xff] %v464_v61 }
  0x4a PF: > { %s16_s21 = sadd.s32 1, %s596_s21  }
  0x4b   : > { %p13_p4 = scmp.ge.s32.totalorder %s16_s21, 4  }
  0x4d   :  { %15 = sbr.rel (!%p13_p4) target bundleno = 1 (0x1), region = 77 }

// kernel: residual_block_forward.5
= control target key start
LH: loop header
LB: loop body
LE: loop exit
PB: predicated region body
PF: predicated region fallthrough
CT: control target
= control target key end

     0   :  { %s925_s21 = smov 0   ;;  %s1122_s0 = inlined_call_operand.vmem [shape: f32[2,256,128], index: 0, kind: input, shape index: {}]   ;;  %s1123_s1 = inlined_call_operand.vmem [shape: f32[2,1,128], index: 1, kind: input, shape index: {}]   ;;  %s1124_s2 = inlined_call_operand.vmem [shape: f32[2,1,128], index: 2, kind: input, shape index: {}]   ;;  %s1125_s3 = inlined_call_operand.vmem [shape: f32[1,128], index: 3, kind: input, shape index: {}]   ;;  %s1126_s4 = inlined_call_operand.vmem [shape: f32[1,128], index: 4, kind: input, shape index: {}]   ;;  %s1127_s5 = inlined_call_operand.vmem [shape: f32[1,128], index: 5, kind: input, shape index: {}]   ;;  %s1128_s6 = inlined_call_operand.vmem [shape: bf16[2,256,128], index: 6, kind: output, shape index: {}]  }
   0x1 LB: > { %s699_s22 = sadd.s32 4294967295, %s888_s21   ;;  %p703_p0 = scmp.ge.s32.totalorder %s888_s21, 1  ;;  %s888_s21 = sphi %s925_s21, %s16_s21  }
   0x2   : > { %p212_p1 = scmp.lt.s32.totalorder %s888_s21, 3 }
   0x4   : > { %p213_p2 = pnand %p703_p0, %p212_p1 }
   0x5   : > { %p242_p3 = scmp.lt.s32.totalorder (!%p213_p2), %s699_s22, 1 }
   0x6   : > { %216 = sbr.rel (%p213_p2) target bundleno = 92 (0x5c), region = 44 }
   0xb   : > { %v252_v0 = vld [vmem:[%s1123_s1] sm:$0x1]  ;;  %v253_v1 = vld [vmem:[%s1123_s1 + $0x1] sm:$0x1]  ;;  %vm254_vm0 = vcmask 1040384   ;;  %s1130_s22 = smov (!%p242_p3, %s699_s22), 1  ;;  %v307_v16 = vlaneseq }
   0xc   : > { %v255_v2 = vsel %vm254_vm0, %v252_v0, 0.0  ;;  %v256_v3 = vsel %vm254_vm0, %v253_v1, 0.0  ;;  %v259_v4 = vld [vmem:[%s1124_s2] sm:$0x1]  ;;  %v260_v5 = vld [vmem:[%s1124_s2 + $0x1] sm:$0x1] }
   0xd   : > { %v257_v6 = vadd.f32 %v256_v3, %v255_v2  ;;  %v261_v7 = vsel %vm254_vm0, %v259_v4, 0.0  ;;  %v262_v8 = vsel %vm254_vm0, %v260_v5, 0.0  ;;  %s743_s7 = sshll.u32 %s1130_s22, 8  ;;  %v308_v17 = vshrl.u32 %v307_v16, 7  ;;  %v270_v18 = vld [vmem:[%s1125_s3] sm:$0x1] }
   0xe   : > { %v263_v9 = vadd.f32 %v262_v8, %v261_v7  ;;  %s951_s10 = scalar_lea.vmem %s1122_s0, %s743_s7  ;;  %v272_v22 = vld [vmem:[%s1126_s4] sm:$0x1]  ;;  %s744_s17 = sshll.u32 %s1130_s22, 7 }
   0xf   : > { %v258_v10 = vmul.f32 0.001953125, %v257_v6  ;;  %v309_v19 = vsub.s32 0, %v308_v17  ;;  %v275_v23 = vld [vmem:[%s951_s10] sm:$0xff]  ;;  %v276_v24 = vld [vmem:[%s951_s10 + $0x8] sm:$0xff]  ;;  %v277_v25 = vld [vmem:[%s951_s10 + $0x10] sm:$0xff]  ;;  %s1012_s20 = scalar_lea.vmem %s1128_s6, %s744_s17 }
  0x10   : > { %v264_v11 = vmul.f32 0.001953125, %v263_v9  ;;  %v278_v26 = vld [vmem:[%s951_s10 + $0x18] sm:$0xff]  ;;  %v279_v27 = vld [vmem:[%s951_s10 + $0x20] sm:$0xff]  ;;  %v280_v30 = vld [vmem:[%s951_s10 + $0x28] sm:$0xff] }
  0x11   : > { %v265_v12 = vmul.f32 %v258_v10, %v258_v10  ;;  %v281_v31 = vld [vmem:[%s951_s10 + $0x30] sm:$0xff]  ;;  %v282_v32 = vld [vmem:[%s951_s10 + $0x38] sm:$0xff]  ;;  %v283_v33 = vld [vmem:[%s951_s10 + $0x40] sm:$0xff] }
  0x12   : > { %v284_v34 = vld [vmem:[%s951_s10 + $0x48] sm:$0xff]  ;;  %v285_v35 = vld [vmem:[%s951_s10 + $0x50] sm:$0xff]  ;;  %v286_v40 = vld [vmem:[%s951_s10 + $0x58] sm:$0xff] }
  0x13   : > { %v266_v13 = vsub.f32 %v264_v11, %v265_v12  ;;  %v287_v41 = vld [vmem:[%s951_s10 + $0x60] sm:$0xff]  ;;  %v288_v42 = vld [vmem:[%s951_s10 + $0x68] sm:$0xff] }
  0x14   : > { %v990_v51 = vld [vmem:[%s1127_s5] ss:$0 sm:$0xff] }
  0x15   : > { %v267_v14 = vmax.f32 %v266_v13, 0.0 }
  0x17   : > { %v268_v15 = vadd.f32 1e-05, %v267_v14 }
  0x19   : > { %880 = vrsqrt.f32 %v268_v15 }
  0x26   : > { %v881_v20 = vpop.eup %880 }
  0x27   : > { %v271_v21 = vmul.f32 %v881_v20, %v270_v18 }
  0x29   : > { %v273_v28 = vmul.f32 %v271_v21, %v258_v10  ;;  %v964_v29 = vrot.slane %v271_v21, %v309_v19 }
  0x2b   : > { %v274_v36 = vsub.f32 %v272_v22, %v273_v28  ;;  %v311_v37 = vmul.f32 %v964_v29, %v275_v23  ;;  %v312_v38 = vmul.f32 %v964_v29, %v276_v24  ;;  %v313_v39 = vmul.f32 %v964_v29, %v277_v25 }
  0x2c   : > { %v314_v43 = vmul.f32 %v964_v29, %v278_v26  ;;  %v315_v44 = vmul.f32 %v964_v29, %v279_v27  ;;  %v316_v45 = vmul.f32 %v964_v29, %v280_v30  ;;  %v317_v46 = vmul.f32 %v964_v29, %v281_v31  ;;  %v289_v26 = vld [vmem:[%s951_s10 + $0x70] sm:$0xff] }
  0x2d   : > { %v982_v47 = vrot.slane %v274_v36, %v309_v19  ;;  %v318_v48 = vmul.f32 %v964_v29, %v282_v32  ;;  %v319_v49 = vmul.f32 %v964_v29, %v283_v33  ;;  %v320_v50 = vmul.f32 %v964_v29, %v284_v34  ;;  %v290_v34 = vld [vmem:[%s951_s10 + $0x78] sm:$0xff] }
  0x2e   : > { %v321_v52 = vmul.f32 %v964_v29, %v285_v35  ;;  %v322_v53 = vmul.f32 %v964_v29, %v286_v40  ;;  %v323_v54 = vmul.f32 %v964_v29, %v287_v41  ;;  %v324_v55 = vmul.f32 %v964_v29, %v288_v42  ;;  %v291_v35 = vld [vmem:[%s951_s10 + $0x80] sm:$0xff]  ;;  %v292_v40 = vld [vmem:[%s951_s10 + $0x88] sm:$0xff]  ;;  %v293_v41 = vld [vmem:[%s951_s10 + $0x90] sm:$0xff] }
  0x2f   : > { %v349_v56 = vadd.f32 %v982_v47, %v311_v37  ;;  %v350_v57 = vadd.f32 %v982_v47, %v312_v38  ;;  %v351_v58 = vadd.f32 %v982_v47, %v313_v39  ;;  %v352_v59 = vadd.f32 %v982_v47, %v314_v43  ;;  %v294_v42 = vld [vmem:[%s951_s10 + $0x98] sm:$0xff] }
  0x30   : > { %v353_v60 = vadd.f32 %v982_v47, %v315_v44  ;;  %v354_v61 = vadd.f32 %v982_v47, %v316_v45  ;;  %v355_v62 = vadd.f32 %v982_v47, %v317_v46  ;;  %v356_v63 = vadd.f32 %v982_v47, %v318_v48 }
  0x31   : > { %vm381_vm1 = vcmp.ge.f32.partialorder %v349_v56, 0.0  ;;  %vm382_vm2 = vcmp.ge.f32.partialorder %v350_v57, 0.0  ;;  %v420_v0 = vmul.f32 %v990_v51, %v349_v56  ;;  %v421_v1 = vmul.f32 %v990_v51, %v350_v57 }
  0x32   : > { %vm383_vm3 = vcmp.ge.f32.partialorder %v351_v58, 0.0  ;;  %vm384_vm4 = vcmp.ge.f32.partialorder %v352_v59, 0.0  ;;  %v422_v2 = vmul.f32 %v990_v51, %v351_v58  ;;  %v423_v3 = vmul.f32 %v990_v51, %v352_v59 }
  0x33   : > { %v452_v4 = vsel %vm381_vm1, %v349_v56, %v420_v0  ;;  %v453_v5 = vsel %vm382_vm2, %v350_v57, %v421_v1  ;;  %vm385_vm5 = vcmp.ge.f32.partialorder %v353_v60, 0.0  ;;  %vm386_vm6 = vcmp.ge.f32.partialorder %v354_v61, 0.0 }
  0x34   : > { %v780_v6 = vpack.c.bf16 %v453_v5, %v452_v4  ;;  %v454_v7 = vsel %vm383_vm3, %v351_v58, %v422_v2  ;;  %v455_v8 = vsel %vm384_vm4, %v352_v59, %v423_v3  ;;  %v424_v9 = vmul.f32 %v990_v51, %v353_v60  ;;  %v295_v3 = vld [vmem:[%s951_s10 + $0xa0] sm:$0xff]  ;;  %v296_v4 = vld [vmem:[%s951_s10 + $0xa8] sm:$0xff] }
  0x35   : > { %v785_v10 = vpack.c.bf16 %v455_v8, %v454_v7  ;;  %v425_v11 = vmul.f32 %v990_v51, %v354_v61  ;;  %vm387_vm7 = vcmp.ge.f32.partialorder %v355_v62, 0.0  ;;  %vm388_vm8 = vcmp.ge.f32.partialorder %v356_v63, 0.0  ;;  %v297_v7 = vld [vmem:[%s951_s10 + $0xb0] sm:$0xff]  ;;  %v298_v8 = vld [vmem:[%s951_s10 + $0xb8] sm:$0xff] }
  0x36   : > { %781 = vst [vmem:[%s1012_s20] sm:$0xff] %v780_v6   ;;  %v456_v12 = vsel %vm385_vm5, %v353_v60, %v424_v9  ;;  %v426_v13 = vmul.f32 %v990_v51, %v355_v62  ;;  %v427_v14 = vmul.f32 %v990_v51, %v356_v63  ;;  %v357_v15 = vadd.f32 %v982_v47, %v319_v49  ;;  %v299_v9 = vld [vmem:[%s951_s10 + $0xc0] sm:$0xff] }
  0x37   : > { %857 = vst [vmem:[%s1012_s20 + $0x8] sm:$0xff] %v785_v10   ;;  %v457_v16 = vsel %vm386_vm6, %v354_v61, %v425_v11  ;;  %v358_v17 = vadd.f32 %v982_v47, %v320_v50  ;;  %v359_v18 = vadd.f32 %v982_v47, %v321_v52  ;;  %v360_v19 = vadd.f32 %v982_v47, %v322_v53 }
  0x38   : > { %v790_v20 = vpack.c.bf16 %v457_v16, %v456_v12  ;;  %v458_v21 = vsel %vm387_vm7, %v355_v62, %v426_v13  ;;  %v459_v22 = vsel %vm388_vm8, %v356_v63, %v427_v14  ;;  %vm389_vm9 = vcmp.ge.f32.partialorder %v357_v15, 0.0  ;;  %v300_v14 = vld [vmem:[%s951_s10 + $0xc8] sm:$0xff] }
  0x39   : > { %v795_v23 = vpack.c.bf16 %v459_v22, %v458_v21  ;;  %vm390_vm10 = vcmp.ge.f32.partialorder %v358_v17, 0.0  ;;  %v428_v24 = vmul.f32 %v990_v51, %v357_v15  ;;  %v429_v25 = vmul.f32 %v990_v51, %v358_v17 }
  0x3a   : > { %858 = vst [vmem:[%s1012_s20 + $0x10] sm:$0xff] %v790_v20   ;;  %vm391_vm11 = vcmp.ge.f32.partialorder %v359_v18, 0.0  ;;  %vm392_vm12 = vcmp.ge.f32.partialorder %v360_v19, 0.0  ;;  %v430_v27 = vmul.f32 %v990_v51, %v359_v18  ;;  %v431_v28 = vmul.f32 %v990_v51, %v360_v19 }
  0x3b   : > { %859 = vst [vmem:[%s1012_s20 + $0x18] sm:$0xff] %v795_v23   ;;  %v460_v30 = vsel %vm389_vm9, %v357_v15, %v428_v24  ;;  %v461_v31 = vsel %vm390_vm10, %v358_v17, %v429_v25  ;;  %v361_v32 = vadd.f32 %v982_v47, %v323_v54  ;;  %v362_v33 = vadd.f32 %v982_v47, %v324_v55 }
  0x3c   : > { %v800_v36 = vpack.c.bf16 %v461_v31, %v460_v30  ;;  %v462_v37 = vsel %vm391_vm11, %v359_v18, %v430_v27  ;;  %v463_v38 = vsel %vm392_vm12, %v360_v19, %v431_v28  ;;  %v325_v39 = vmul.f32 %v964_v29, %v289_v26  ;;  %v301_v19 = vld [vmem:[%s951_s10 + $0xd0] sm:$0xff] }
  0x3d   : > { %v805_v43 = vpack.c.bf16 %v463_v38, %v462_v37  ;;  %vm393_vm13 = vcmp.ge.f32.partialorder %v361_v32, 0.0  ;;  %vm394_vm14 = vcmp.ge.f32.partialorder %v362_v33, 0.0  ;;  %v432_v44 = vmul.f32 %v990_v51, %v361_v32  ;;  %v302_v37 = vld [vmem:[%s951_s10 + $0xd8] sm:$0xff] }
  0x3e   : > { %860 = vst [vmem:[%s1012_s20 + $0x20] sm:$0xff] %v800_v36   ;;  %v433_v45 = vmul.f32 %v990_v51, %v362_v33  ;;  %v326_v46 = vmul.f32 %v964_v29, %v290_v34  ;;  %v363_v48 = vadd.f32 %v982_v47, %v325_v39  ;;  %v327_v49 = vmul.f32 %v964_v29, %v291_v35 }
  0x3f   : > { %861 = vst [vmem:[%s1012_s20 + $0x28] sm:$0xff] %v805_v43   ;;  %v464_v50 = vsel %vm393_vm13, %v361_v32, %v432_v44  ;;  %v328_v52 = vmul.f32 %v964_v29, %v292_v40  ;;  %v329_v53 = vmul.f32 %v964_v29, %v293_v41  ;;  %v330_v54 = vmul.f32 %v964_v29, %v294_v42  ;;  %v303_v41 = vld [vmem:[%s951_s10 + $0xe0] sm:$0xff]  ;;  %v304_v42 = vld [vmem:[%s951_s10 + $0xe8] sm:$0xff] }
  0x40   : > { %v465_v55 = vsel %vm394_vm14, %v362_v33, %v433_v45  ;;  %v364_v56 = vadd.f32 %v982_v47, %v326_v46  ;;  %vm395_vm15 = vcmp.ge.f32.partialorder %v363_v48, 0.0  ;;  %v434_v57 = vmul.f32 %v990_v51, %v363_v48 }
  0x41   : > { %v810_v58 = vpack.c.bf16 %v465_v55, %v464_v50  ;;  %v365_v59 = vadd.f32 %v982_v47, %v327_v49  ;;  %v366_v60 = vadd.f32 %v982_v47, %v328_v52  ;;  %v367_v61 = vadd.f32 %v982_v47, %v329_v53  ;;  %v306_v49 = vld [vmem:[%s951_s10 + $0xf8] sm:$0xff] }
  0x42   : > { %vm396_vm0 = vcmp.ge.f32.partialorder %v364_v56, 0.0  ;;  %v435_v62 = vmul.f32 %v990_v51, %v364_v56  ;;  %v466_v63 = vsel %vm395_vm15, %v363_v48, %v434_v57  ;;  %v368_v0 = vadd.f32 %v982_v47, %v330_v54  ;;  %v305_v48 = vld [vmem:[%s951_s10 + $0xf0] sm:$0xff] }
  0x43   : > { %862 = vst [vmem:[%s1012_s20 + $0x30] sm:$0xff] %v810_v58   ;;  %vm397_vm1 = vcmp.ge.f32.partialorder %v365_v59, 0.0  ;;  %vm398_vm2 = vcmp.ge.f32.partialorder %v366_v60, 0.0  ;;  %v436_v1 = vmul.f32 %v990_v51, %v365_v59  ;;  %v437_v2 = vmul.f32 %v990_v51, %v366_v60 }
  0x44   : > { %v467_v5 = vsel %vm396_vm0, %v364_v56, %v435_v62  ;;  %vm399_vm3 = vcmp.ge.f32.partialorder %v367_v61, 0.0  ;;  %vm400_vm4 = vcmp.ge.f32.partialorder %v368_v0, 0.0  ;;  %v438_v6 = vmul.f32 %v990_v51, %v367_v61 }
  0x45   : > { %v815_v10 = vpack.c.bf16 %v467_v5, %v466_v63  ;;  %v468_v11 = vsel %vm397_vm1, %v365_v59, %v436_v1  ;;  %v469_v12 = vsel %vm398_vm2, %v366_v60, %v437_v2  ;;  %v439_v13 = vmul.f32 %v990_v51, %v368_v0 }
  0x46   : > { %v820_v15 = vpack.c.bf16 %v469_v12, %v468_v11  ;;  %v470_v16 = vsel %vm399_vm3, %v367_v61, %v438_v6  ;;  %v331_v17 = vmul.f32 %v964_v29, %v295_v3  ;;  %v332_v18 = vmul.f32 %v964_v29, %v296_v4 }
  0x47   : > { %863 = vst [vmem:[%s1012_s20 + $0x38] sm:$0xff] %v815_v10   ;;  %v471_v20 = vsel %vm400_vm4, %v368_v0, %v439_v13  ;;  %v333_v21 = vmul.f32 %v964_v29, %v297_v7  ;;  %v334_v22 = vmul.f32 %v964_v29, %v298_v8  ;;  %v335_v23 = vmul.f32 %v964_v29, %v299_v9 }
  0x48   : > { %864 = vst [vmem:[%s1012_s20 + $0x40] sm:$0xff] %v820_v15   ;;  %v825_v24 = vpack.c.bf16 %v471_v20, %v470_v16  ;;  %v369_v25 = vadd.f32 %v982_v47, %v331_v17  ;;  %v370_v26 = vadd.f32 %v982_v47, %v332_v18  ;;  %v336_v27 = vmul.f32 %v964_v29, %v300_v14 }
  0x49   : > { %v371_v28 = vadd.f32 %v982_v47, %v333_v21  ;;  %v372_v30 = vadd.f32 %v982_v47, %v334_v22  ;;  %v373_v31 = vadd.f32 %v982_v47, %v335_v23  ;;  %v337_v32 = vmul.f32 %v964_v29, %v301_v19 }
  0x4a   : > { %865 = vst [vmem:[%s1012_s20 + $0x48] sm:$0xff] %v825_v24   ;;  %vm401_vm5 = vcmp.ge.f32.partialorder %v369_v25, 0.0  ;;  %vm402_vm6 = vcmp.ge.f32.partialorder %v370_v26, 0.0  ;;  %v440_v33 = vmul.f32 %v990_v51, %v369_v25  ;;  %v441_v34 = vmul.f32 %v990_v51, %v370_v26 }
  0x4b   : > { %vm403_vm7 = vcmp.ge.f32.partialorder %v371_v28, 0.0  ;;  %vm404_vm8 = vcmp.ge.f32.partialorder %v372_v30, 0.0  ;;  %v442_v35 = vmul.f32 %v990_v51, %v371_v28  ;;  %v443_v36 = vmul.f32 %v990_v51, %v372_v30 }
  0x4c   : > { %v472_v38 = vsel %vm401_vm5, %v369_v25, %v440_v33  ;;  %v473_v39 = vsel %vm402_vm6, %v370_v26, %v441_v34  ;;  %v374_v40 = vadd.f32 %v982_v47, %v336_v27  ;;  %vm405_vm9 = vcmp.ge.f32.partialorder %v373_v31, 0.0 }
  0x4d   : > { %v830_v43 = vpack.c.bf16 %v473_v39, %v472_v38  ;;  %v474_v44 = vsel %vm403_vm7, %v371_v28, %v442_v35  ;;  %v475_v45 = vsel %vm404_vm8, %v372_v30, %v443_v36  ;;  %v444_v46 = vmul.f32 %v990_v51, %v373_v31 }
  0x4e   : > { %v835_v50 = vpack.c.bf16 %v475_v45, %v474_v44  ;;  %vm406_vm10 = vcmp.ge.f32.partialorder %v374_v40, 0.0  ;;  %v445_v52 = vmul.f32 %v990_v51, %v374_v40  ;;  %v338_v53 = vmul.f32 %v964_v29, %v302_v37 }
  0x4f   : > { %866 = vst [vmem:[%s1012_s20 + $0x50] sm:$0xff] %v830_v43   ;;  %v476_v54 = vsel %vm405_vm9, %v373_v31, %v444_v46  ;;  %v375_v55 = vadd.f32 %v982_v47, %v337_v32  ;;  %v339_v56 = vmul.f32 %v964_v29, %v303_v41  ;;  %v340_v57 = vmul.f32 %v964_v29, %v304_v42 }
  0x50   : > { %867 = vst [vmem:[%s1012_s20 + $0x58] sm:$0xff] %v835_v50   ;;  %v477_v58 = vsel %vm406_vm10, %v374_v40, %v445_v52  ;;  %v376_v59 = vadd.f32 %v982_v47, %v338_v53  ;;  %v341_v60 = vmul.f32 %v964_v29, %v305_v48  ;;  %v342_v61 = vmul.f32 %v964_v29, %v306_v49 }
  0x51   : > { %v840_v62 = vpack.c.bf16 %v477_v58, %v476_v54  ;;  %vm407_vm11 = vcmp.ge.f32.partialorder %v375_v55, 0.0  ;;  %v446_v63 = vmul.f32 %v990_v51, %v375_v55  ;;  %v377_v0 = vadd.f32 %v982_v47, %v339_v56 }
  0x52   : > { %vm408_vm12 = vcmp.ge.f32.partialorder %v376_v59, 0.0  ;;  %v447_v1 = vmul.f32 %v990_v51, %v376_v59  ;;  %v378_v2 = vadd.f32 %v982_v47, %v340_v57  ;;  %v379_v3 = vadd.f32 %v982_v47, %v341_v60 }
  0x53   : > { %868 = vst [vmem:[%s1012_s20 + $0x60] sm:$0xff] %v840_v62   ;;  %v478_v4 = vsel %vm407_vm11, %v375_v55, %v446_v63  ;;  %vm409_vm13 = vcmp.ge.f32.partialorder %v377_v0, 0.0  ;;  %v448_v5 = vmul.f32 %v990_v51, %v377_v0  ;;  %v380_v29 = vadd.f32 %v982_v47, %v342_v61 }
  0x54   : > { %v479_v6 = vsel %vm408_vm12, %v376_v59, %v447_v1  ;;  %vm410_vm14 = vcmp.ge.f32.partialorder %v378_v2, 0.0  ;;  %v449_v7 = vmul.f32 %v990_v51, %v378_v2  ;;  %vm411_vm15 = vcmp.ge.f32.partialorder %v379_v3, 0.0 }
  0x55   : > { %v845_v8 = vpack.c.bf16 %v479_v6, %v478_v4  ;;  %v480_v9 = vsel %vm409_vm13, %v377_v0, %v448_v5  ;;  %vm412_vm0 = vcmp.ge.f32.partialorder %v380_v29, 0.0  ;;  %v450_v10 = vmul.f32 %v990_v51, %v379_v3 }
  0x56   : > { %v481_v11 = vsel %vm410_vm14, %v378_v2, %v449_v7  ;;  %v451_v12 = vmul.f32 %v990_v51, %v380_v29 }
  0x57   : > { %869 = vst [vmem:[%s1012_s20 + $0x68] sm:$0xff] %v845_v8   ;;  %v850_v13 = vpack.c.bf16 %v481_v11, %v480_v9  ;;  %v482_v14 = vsel %vm411_vm15, %v379_v3, %v450_v10 }
  0x58   : > { %v483_v15 = vsel %vm412_vm0, %v380_v29, %v451_v12 }
  0x59   : > { %870 = vst [vmem:[%s1012_s20 + $0x70] sm:$0xff] %v850_v13   ;;  %v855_v47 = vpack.c.bf16 %v483_v15, %v482_v14 }
  0x5b   : > { %871 = vst [vmem:[%s1012_s20 + $0x78] sm:$0xff] %v855_v47  }
  0x5c PF: > { %s16_s21 = sadd.s32 1, %s888_s21  }
  0x5d   : > { %p13_p4 = scmp.ge.s32.totalorder %s16_s21, 4  }
  0x5f   :  { %15 = sbr.rel (!%p13_p4) target bundleno = 1 (0x1), region = 74 }

// kernel: residual_block_forward.4
= control target key start
LH: loop header
LB: loop body
LE: loop exit
PB: predicated region body
PF: predicated region fallthrough
CT: control target
= control target key end

     0   :  { %s6700_s15 = smov 0   ;;  %s9393_s0 = inlined_call_operand.vmem [shape: bf16[2,18,18,128], index: 0, kind: input, shape index: {}]   ;;  %s9394_s1 = inlined_call_operand.vmem [shape: bf16[9,128,128], index: 1, kind: input, shape index: {}]   ;;  %s9395_s2 = inlined_call_operand.vmem [shape: f32[2,256,128], index: 2, kind: output, shape index: {0}]   ;;  %s9396_s3 = inlined_call_operand.vmem [shape: f32[2,1,128], index: 3, kind: output, shape index: {1}]   ;;  %s9397_s4 = inlined_call_operand.vmem [shape: f32[2,1,128], index: 4, kind: output, shape index: {2}]  }
   0x1 LB: > { %s5270_s16 = sadd.s32 4294967295, %s6673_s15   ;;  %p5274_p0 = scmp.ge.s32.totalorder %s6673_s15, 1  ;;  %s6673_s15 = sphi %s6700_s15, %s15_s15  }
   0x2   : > { %p167_p1 = scmp.lt.s32.totalorder %s6673_s15, 3 }
   0x4   : > { %p168_p2 = pnand %p5274_p0, %p167_p1 }
   0x6   : > { %171 = sbr.rel (%p168_p2) target bundleno = 573 (0x23d), region = 28 }
   0xb   : > { %v6538_v0 = vld [vmem:[%s9394_s1 + $0x78] sm:$0xff]   ;;  %p199_p3 = scmp.lt.s32.totalorder %s5270_s16, 1  ;;  %v6539_v1 = vld [vmem:[%s9394_s1 + $0x70] sm:$0xff]   ;;  %v6540_v2 = vld [vmem:[%s9394_s1 + $0x68] sm:$0xff]   ;;  %vm280_vm0 = vsmask.f32 3328 }
   0xc   : > { %6081 = vmatprep.subr.bf16.mxu0 %v6538_v0  ;;  %6513 = vmatprep.subr.bf16.mxu1 %v6538_v0  ;;  %v6541_v3 = vld [vmem:[%s9394_s1 + $0x60] sm:$0xff]   ;;  %vm281_vm1 = vsmask.f32 7440  ;;  %v6542_v17 = vld [vmem:[%s9394_s1 + $0x58] sm:$0xff]   ;;  %v6543_v33 = vld [vmem:[%s9394_s1 + $0x50] sm:$0xff]   ;;  %vm1310_vm3 = vcmask 1042432  }
   0xd   : > { %s9644_s16 = smov (!%p199_p3, %s5270_s16), 1  ;;  %6082 = vmatpush3.bf16.msra.mxu0 %v6538_v0  ;;  %6521 = vmatpush3.bf16.msra.mxu1 %v6538_v0  ;;  %vm6754_vm2 = vmor %vm280_vm0, %vm281_vm1  ;;  %v6544_v58 = vld [vmem:[%s9394_s1 + $0x48] sm:$0xff]   ;;  %vm1311_vm4 = vcmask 1046532  }
   0xe   : > { %6083 = vmatprep.subr.bf16.mxu0 %v6539_v1  ;;  %6514 = vmatprep.subr.bf16.mxu1 %v6539_v1  ;;  %s6529_s23 = smul.u32 216, %s9644_s16  ;;  %vm7065_vm5 = vmor %vm1310_vm3, %vm1311_vm4  ;;  %s211_s6 = scalar_lea.vmem %s9396_s3, %s9644_s16 }
   0xf   : > { %s214_s9 = scalar_lea.vmem %s9397_s4, %s9644_s16 }
  0x10   : > { %s6723_s26 = scalar_lea.vmem %s9393_s0, %s6529_s23 }
  0x11   : > { %6084 = vmatpush3.bf16.msra.mxu0 %v6539_v1  ;;  %6522 = vmatpush3.bf16.msra.mxu1 %v6539_v1  ;;  %v6729_v4 = vld [vmem:[%s6723_s26] sm:$0xf]  ;;  %v6732_v5 = vld [vmem:[%s6723_s26 + $0x4] sm:$0xf]  ;;  %v6735_v6 = vld [vmem:[%s6723_s26 + $0x8] sm:$0x1] }
  0x12   : > { %6085 = vmatprep.subr.bf16.mxu0 %v6540_v2  ;;  %6515 = vmatprep.subr.bf16.mxu1 %v6540_v2  ;;  %v284_v7 = vshrl.u32 %v6729_v4, 16  ;;  %v287_v8 = vshll.u32 %v6729_v4, 16  ;;  %v293_v9 = vshll.u32 %v6732_v5, 16  ;;  %v297_v10 = vshrl.u32 %v6732_v5, 16  ;;  %v232_v12 = vld [vmem:[%s6723_s26 + $0x60] sm:$0xf] }
  0x13   : > { %v303_v11 = vshll.u32 %v6735_v6, 16  ;;  %v233_v15 = vld [vmem:[%s6723_s26 + $0x64] sm:$0xf]  ;;  %v272_v16 = vld [vmem:[%s6723_s26 + $0x68] sm:$0x1]  ;;  %v476_v21 = vshrl.u32 %v232_v12, 16 }
  0x14   : > { %v286_v13 = vrot.slane %v284_v7, 4  ;;  %v289_v14 = vrot.slane %v287_v8, 5  ;;  %v295_v18 = vrot.slane %v293_v9, 5  ;;  %v299_v19 = vrot.slane %v297_v10, 4  ;;  %v6750_v26 = vld [vmem:[%s6723_s26 + $0xc] sm:$0xf] }
  0x15   : > { %6086 = vmatpush3.bf16.msra.mxu0 %v6540_v2  ;;  %6523 = vmatpush3.bf16.msra.mxu1 %v6540_v2  ;;  %v479_v23 = vshll.u32 %v232_v12, 16  ;;  %v485_v24 = vshll.u32 %v233_v15, 16  ;;  %v489_v25 = vshrl.u32 %v233_v15, 16  ;;  %v305_v29 = vrot.slane %v303_v11, 5  ;;  %v6759_v32 = vld [vmem:[%s6723_s26 + $0x10] sm:$0xf] }
  0x16   : > { %6087 = vmatprep.subr.bf16.mxu0 %v6541_v3  ;;  %6516 = vmatprep.subr.bf16.mxu1 %v6541_v3  ;;  %v290_v22 = vor.u32 %v289_v14, %v286_v13  ;;  %v300_v28 = vor.u32 %v299_v19, %v295_v18  ;;  %v478_v30 = vrot.slane %v476_v21, 4  ;;  %v495_v31 = vshll.u32 %v272_v16, 16  ;;  %v6765_v40 = vld [vmem:[%s6723_s26 + $0x14] sm:$0x1]  ;;  %v234_v47 = vld [vmem:[%s6723_s26 + $0x6c] sm:$0xf] }
  0x17   : > { %v481_v35 = vrot.slane %v479_v23, 5  ;;  %v487_v36 = vrot.slane %v485_v24, 5  ;;  %v491_v37 = vrot.slane %v489_v25, 4  ;;  %v308_v41 = vshrl.u32 %v6750_v26, 16  ;;  %v235_v52 = vld [vmem:[%s6723_s26 + $0x70] sm:$0xf] }
  0x18   : > { %v291_v34 = vrot.slane %v290_v22, 4  ;;  %v301_v38 = vrot.slane %v300_v28, 4  ;;  %v497_v39 = vrot.slane %v495_v31, 5  ;;  %v311_v42 = vshll.u32 %v6750_v26, 16  ;;  %v273_v57 = vld [vmem:[%s6723_s26 + $0x74] sm:$0x1] }
  0x19   : > { %6088 = vmatpush3.bf16.msra.mxu0 %v6541_v3  ;;  %6524 = vmatpush3.bf16.msra.mxu1 %v6541_v3  ;;  %v482_v44 = vor.u32 %v481_v35, %v478_v30  ;;  %v492_v45 = vor.u32 %v491_v37, %v487_v36  ;;  %v317_v46 = vshll.u32 %v6759_v32, 16  ;;  %v310_v49 = vrot.slane %v308_v41, 4  ;;  %v6788_v14 = vld [vmem:[%s6723_s26 + $0x18] sm:$0xf]  ;;  %v6545_v15 = vld [vmem:[%s9394_s1 + $0x40] sm:$0xff]  }
  0x1a   : > { %6089 = vmatprep.subr.bf16.mxu0 %v6542_v17  ;;  %6517 = vmatprep.subr.bf16.mxu1 %v6542_v17  ;;  %v296_v43 = vsel %vm6754_vm2, %v291_v34, %v295_v18  ;;  %v306_v48 = vsel %vm6754_vm2, %v301_v38, %v305_v29  ;;  %v313_v50 = vrot.slane %v311_v42, 5  ;;  %v321_v51 = vshrl.u32 %v6759_v32, 16  ;;  %v6796_v19 = vld [vmem:[%s6723_s26 + $0x1c] sm:$0xf]  ;;  %v6801_v25 = vld [vmem:[%s6723_s26 + $0x20] sm:$0x1] }
  0x1b   : > { %v5294_v53 = vcombine.low %v296_v43, %v306_v48  ;;  %v483_v54 = vrot.slane %v482_v44, 4  ;;  %v493_v55 = vrot.slane %v492_v45, 4  ;;  %v319_v56 = vrot.slane %v317_v46, 5  ;;  %v236_v34 = vld [vmem:[%s6723_s26 + $0x78] sm:$0xf] }
  0x1c   : > { %v314_v59 = vor.u32 %v313_v50, %v310_v49  ;;  %v323_v60 = vrot.slane %v321_v51, 4  ;;  %v327_v61 = vshll.u32 %v6765_v40, 16  ;;  %v500_v1 = vshrl.u32 %v234_v47, 16  ;;  %v6546_v41 = vld [vmem:[%s9394_s1 + $0x38] sm:$0xff]   ;;  %v274_v49 = vld [vmem:[%s6723_s26 + $0x80] sm:$0x1] }
  0x1d   : > { %6090 = vmatpush3.bf16.msra.mxu0 %v6542_v17  ;;  %6525 = vmatpush3.bf16.msra.mxu1 %v6542_v17  ;;  %v488_v63 = vsel %vm6754_vm2, %v483_v54, %v487_v36  ;;  %v498_v0 = vsel %vm6754_vm2, %v493_v55, %v497_v39  ;;  %v503_v2 = vshll.u32 %v234_v47, 16  ;;  %v509_v12 = vshll.u32 %v235_v52, 16  ;;  %v6810_v39 = vld [vmem:[%s6723_s26 + $0x7c] sm:$0xf] }
  0x1e   : > { %6091 = vmatprep.subr.bf16.mxu0 %v6543_v33  ;;  %6518 = vmatprep.subr.bf16.mxu1 %v6543_v33  ;;  %v5302_v3 = vcombine.low %v488_v63, %v498_v0  ;;  %v315_v7 = vrot.slane %v314_v59, 4  ;;  %v324_v8 = vor.u32 %v323_v60, %v319_v56  ;;  %v329_v9 = vrot.slane %v327_v61, 5  ;;  %v6547_v42 = vld [vmem:[%s9394_s1 + $0xb8] sm:$0xff]   ;;  %v6549_v59 = vld [vmem:[%s9394_s1 + $0xb0] sm:$0xff]   ;;  %v6837_v0 = vld [vmem:[%s6723_s26 + $0x28] sm:$0xf] }
  0x1f   : > { %6097 = vmatprep.mubr.bf16.mxu0 %v5294_v53  ;;  %v502_v10 = vrot.slane %v500_v1, 4  ;;  %v505_v11 = vrot.slane %v503_v2, 5  ;;  %v513_v13 = vshrl.u32 %v235_v52, 16  ;;  %v519_v18 = vshll.u32 %v273_v57, 16  ;;  %v6548_v52 = vld [vmem:[%s9394_s1 + $0x30] sm:$0xff]  }
  0x20   : > { %v320_v16 = vsel %vm6754_vm2, %v315_v7, %v319_v56  ;;  %v325_v17 = vrot.slane %v324_v8, 4  ;;  %6113 = vmatprep.mubr.bf16.mxu1 %v5302_v3  ;;  %v511_v23 = vrot.slane %v509_v12, 5  ;;  %v332_v28 = vshrl.u32 %v6788_v14, 16  ;;  %v6828_v57 = vld [vmem:[%s6723_s26 + $0x24] sm:$0xf] }
  0x21   : > { %6092 = vmatpush3.bf16.msra.mxu0 %v6543_v33  ;;  %6526 = vmatpush3.bf16.msra.mxu1 %v6543_v33  ;;  %v506_v22 = vor.u32 %v505_v11, %v502_v10  ;;  %v515_v24 = vrot.slane %v513_v13, 4  ;;  %v521_v30 = vrot.slane %v519_v18, 5  ;;  %v335_v31 = vshll.u32 %v6788_v14, 16  ;;  %v6840_v8 = vld [vmem:[%s6723_s26 + $0x2c] sm:$0x1] }
  0x22   : > { %6093 = vmatprep.subr.bf16.mxu0 %v6544_v58  ;;  %6519 = vmatprep.subr.bf16.mxu1 %v6544_v58  ;;  %v330_v29 = vsel %vm6754_vm2, %v325_v17, %v329_v9  ;;  %v341_v33 = vshll.u32 %v6796_v19, 16  ;;  %v334_v38 = vrot.slane %v332_v28, 4  ;;  %v345_v45 = vshrl.u32 %v6796_v19, 16  ;;  %v6844_v13 = vld [vmem:[%s6723_s26 + $0x84] sm:$0xf] }
  0x23   : > { %v5295_v35 = vcombine.low %v320_v16, %v330_v29  ;;  %v507_v36 = vrot.slane %v506_v22, 4  ;;  %v516_v37 = vor.u32 %v515_v24, %v511_v23  ;;  %v337_v43 = vrot.slane %v335_v31, 5  ;;  %v6851_v22 = vld [vmem:[%s6723_s26 + $0x88] sm:$0xf] }
  0x24   : > { %v343_v44 = vrot.slane %v341_v33, 5  ;;  %v351_v46 = vshll.u32 %v6801_v25, 16  ;;  %v524_v50 = vshrl.u32 %v236_v34, 16  ;;  %v527_v51 = vshll.u32 %v236_v34, 16 }
  0x25   : > { %6094 = vmatpush3.bf16.msra.mxu0 %v6544_v58  ;;  %6527 = vmatpush3.bf16.msra.mxu1 %v6544_v58  ;;  %v512_v47 = vsel %vm6754_vm2, %v507_v36, %v511_v23  ;;  %v517_v48 = vrot.slane %v516_v37, 4  ;;  %v338_v53 = vor.u32 %v337_v43, %v334_v38  ;;  %v347_v54 = vrot.slane %v345_v45, 4  ;;  %v6860_v36 = vld [vmem:[%s6723_s26 + $0x8c] sm:$0x1] }
  0x26   : > { %6095 = vmatprep.subr.bf16.mxu0 %v6545_v15  ;;  %6520 = vmatprep.subr.bf16.mxu1 %v6545_v15  ;;  %v353_v55 = vrot.slane %v351_v46, 5  ;;  %v533_v56 = vshll.u32 %v6810_v39, 16  ;;  %v526_v60 = vrot.slane %v524_v50, 4  ;;  %v529_v61 = vrot.slane %v527_v51, 5  ;;  %v6551_v37 = vld [vmem:[%s9394_s1 + $0xa8] sm:$0xff]  }
  0x27   : > { %v522_v58 = vsel %vm6754_vm2, %v517_v48, %v521_v30  ;;  %v537_v63 = vshrl.u32 %v6810_v39, 16  ;;  %v339_v2 = vrot.slane %v338_v53, 4  ;;  %v348_v3 = vor.u32 %v347_v54, %v343_v44  ;;  %v6550_v30 = vld [vmem:[%s9394_s1 + $0x28] sm:$0xff]   ;;  %v6875_v53 = vld [vmem:[%s6723_s26 + $0x30] sm:$0xf] }
  0x28   : > { %v5303_v1 = vcombine.low %v512_v47, %v522_v58  ;;  %v535_v7 = vrot.slane %v533_v56, 5  ;;  %v530_v9 = vor.u32 %v529_v61, %v526_v60  ;;  %v543_v11 = vshll.u32 %v274_v49, 16  ;;  %v6884_v60 = vld [vmem:[%s6723_s26 + $0x34] sm:$0xf] }
  0x29   : > { %6096 = vmatpush3.bf16.msra.mxu0 %v6545_v15  ;;  %6528 = vmatpush3.bf16.msra.mxu1 %v6545_v15  ;;  %v539_v10 = vrot.slane %v537_v63, 4  ;;  %v356_v12 = vshrl.u32 %v6828_v57, 16  ;;  %v344_v15 = vsel %vm6754_vm2, %v339_v2, %v343_v44  ;;  %v349_v16 = vrot.slane %v348_v3, 4 }
  0x2a   : > { %6129 = vmatprep.subr.bf16.mxu1 %v6546_v41  ;;  %6177 = vmatprep.subr.bf16.mxu0 %v6547_v42  ;;  %v359_v17 = vshll.u32 %v6828_v57, 16  ;;  %v365_v18 = vshll.u32 %v6837_v0, 16  ;;  %v531_v23 = vrot.slane %v530_v9, 4  ;;  %v545_v28 = vrot.slane %v543_v11, 5 }
  0x2b   : > { %v540_v24 = vor.u32 %v539_v10, %v535_v7  ;;  %v358_v29 = vrot.slane %v356_v12, 4  ;;  %v354_v31 = vsel %vm6754_vm2, %v349_v16, %v353_v55  ;;  %v375_v43 = vshll.u32 %v6840_v8, 16  ;;  %v6892_v16 = vld [vmem:[%s6723_s26 + $0x38] sm:$0x1] }
  0x2c   : > { %6098 = vmatmul.mubr.bf16.vlgmr.msra.gmra.mxu0 %v5295_v35  ;;  %6114 = vmatmul.mubr.bf16.vlgmr.msra.gmra.mxu1 %v5303_v1  ;;  %v361_v33 = vrot.slane %v359_v17, 5  ;;  %v367_v34 = vrot.slane %v365_v18, 5  ;;  %v369_v35 = vshrl.u32 %v6837_v0, 16  ;;  %v5296_v38 = vcombine.low %v344_v15, %v354_v31  ;;  %v6896_v18 = vld [vmem:[%s6723_s26 + $0x90] sm:$0xf] }
  0x2d   : > { %6130 = vmatpush3.bf16.msra.mxu1 %v6546_v41  ;;  %6178 = vmatpush3.bf16.msra.mxu0 %v6547_v42  ;;  %v536_v41 = vsel %vm6754_vm2, %v531_v23, %v535_v7  ;;  %v541_v42 = vrot.slane %v540_v24, 4  ;;  %v548_v46 = vshrl.u32 %v6844_v13, 16  ;;  %v551_v47 = vshll.u32 %v6844_v13, 16  ;;  %v6902_v31 = vld [vmem:[%s6723_s26 + $0x94] sm:$0xf] }
  0x2e   : > { %6131 = vmatprep.subr.bf16.mxu1 %v6548_v52  ;;  %6179 = vmatprep.subr.bf16.mxu0 %v6549_v59  ;;  %v362_v44 = vor.u32 %v361_v33, %v358_v29  ;;  %v371_v45 = vrot.slane %v369_v35, 4  ;;  %v377_v49 = vrot.slane %v375_v43, 5  ;;  %v557_v50 = vshll.u32 %v6851_v22, 16 }
  0x2f   : > { %v546_v48 = vsel %vm6754_vm2, %v541_v42, %v545_v28  ;;  %v561_v51 = vshrl.u32 %v6851_v22, 16  ;;  %6101 = vmatprep.mubr.bf16.mxu0 %v5296_v38  ;;  %v550_v58 = vrot.slane %v548_v46, 4  ;;  %v553_v61 = vrot.slane %v551_v47, 5  ;;  %v6555_v38 = vld [vmem:[%s9394_s1 + $0x98] sm:$0xff]   ;;  %v6556_v46 = vld [vmem:[%s9394_s1 + $0x10] sm:$0xff]  }
  0x30   : > { %v5304_v54 = vcombine.low %v536_v41, %v546_v48  ;;  %v363_v55 = vrot.slane %v362_v44, 4  ;;  %v372_v56 = vor.u32 %v371_v45, %v367_v34  ;;  %v559_v63 = vrot.slane %v557_v50, 5  ;;  %v6912_v44 = vld [vmem:[%s6723_s26 + $0x98] sm:$0x1] }
  0x31   : > { %6132 = vmatpush3.bf16.msra.mxu1 %v6548_v52  ;;  %6180 = vmatpush3.bf16.msra.mxu0 %v6549_v59  ;;  %v6552_v52 = vld [vmem:[%s9394_s1 + $0x20] sm:$0xff]   ;;  %v563_v1 = vrot.slane %v561_v51, 4  ;;  %v567_v2 = vshll.u32 %v6860_v36, 16  ;;  %v380_v9 = vshrl.u32 %v6875_v53, 16  ;;  %v383_v10 = vshll.u32 %v6875_v53, 16 }
  0x32   : > { %6133 = vmatprep.subr.bf16.mxu1 %v6550_v30  ;;  %v6553_v59 = vld [vmem:[%s9394_s1 + $0xa0] sm:$0xff]   ;;  %6181 = vmatprep.subr.bf16.mxu0 %v6551_v37  ;;  %v368_v3 = vsel %vm6754_vm2, %v363_v55, %v367_v34  ;;  %v373_v7 = vrot.slane %v372_v56, 4  ;;  %v554_v11 = vor.u32 %v553_v61, %v550_v58  ;;  %v389_v17 = vshll.u32 %v6884_v60, 16  ;;  %v6925_v51 = vld [vmem:[%s6723_s26 + $0x3c] sm:$0xf]  ;;  %v6557_v55 = vld [vmem:[%s9394_s1 + $0x90] sm:$0xff]  }
  0x33   : > { %6117 = vmatprep.mubr.bf16.mxu1 %v5304_v54  ;;  %v564_v12 = vor.u32 %v563_v1, %v559_v63  ;;  %v569_v15 = vrot.slane %v567_v2, 5  ;;  %v382_v24 = vrot.slane %v380_v9, 4  ;;  %v385_v28 = vrot.slane %v383_v10, 5  ;;  %v6928_v54 = vld [vmem:[%s6723_s26 + $0x40] sm:$0xf] }
  0x34   : > { %v378_v23 = vsel %vm6754_vm2, %v373_v7, %v377_v49  ;;  %v393_v29 = vshrl.u32 %v6884_v60, 16  ;;  %v555_v34 = vrot.slane %v554_v11, 4  ;;  %v399_v43 = vshll.u32 %v6892_v16, 16  ;;  %v6935_v7 = vld [vmem:[%s6723_s26 + $0x44] sm:$0x1] }
  0x35   : > { %6134 = vmatpush3.bf16.msra.mxu1 %v6550_v30  ;;  %6182 = vmatpush3.bf16.msra.mxu0 %v6551_v37  ;;  %v6554_v30 = vld [vmem:[%s9394_s1 + $0x18] sm:$0xff]   ;;  %v5297_v33 = vcombine.low %v368_v3, %v378_v23  ;;  %v565_v35 = vrot.slane %v564_v12, 4  ;;  %v391_v37 = vrot.slane %v389_v17, 5  ;;  %v386_v41 = vor.u32 %v385_v28, %v382_v24  ;;  %v6947_v28 = vld [vmem:[%s6723_s26 + $0xa0] sm:$0xf] }
  0x36   : > { %6135 = vmatprep.subr.bf16.mxu1 %v6552_v52  ;;  %6183 = vmatprep.subr.bf16.mxu0 %v6553_v59  ;;  %v395_v42 = vrot.slane %v393_v29, 4  ;;  %v572_v45 = vshrl.u32 %v6896_v18, 16  ;;  %v560_v47 = vsel %vm6754_vm2, %v555_v34, %v559_v63  ;;  %v575_v49 = vshll.u32 %v6896_v18, 16  ;;  %v6938_v9 = vld [vmem:[%s6723_s26 + $0x9c] sm:$0xf]  ;;  %v6558_v29 = vld [vmem:[%s9394_s1 + $0x8] sm:$0xff]  }
  0x37   : > { %6102 = vmatmul.mubr.bf16.gmra.mxu0 %v5297_v33  ;;  %v570_v48 = vsel %vm6754_vm2, %v565_v35, %v569_v15  ;;  %v581_v50 = vshll.u32 %v6902_v31, 16  ;;  %v387_v58 = vrot.slane %v386_v41, 4  ;;  %v401_v63 = vrot.slane %v399_v43, 5  ;;  %v6559_v41 = vld [vmem:[%s9394_s1 + $0x88] sm:$0xff]  }
  0x38   : > { %v5305_v56 = vcombine.low %v560_v47, %v570_v48  ;;  %v396_v61 = vor.u32 %v395_v42, %v391_v37  ;;  %v577_v1 = vrot.slane %v575_v49, 5  ;;  %v585_v3 = vshrl.u32 %v6902_v31, 16 }
  0x39   : > { %6136 = vmatpush3.bf16.msra.mxu1 %v6552_v52  ;;  %6184 = vmatpush3.bf16.msra.mxu0 %v6553_v59  ;;  %v574_v52 = vrot.slane %v572_v45, 4  ;;  %v583_v2 = vrot.slane %v581_v50, 5  ;;  %v392_v10 = vsel %vm6754_vm2, %v387_v58, %v391_v37  ;;  %v591_v11 = vshll.u32 %v6912_v44, 16 }
  0x3a   : > { %6137 = vmatprep.subr.bf16.mxu1 %v6554_v30  ;;  %6185 = vmatprep.subr.bf16.mxu0 %v6555_v38  ;;  %v397_v59 = vrot.slane %v396_v61, 4  ;;  %v404_v12 = vshrl.u32 %v6925_v51, 16  ;;  %v587_v17 = vrot.slane %v585_v3, 4  ;;  %v407_v23 = vshll.u32 %v6925_v51, 16  ;;  %v6963_v61 = vld [vmem:[%s6723_s26 + $0xa4] sm:$0x1] }
  0x3b   : > { %6118 = vmatmul.mubr.bf16.gmra.mxu1 %v5305_v56  ;;  %v578_v15 = vor.u32 %v577_v1, %v574_v52  ;;  %v413_v24 = vshll.u32 %v6928_v54, 16  ;;  %v593_v34 = vrot.slane %v591_v11, 5  ;;  %v417_v37 = vshrl.u32 %v6928_v54, 16 }
  0x3c   : > { %v402_v33 = vsel %vm6754_vm2, %v397_v59, %v401_v63  ;;  %v406_v35 = vrot.slane %v404_v12, 4  ;;  %v588_v43 = vor.u32 %v587_v17, %v583_v2  ;;  %v409_v45 = vrot.slane %v407_v23, 5  ;;  %v6968_v59 = vld [vmem:[%s6723_s26 + $0x48] sm:$0xf]  ;;  %v6977_v17 = vld [vmem:[%s6723_s26 + $0x4c] sm:$0xf] }
  0x3d   : > { %6138 = vmatpush3.bf16.msra.mxu1 %v6554_v30  ;;  %6186 = vmatpush3.bf16.msra.mxu0 %v6555_v38  ;;  %v5298_v42 = vcombine.low %v392_v10, %v402_v33  ;;  %v579_v30 = vrot.slane %v578_v15, 4  ;;  %v415_v47 = vrot.slane %v413_v24, 5  ;;  %v419_v48 = vrot.slane %v417_v37, 4 }
  0x3e   : > { %6139 = vmatprep.subr.bf16.mxu1 %v6556_v46  ;;  %6187 = vmatprep.subr.bf16.mxu0 %v6557_v55  ;;  %v423_v49 = vshll.u32 %v6935_v7, 16  ;;  %v596_v50 = vshrl.u32 %v6938_v9, 16  ;;  %v589_v56 = vrot.slane %v588_v43, 4  ;;  %v410_v58 = vor.u32 %v409_v45, %v406_v35 }
  0x3f   : > { %6105 = vmatprep.mubr.bf16.mxu0 %v5298_v42  ;;  %v584_v38 = vsel %vm6754_vm2, %v579_v30, %v583_v2  ;;  %v599_v63 = vshll.u32 %v6938_v9, 16  ;;  %v420_v52 = vor.u32 %v419_v48, %v415_v47  ;;  %v605_v10 = vshll.u32 %v6947_v28, 16  ;;  %v6560_v2 = vld [vmem:[%s9394_s1] sm:$0xff]   ;;  %v6986_v30 = vld [vmem:[%s6723_s26 + $0x50] sm:$0x1] }
  0x40   : > { %v425_v1 = vrot.slane %v423_v49, 5  ;;  %v598_v3 = vrot.slane %v596_v50, 4  ;;  %v594_v11 = vsel %vm6754_vm2, %v589_v56, %v593_v34  ;;  %v411_v12 = vrot.slane %v410_v58, 4 }
  0x41   : > { %6140 = vmatpush3.bf16.msra.mxu1 %v6556_v46  ;;  %6188 = vmatpush3.bf16.msra.mxu0 %v6557_v55  ;;  %v601_v15 = vrot.slane %v599_v63, 5  ;;  %v609_v46 = vshrl.u32 %v6947_v28, 16  ;;  %v6561_v55 = vld [vmem:[%s9394_s1 + $0x80] sm:$0xff]   ;;  %v5306_v23 = vcombine.low %v584_v38, %v594_v11  ;;  %v421_v24 = vrot.slane %v420_v52, 4  ;;  %v6994_v38 = vld [vmem:[%s6723_s26 + $0xa8] sm:$0xf] }
  0x42   : > { %6141 = vmatprep.subr.bf16.mxu1 %v6558_v29  ;;  %6189 = vmatprep.subr.bf16.mxu0 %v6559_v41  ;;  %v607_v33 = vrot.slane %v605_v10, 5  ;;  %v615_v35 = vshll.u32 %v6963_v61, 16  ;;  %v416_v34 = vsel %vm6754_vm2, %v411_v12, %v415_v47  ;;  %v428_v43 = vshrl.u32 %v6968_v59, 16  ;;  %9424 = vst [vmem:[#allocation2_spill] sm:$0xff] %v6994_v38  ;;  %v6999_v47 = vld [vmem:[%s9394_s1 + $0xf8] sm:$0xff]  }
  0x43   : > { %v602_v37 = vor.u32 %v601_v15, %v598_v3  ;;  %v611_v42 = vrot.slane %v609_v46, 4  ;;  %6121 = vmatprep.mubr.bf16.mxu1 %v5306_v23  ;;  %v426_v45 = vsel %vm6754_vm2, %v421_v24, %v425_v1  ;;  %v431_v49 = vshll.u32 %v6968_v59, 16  ;;  %v7002_v52 = vld [vmem:[%s6723_s26 + $0xac] sm:$0xf]  ;;  %v7007_v1 = vld [vmem:[%s9394_s1 + $0x138] sm:$0xff]  }
  0x44   : > { %v617_v48 = vrot.slane %v615_v35, 5  ;;  %v437_v50 = vshll.u32 %v6977_v17, 16  ;;  %v430_v63 = vrot.slane %v428_v43, 4  ;;  %v441_v10 = vshrl.u32 %v6977_v17, 16  ;;  %v7012_v12 = vld [vmem:[%s6723_s26 + $0xb0] sm:$0x1] }
  0x45   : > { %6142 = vmatpush3.bf16.msra.mxu1 %v6558_v29  ;;  %6190 = vmatpush3.bf16.msra.mxu0 %v6559_v41  ;;  %v5299_v29 = vcombine.low %v416_v34, %v426_v45  ;;  %v603_v56 = vrot.slane %v602_v37, 4  ;;  %v612_v58 = vor.u32 %v611_v42, %v607_v33  ;;  %v433_v41 = vrot.slane %v431_v49, 5  ;;  %9425 = vst [vmem:[#allocation3_spill] sm:$0xff] %v7012_v12  ;;  %v7015_v15 = vld [vmem:[%s6723_s26 + $0x54] sm:$0xf] }
  0x46   : > { %6143 = vmatprep.subr.bf16.mxu1 %v6560_v2  ;;  %6191 = vmatprep.subr.bf16.mxu0 %v6561_v55  ;;  %v439_v3 = vrot.slane %v437_v50, 5  ;;  %v447_v11 = vshll.u32 %v6986_v30, 16  ;;  %v620_v24 = vshrl.u32 %v6994_v38, 16  ;;  %v623_v35 = vshll.u32 %v6994_v38, 16  ;;  %v7022_v34 = vld [vmem:[%s6723_s26 + $0x58] sm:$0xf] }
  0x47   : > { %6106 = vmatmul.mubr.bf16.gmra.mxu0 %v5299_v29  ;;  %v608_v46 = vsel %vm6754_vm2, %v603_v56, %v607_v33  ;;  %v613_v23 = vrot.slane %v612_v58, 4  ;;  %v434_v37 = vor.u32 %v433_v41, %v430_v63  ;;  %v443_v42 = vrot.slane %v441_v10, 4 }
  0x48   : > { %v449_v43 = vrot.slane %v447_v11, 5  ;;  %v629_v45 = vshll.u32 %v7002_v52, 16  ;;  %v622_v49 = vrot.slane %v620_v24, 4  ;;  %v625_v50 = vrot.slane %v623_v35, 5 }
  0x49   : > { %6144 = vmatpush3.bf16.msra.mxu1 %v6560_v2  ;;  %6192 = vmatpush3.bf16.msra.mxu0 %v6561_v55  ;;  %v618_v33 = vsel %vm6754_vm2, %v613_v23, %v617_v48  ;;  %v633_v29 = vshrl.u32 %v7002_v52, 16  ;;  %v435_v56 = vrot.slane %v434_v37, 4  ;;  %v444_v58 = vor.u32 %v443_v42, %v439_v3  ;;  %v7031_v55 = vld [vmem:[%s6723_s26 + $0x5c] sm:$0x1]  ;;  %v7036_v48 = vld [vmem:[%s6723_s26 + $0xb4] sm:$0xf] }
  0x4a   : > { %6225 = vmatprep.subr.bf16.mxu1 %v6999_v47  ;;  %6273 = vmatprep.subr.bf16.mxu0 %v7007_v1  ;;  %v5307_v2 = vcombine.low %v608_v46, %v618_v33  ;;  %v631_v63 = vrot.slane %v629_v45, 5  ;;  %v626_v41 = vor.u32 %v625_v50, %v622_v49  ;;  %v639_v11 = vshll.u32 %v7012_v12, 16  ;;  %9426 = vst [vmem:[#allocation4_spill] sm:$0xff] %v7036_v48  ;;  %v7043_v37 = vld [vmem:[%s6723_s26 + $0xb8] sm:$0xf] }
  0x4b   : > { %v635_v10 = vrot.slane %v633_v29, 4  ;;  %v452_v21 = vshrl.u32 %v7015_v15, 16  ;;  %v440_v23 = vsel %vm6754_vm2, %v435_v56, %v439_v3  ;;  %v445_v24 = vrot.slane %v444_v58, 4  ;;  %9427 = vst [vmem:[#allocation5_spill] sm:$0xff] %v7043_v37  ;;  %v7049_v3 = vld [vmem:[%s6723_s26 + $0xbc] sm:$0x1] }
  0x4c   : > { %6122 = vmatmul.mubr.bf16.gmra.mxu1 %v5307_v2  ;;  %v455_v46 = vshll.u32 %v7015_v15, 16  ;;  %v461_v35 = vshll.u32 %v7022_v34, 16  ;;  %v627_v42 = vrot.slane %v626_v41, 4  ;;  %v641_v33 = vrot.slane %v639_v11, 5  ;;  %9428 = vst [vmem:[#allocation6_spill] sm:$0xff] %v7049_v3 }
  0x4d   : > { %v636_v45 = vor.u32 %v635_v10, %v631_v63  ;;  %v454_v49 = vrot.slane %v452_v21, 4  ;;  %v450_v50 = vsel %vm6754_vm2, %v445_v24, %v449_v43  ;;  %v465_v62 = vshrl.u32 %v7022_v34, 16  ;;  %v1262_v10 = vld [vmem:[%s6723_s26] sm:$0xe] }
  0x4e   : > { %v457_v29 = vrot.slane %v455_v46, 5  ;;  %v463_v2 = vrot.slane %v461_v35, 5  ;;  %v5300_v56 = vcombine.low %v440_v23, %v450_v50  ;;  %v632_v58 = vsel %vm6754_vm2, %v627_v42, %v631_v63 }
  0x4f   : > { %v637_v20 = vrot.slane %v636_v45, 4  ;;  %v471_v41 = vshll.u32 %v7031_v55, 16  ;;  %v467_v21 = vrot.slane %v465_v62, 4  ;;  %v644_v12 = vshrl.u32 %v7036_v48, 16 }
  0x50   : > { %v458_v11 = vor.u32 %v457_v29, %v454_v49  ;;  %v647_v43 = vshll.u32 %v7036_v48, 16  ;;  %6109 = vmatprep.mubr.bf16.mxu0 %v5300_v56  ;;  %v653_v46 = vshll.u32 %v7043_v37, 16  ;;  %v657_v63 = vshrl.u32 %v7043_v37, 16  ;;  %v1263_v49 = vld [vmem:[%s6723_s26 + $0xc] sm:$0xe] }
  0x51   : > { %v642_v24 = vsel %vm6754_vm2, %v637_v20, %v641_v33  ;;  %v473_v23 = vrot.slane %v471_v41, 5  ;;  %v468_v45 = vor.u32 %v467_v21, %v463_v2  ;;  %v646_v50 = vrot.slane %v644_v12, 4  ;;  %v1264_v20 = vld [vmem:[%s6723_s26 + $0x18] sm:$0xe] }
  0x52   : > { %v5308_v35 = vcombine.low %v632_v58, %v642_v24  ;;  %v459_v42 = vrot.slane %v458_v11, 4  ;;  %v649_v62 = vrot.slane %v647_v43, 5  ;;  %v655_v29 = vrot.slane %v653_v46, 5 }
  0x53   : > { %v659_v38 = vrot.slane %v657_v63, 4  ;;  %v663_v48 = vshll.u32 %v7049_v3, 16  ;;  %v469_v58 = vrot.slane %v468_v45, 4  ;;  %v5342_v41 = vrot.slane %v1262_v10, 9 }
  0x54   : > { %6125 = vmatprep.mubr.bf16.mxu1 %v5308_v35  ;;  %v464_v33 = vsel %vm6754_vm2, %v459_v42, %v463_v2  ;;  %v1315_v12 = vrot.slane %v6732_v5, 5  ;;  %v650_v11 = vor.u32 %v649_v62, %v646_v50  ;;  %v5343_v24 = vrot.slane %v1263_v49, 9 }
  0x55   : > { %v660_v21 = vor.u32 %v659_v38, %v655_v29  ;;  %v665_v43 = vrot.slane %v663_v48, 5  ;;  %v474_v46 = vsel %vm6754_vm2, %v469_v58, %v473_v23  ;;  %v1322_v35 = vrot.slane %v6759_v32, 5 }
  0x56   : > { %v1316_v63 = vsel %vm7065_vm5, %v5342_v41, %v1315_v12  ;;  %v1317_v3 = vrot.slane %v1315_v12, 4  ;;  %v5301_v37 = vcombine.low %v464_v33, %v474_v46  ;;  %v651_v2 = vrot.slane %v650_v11, 4  ;;  %v1266_v12 = vld [vmem:[%s6723_s26 + $0x30] sm:$0xe]  ;;  %v1268_v46 = vld [vmem:[%s6723_s26 + $0x48] sm:$0xe] }
  0x57   : > { %v661_v42 = vrot.slane %v660_v21, 4  ;;  %v5318_v10 = vcombine.low %v6729_v4, %v6732_v5  ;;  %v9431_v38 = vrot.slane %v6735_v6, 5  ;;  %v1324_v45 = vrot.slane %v1322_v35, 4 }
  0x58   : > { %v5344_v23 = vrot.slane %v1264_v20, 9  ;;  %6110 = vmatmul.mubr.bf16.gmra.mxu0 %v5301_v37  ;;  %v656_v50 = vsel %vm6754_vm2, %v651_v2, %v655_v29  ;;  %v1329_v33 = vrot.slane %v6796_v19, 5  ;;  %v1323_v4 = vsel %vm7065_vm5, %v5343_v24, %v1322_v35  ;;  %v1267_v24 = vld [vmem:[%s6723_s26 + $0x3c] sm:$0xe] }
  0x59   : > { %v1319_v48 = vsel %vm7065_vm5, %v1317_v3, %v9431_v38  ;;  %v666_v49 = vsel %vm6754_vm2, %v661_v42, %v665_v43  ;;  %v9432_v5 = vrot.slane %v6765_v40, 5  ;;  %v1332_v37 = vrot.slane %v6801_v25, 5  ;;  %v1265_v3 = vld [vmem:[%s6723_s26 + $0x24] sm:$0xe]  ;;  %v6569_v25 = vld [vmem:[%s9394_s1 + $0x130] sm:$0xff]  }
  0x5a   : > { %v5374_v62 = vcombine.low %v1316_v63, %v1319_v48  ;;  %v5309_v58 = vcombine.low %v656_v50, %v666_v49  ;;  %v1330_v29 = vsel %vm7065_vm5, %v5344_v23, %v1329_v33  ;;  %v1331_v20 = vrot.slane %v1329_v33, 4  ;;  %v6568_v23 = vld [vmem:[%s9394_s1 + $0xf0] sm:$0xff]  }
  0x5b   : > { %v1326_v6 = vsel %vm7065_vm5, %v1324_v45, %v9432_v5  ;;  %v1336_v41 = vrot.slane %v6837_v0, 5  ;;  %v5345_v21 = vrot.slane %v1265_v3, 9  ;;  %v1343_v43 = vrot.slane %v6884_v60, 5  ;;  %v7140_v3 = vld [vmem:[%s6723_s26 + $0x68] sm:$0x1] }
  0x5c   : > { %6193 = vmatprep.mubr.bf16.mxu0 %v5374_v62  ;;  %6126 = vmatmul.mubr.bf16.gmra.mxu1 %v5309_v58  ;;  %v5375_v11 = vcombine.low %v1323_v4, %v1326_v6  ;;  %v1333_v40 = vsel %vm7065_vm5, %v1331_v20, %v1332_v37  ;;  %v1339_v2 = vrot.slane %v6840_v8, 5  ;;  %v5346_v42 = vrot.slane %v1266_v12, 9  ;;  %v1269_v37 = vld [vmem:[%s6723_s26 + $0x54] sm:$0xe]  ;;  %v7164_v12 = vld [vmem:[%s6723_s26 + $0x60] sm:$0xe] }
  0x5d   : > { %6145 = vmatprep.mubr.bf16.mxu1 %v5318_v10  ;;  %v5376_v63 = vcombine.low %v1330_v29, %v1333_v40  ;;  %v1338_v35 = vrot.slane %v1336_v41, 4  ;;  %v1345_v38 = vrot.slane %v1343_v43, 4  ;;  %v1346_v10 = vrot.slane %v6892_v16, 5 }
  0x5e   : > { %v1350_v48 = vrot.slane %v6928_v54, 5  ;;  %v5320_v45 = vcombine.low %v6788_v14, %v6796_v19  ;;  %v1357_v50 = vrot.slane %v6977_v17, 5  ;;  %v5347_v49 = vrot.slane %v1267_v24, 9  ;;  %v6577_v24 = vld [vmem:[%s9394_s1 + $0x120] sm:$0xff]  }
  0x5f   : > { %v1353_v8 = vrot.slane %v6935_v7, 5  ;;  %v5348_v33 = vrot.slane %v1268_v46, 9  ;;  %v1337_v14 = vsel %vm7065_vm5, %v5345_v21, %v1336_v41  ;;  %v1340_v19 = vsel %vm7065_vm5, %v1338_v35, %v1339_v2  ;;  %v7176_v46 = vld [vmem:[%s6723_s26 + $0x78] sm:$0xe]  ;;  %v6576_v2 = vld [vmem:[%s9394_s1 + $0xe0] sm:$0xff]  }
  0x60   : > { %6194 = vmatmul.mubr.bf16.vlgmr.msra.gmra.mxu0 %v5375_v11  ;;  %v1352_v62 = vrot.slane %v1350_v48, 4  ;;  %v1359_v16 = vrot.slane %v1357_v50, 4  ;;  %v1360_v58 = vrot.slane %v6986_v30, 5  ;;  %v1344_v4 = vsel %vm7065_vm5, %v5346_v42, %v1343_v43  ;;  %v7167_v11 = vld [vmem:[%s6723_s26 + $0x6c] sm:$0xe] }
  0x61   : > { %6274 = vmatpush3.bf16.msra.mxu0 %v7007_v1  ;;  %6197 = vmatprep.mubr.bf16.mxu0 %v5376_v63  ;;  %v1347_v7 = vsel %vm7065_vm5, %v1345_v38, %v1346_v10  ;;  %v6573_v1 = vld [vmem:[%s9394_s1 + $0x128] sm:$0xff]   ;;  %v1364_v5 = vrot.slane %v7022_v34, 5  ;;  %v9433_v6 = vcombine.low %v6750_v26, %v6759_v32  ;;  %v5321_v30 = vcombine.low %v6828_v57, %v6837_v0  ;;  %v1273_v63 = vld [vmem:[%s6723_s26 + $0x84] sm:$0xe]  ;;  %v1274_v42 = vld [vmem:[%s6723_s26 + $0x90] sm:$0xe] }
  0x62   : > { %6275 = vmatprep.subr.bf16.mxu0 %v6569_v25  ;;  %v1374_v29 = vrot.slane %v7140_v3, 5  ;;  %v5377_v20 = vcombine.low %v1337_v14, %v1340_v19  ;;  %v7146_v41 = vsel %vm7065_vm5, %v5347_v49, %v1350_v48  ;;  %v7150_v26 = vsel %vm7065_vm5, %v1352_v62, %v1353_v8  ;;  %v6572_v32 = vld [vmem:[%s9394_s1 + $0xe8] sm:$0xff]   ;;  %v7195_v48 = vld [vmem:[%s6723_s26 + $0x64] sm:$0xf]  ;;  %v1275_v49 = vld [vmem:[%s6723_s26 + $0x9c] sm:$0xe] }
  0x63   : > { %v5378_v57 = vcombine.low %v1344_v4, %v1347_v7  ;;  %v7157_v0 = vsel %vm7065_vm5, %v5348_v33, %v1357_v50  ;;  %v5322_v40 = vcombine.low %v6875_v53, %v6884_v60  ;;  %v5349_v21 = vrot.slane %v1269_v37, 9  ;;  %v7217_v4 = vld [vmem:[%s6723_s26 + $0x74] sm:$0x1] }
  0x64   : > { %6146 = vmatmul.mubr.bf16.vlgmr.msra.gmra.mxu1 %v9433_v6  ;;  %v1367_v43 = vrot.slane %v7031_v55, 5  ;;  %v5323_v35 = vcombine.low %v6925_v51, %v6928_v54  ;;  %v5379_v53 = vcombine.low %v7146_v41, %v7150_v26  ;;  %v5324_v60 = vcombine.low %v6968_v59, %v6977_v17  ;;  %v6662_v54 = vld [vmem:[%s6723_s26 + $0x80] sm:$0x1] }
  0x65   : > { %6226 = vmatpush3.bf16.msra.mxu1 %v6999_v47  ;;  %6149 = vmatprep.mubr.bf16.mxu1 %v5320_v45  ;;  %v7161_v47 = vsel %vm7065_vm5, %v1359_v16, %v1360_v58  ;;  %v5325_v55 = vcombine.low %v7015_v15, %v7022_v34  ;;  %v5350_v10 = vrot.slane %v7164_v12, 9  ;;  %v1371_v45 = vrot.slane %v7195_v48, 5  ;;  %v7213_v16 = vld [vmem:[%s6723_s26 + $0x70] sm:$0xf]  ;;  %v6663_v17 = vld [vmem:[%s6723_s26 + $0x60] sm:$0xf] }
  0x66   : > { %6227 = vmatprep.subr.bf16.mxu1 %v6568_v23  ;;  %6276 = vmatpush3.bf16.msra.mxu0 %v6569_v25  ;;  %v1366_v25 = vrot.slane %v1364_v5, 4  ;;  %v5380_v38 = vcombine.low %v7157_v0, %v7161_v47  ;;  %v5351_v62 = vrot.slane %v7167_v11, 9  ;;  %v1392_v8 = vrot.slane %v6851_v22, 5  ;;  %v1276_v0 = vld [vmem:[%s6723_s26 + $0xa8] sm:$0xe]  ;;  %v7397_v15 = vld [vmem:[%s9394_s1 + $0x1b8] sm:$0xff]  }
  0x67   : > { %6277 = vmatprep.subr.bf16.mxu0 %v6573_v1  ;;  %v1395_v33 = vrot.slane %v6860_v36, 5  ;;  %v7206_v14 = vsel %vm7065_vm5, %v5349_v21, %v1364_v5  ;;  %v1378_v58 = vrot.slane %v7213_v16, 5  ;;  %v1381_v7 = vrot.slane %v7217_v4, 5  ;;  %v6580_v36 = vld [vmem:[%s9394_s1 + $0xd8] sm:$0xff]  }
  0x68   : > { %6198 = vmatmul.mubr.bf16.gmra.mxu0 %v5377_v20  ;;  %v7210_v19 = vsel %vm7065_vm5, %v1366_v25, %v1367_v43  ;;  %v5352_v5 = vrot.slane %v7176_v46, 9  ;;  %v1394_v37 = vrot.slane %v1392_v8, 4  ;;  %v5354_v41 = vrot.slane %v1274_v42, 9  ;;  %v5470_v42 = vld [vmem:[%s6723_s26 + $0xc] sm:$0xf] }
  0x69   : > { %6228 = vmatpush3.bf16.msra.mxu1 %v6568_v23  ;;  %6201 = vmatprep.mubr.bf16.mxu0 %v5378_v57  ;;  %v5353_v23 = vrot.slane %v1273_v63, 9  ;;  %v1399_v26 = vrot.slane %v6902_v31, 5  ;;  %v1402_v57 = vrot.slane %v6912_v44, 5  ;;  %v1385_v47 = vrot.slane %v6810_v39, 5 }
  0x6a   : > { %6229 = vmatprep.subr.bf16.mxu1 %v6572_v32  ;;  %6278 = vmatpush3.bf16.msra.mxu0 %v6573_v1  ;;  %v6581_v1 = vld [vmem:[%s9394_s1 + $0x118] sm:$0xff]   ;;  %v7241_v21 = vsel %vm7065_vm5, %v1394_v37, %v1395_v33  ;;  %v1406_v63 = vrot.slane %v6947_v28, 5  ;;  %v5356_v33 = vrot.slane %v1276_v0, 9  ;;  %v1413_v37 = vrot.slane %v7002_v52, 5  ;;  %v6584_v0 = vld [vmem:[%s9394_s1 + $0xd0] sm:$0xff]  }
  0x6b   : > { %6279 = vmatprep.subr.bf16.mxu0 %v6577_v24  ;;  %v7229_v6 = vsel %vm7065_vm5, %v5353_v23, %v1392_v8  ;;  %v7249_v44 = vsel %vm7065_vm5, %v5354_v41, %v1399_v26  ;;  %v1401_v43 = vrot.slane %v1399_v26, 4  ;;  %v6585_v23 = vld [vmem:[%s9394_s1 + $0x110] sm:$0xff]   ;;  %v1409_v8 = vrot.slane %v6963_v61, 5  ;;  %v9435_v61 = vld [vmem:[#allocation3_spill] sm:$0xff] }
  0x6c   : > { %6150 = vmatmul.mubr.bf16.gmra.mxu1 %v5321_v30  ;;  %v1373_v30 = vrot.slane %v1371_v45, 4  ;;  %v1408_v20 = vrot.slane %v1406_v63, 4  ;;  %v1416_v50 = vrot.slane %v9435_v61, 5  ;;  %v1372_v61 = vsel %vm7065_vm5, %v5350_v10, %v1371_v45  ;;  %v5473_v45 = vld [vmem:[%s6723_s26 + $0x18] sm:$0xf] }
  0x6d   : > { %6153 = vmatprep.mubr.bf16.mxu1 %v5322_v40  ;;  %6230 = vmatpush3.bf16.msra.mxu1 %v6572_v32  ;;  %v5355_v40 = vrot.slane %v1275_v49, 9  ;;  %v7261_v32 = vld [vmem:[%s6723_s26 + $0x10] sm:$0xf]  ;;  %v7265_v41 = vsel %vm7065_vm5, %v1401_v43, %v1402_v57  ;;  %v1415_v57 = vrot.slane %v1413_v37, 4  ;;  %v2183_v12 = vshrl.u32 %v5470_v42, 16 }
  0x6e   : > { %6231 = vmatprep.subr.bf16.mxu1 %v6576_v2  ;;  %6280 = vmatpush3.bf16.msra.mxu0 %v6577_v24  ;;  %v9434_v24 = vld [vmem:[#allocation2_spill] sm:$0xff]  ;;  %v9437_v43 = vld [vmem:[#allocation4_spill] sm:$0xff]  ;;  %v2186_v10 = vshll.u32 %v5470_v42, 16  ;;  %v1380_v51 = vrot.slane %v1378_v58, 4  ;;  %v2192_v59 = vshll.u32 %v7261_v32, 16  ;;  %v1386_v4 = vsel %vm7065_vm5, %v5352_v5, %v1385_v47 }
  0x6f   : > { %6281 = vmatprep.subr.bf16.mxu0 %v6581_v1  ;;  %v7269_v26 = vsel %vm7065_vm5, %v5355_v40, %v1406_v63  ;;  %v9436_v40 = vld [vmem:[#allocation5_spill] sm:$0xff]  ;;  %v7335_v42 = vld [vmem:[%s6723_s26 + $0x14] sm:$0x1]  ;;  %v2185_v63 = vrot.slane %v2183_v12, 4  ;;  %v9439_v5 = vld [vmem:[#allocation6_spill] sm:$0xff] }
  0x70   : > { %6202 = vmatmul.mubr.bf16.gmra.mxu0 %v5379_v53  ;;  %v2188_v49 = vrot.slane %v2186_v10, 5  ;;  %v5476_v53 = vld [vmem:[%s6723_s26 + $0x24] sm:$0xf]  ;;  %v1382_v11 = vsel %vm7065_vm5, %v1380_v51, %v1381_v7 }
  0x71   : > { %6232 = vmatpush3.bf16.msra.mxu1 %v6576_v2  ;;  %6205 = vmatprep.mubr.bf16.mxu0 %v5380_v38  ;;  %v7279_v2 = vsel %vm7065_vm5, %v5356_v33, %v1413_v37  ;;  %v5381_v38 = vcombine.low %v7206_v14, %v7210_v19  ;;  %v1375_v33 = vsel %vm7065_vm5, %v1373_v30, %v1374_v29  ;;  %v6589_v14 = vld [vmem:[%s9394_s1 + $0x108] sm:$0xff]   ;;  %v6593_v30 = vld [vmem:[%s9394_s1 + $0x100] sm:$0xff]   ;;  %v7354_v19 = vrot.slane %v2192_v59, 5 }
  0x72   : > { %6233 = vmatprep.subr.bf16.mxu1 %v6580_v36  ;;  %6282 = vmatpush3.bf16.msra.mxu0 %v6581_v1  ;;  %v7297_v37 = vsel %vm7065_vm5, %v1408_v20, %v1409_v8  ;;  %v7309_v29 = vsel %vm7065_vm5, %v1415_v57, %v1416_v50  ;;  %v6588_v50 = vld [vmem:[%s9394_s1 + $0xc8] sm:$0xff]   ;;  %v7324_v1 = vld [vmem:[%s6723_s26 + $0xb4] sm:$0xe]  ;;  %v5382_v20 = vcombine.low %v1372_v61, %v1375_v33  ;;  %v2196_v8 = vshrl.u32 %v7261_v32, 16  ;;  %v7352_v61 = vld [vmem:[%s6723_s26 + $0x1c] sm:$0xf] }
  0x73   : > { %6283 = vmatprep.subr.bf16.mxu0 %v6585_v23  ;;  %v7339_v57 = vld [vmem:[%s6723_s26 + $0x6c] sm:$0xf]  ;;  %v2207_v33 = vshrl.u32 %v5473_v45, 16  ;;  %v2216_v51 = vshll.u32 %v7352_v61, 16  ;;  %v2220_v39 = vshrl.u32 %v7352_v61, 16  ;;  %v2231_v59 = vshrl.u32 %v5476_v53, 16 }
  0x74   : > { %6154 = vmatmul.mubr.bf16.gmra.mxu1 %v5323_v35  ;;  %v1388_v35 = vrot.slane %v6662_v54, 5  ;;  %v5327_v54 = vcombine.low %v7339_v57, %v7213_v16  ;;  %v2198_v3 = vrot.slane %v2196_v8, 4  ;;  %v2234_v46 = vshll.u32 %v5476_v53, 16  ;;  %v6666_v8 = vld [vmem:[%s6723_s26 + $0x7c] sm:$0xf] }
  0x75   : > { %6157 = vmatprep.mubr.bf16.mxu1 %v5324_v60  ;;  %6234 = vmatpush3.bf16.msra.mxu1 %v6580_v36  ;;  %v5326_v60 = vcombine.low %v6663_v17, %v7195_v48  ;;  %v1387_v36 = vrot.slane %v1385_v47, 4  ;;  %v7349_v48 = vsel %vm7065_vm5, %v5351_v62, %v1378_v58  ;;  %v2210_v17 = vshll.u32 %v5473_v45, 16  ;;  %v6592_v58 = vld [vmem:[%s9394_s1 + $0xc0] sm:$0xff]   ;;  %v7379_v45 = vld [vmem:[%s6723_s26 + $0x28] sm:$0xf] }
  0x76   : > { %6235 = vmatprep.subr.bf16.mxu1 %v6584_v0  ;;  %6284 = vmatpush3.bf16.msra.mxu0 %v6585_v23  ;;  %v9407_v62 = vrot.slane %v9436_v40, 5  ;;  %v7366_v23 = vld [vmem:[%s6723_s26 + $0x20] sm:$0x1]  ;;  %v2209_v12 = vrot.slane %v2207_v33, 4  ;;  %9438 = vst [vmem:[#allocation2_spill] sm:$0xff] %v7379_v45  ;;  %v5383_v34 = vcombine.low %v7349_v48, %v1382_v11  ;;  %v2240_v53 = vshll.u32 %v7379_v45, 16 }
  0x77   : > { %6285 = vmatprep.subr.bf16.mxu0 %v6589_v14  ;;  %v2212_v10 = vrot.slane %v2210_v17, 5  ;;  %v1389_v7 = vsel %vm7065_vm5, %v1387_v36, %v1388_v35  ;;  %v2189_v35 = vor.u32 %v2188_v49, %v2185_v63  ;;  %v7392_v36 = vld [vmem:[%s9394_s1 + $0x178] sm:$0xff]   ;;  %v5479_v63 = vld [vmem:[%s6723_s26 + $0x30] sm:$0xf]  ;;  %v7413_v48 = vld [vmem:[%s6723_s26 + $0x34] sm:$0xf] }
  0x78   : > { %6206 = vmatmul.mubr.bf16.gmra.mxu0 %v5381_v38  ;;  %v2202_v38 = vshll.u32 %v7335_v42, 16  ;;  %v5384_v17 = vcombine.low %v1386_v4, %v1389_v7  ;;  %9441 = vst [vmem:[#allocation5_spill] sm:$0xff] %v7413_v48  ;;  %v7415_v11 = vrot.slane %v2216_v51, 5  ;;  %v2236_v47 = vrot.slane %v2234_v46, 5  ;;  %v7434_v46 = vld [vmem:[%s6723_s26 + $0x40] sm:$0xf] }
  0x79   : > { %6236 = vmatpush3.bf16.msra.mxu1 %v6584_v0  ;;  %6209 = vmatprep.mubr.bf16.mxu0 %v5382_v20  ;;  %v2199_v20 = vor.u32 %v2198_v3, %v7354_v19  ;;  %v2213_v49 = vor.u32 %v2212_v10, %v2209_v12  ;;  %v6665_v3 = vld [vmem:[%s6723_s26 + $0x78] sm:$0xf]  ;;  %v2222_v12 = vrot.slane %v2220_v39, 4  ;;  %v2233_v10 = vrot.slane %v2231_v59, 4  ;;  %9442 = vst [vmem:[#allocation4_spill] sm:$0xff] %v7434_v46 }
  0x7a   : > { %6237 = vmatprep.subr.bf16.mxu1 %v6588_v50  ;;  %6286 = vmatpush3.bf16.msra.mxu0 %v6589_v14  ;;  %v2226_v14 = vshll.u32 %v7366_v23, 16  ;;  %v5328_v33 = vcombine.low %v6665_v3, %v6666_v8  ;;  %v7406_v25 = vrot.slane %v2202_v38, 5  ;;  %v7418_v0 = vld [vmem:[%s6723_s26 + $0x38] sm:$0x1]  ;;  %v7420_v4 = vrot.slane %v2189_v35, 4 }
  0x7b   : > { %6287 = vmatprep.subr.bf16.mxu0 %v6593_v30  ;;  %v7422_v7 = vrot.slane %v2199_v20, 4  ;;  %v2255_v3 = vshrl.u32 %v5479_v63, 16  ;;  %v5482_v8 = vld [vmem:[%s6723_s26 + $0x3c] sm:$0xf]  ;;  %v7430_v51 = vrot.slane %v2240_v53, 5  ;;  %v2258_v39 = vshll.u32 %v5479_v63, 16 }
  0x7c   : > { %6158 = vmatmul.mubr.bf16.gmra.mxu1 %v5325_v55  ;;  %v1422_v55 = vrot.slane %v9407_v62, 4  ;;  %v7424_v38 = vrot.slane %v2226_v14, 5  ;;  %v2264_v59 = vshll.u32 %v7413_v48, 16  ;;  %v2268_v20 = vshrl.u32 %v7413_v48, 16 }
  0x7d   : > { %6161 = vmatprep.mubr.bf16.mxu1 %v5326_v60  ;;  %6238 = vmatpush3.bf16.msra.mxu1 %v6588_v50  ;;  %v7409_v60 = vld [vmem:[%s6723_s26 + $0x2c] sm:$0x1]  ;;  %v2244_v50 = vshrl.u32 %v7379_v45, 16  ;;  %v2223_v14 = vor.u32 %v2222_v12, %v7415_v11  ;;  %v2257_v53 = vrot.slane %v2255_v3, 4  ;;  %v2260_v63 = vrot.slane %v2258_v39, 5 }
  0x7e   : > { %6239 = vmatprep.subr.bf16.mxu1 %v6592_v58  ;;  %9440 = vst [vmem:[#allocation3_spill] sm:$0xff] %v7409_v60  ;;  %6288 = vmatpush3.bf16.msra.mxu0 %v6593_v30  ;;  %v7428_v30 = vrot.slane %v2213_v49, 4  ;;  %v2279_v49 = vshrl.u32 %v5482_v8, 16  ;;  %v2282_v62 = vshll.u32 %v5482_v8, 16  ;;  %v2270_v48 = vrot.slane %v2268_v20, 4 }
  0x7f   : > { %6369 = vmatprep.subr.bf16.mxu0 %v7397_v15  ;;  %v2246_v35 = vrot.slane %v2244_v50, 4  ;;  %v7444_v50 = vrot.slane %v2264_v59, 5  ;;  %v7447_v45 = vld [vmem:[%s6723_s26 + $0x44] sm:$0x1]  ;;  %v2292_v12 = vshrl.u32 %v7434_v46, 16  ;;  %v9443_v16 = vrot.slane %v9436_v40, 5 }
  0x80   : > { %6210 = vmatmul.mubr.bf16.gmra.mxu0 %v5383_v34  ;;  %v2250_v34 = vshll.u32 %v7409_v60, 16  ;;  %v9444_v57 = vrot.slane %v7324_v1, 9  ;;  %v7468_v39 = vld [vmem:[%s6723_s26 + $0x4c] sm:$0xf]  ;;  %v2281_v59 = vrot.slane %v2279_v49, 4  ;;  %v2284_v20 = vrot.slane %v2282_v62, 5 }
  0x81   : > { %6240 = vmatpush3.bf16.msra.mxu1 %v6592_v58  ;;  %6213 = vmatprep.mubr.bf16.mxu0 %v5384_v17  ;;  %v2237_v58 = vor.u32 %v2236_v47, %v2233_v10  ;;  %v2274_v17 = vshll.u32 %v7418_v0, 16  ;;  %v2288_v47 = vshll.u32 %v7434_v46, 16  ;;  %v5485_v10 = vld [vmem:[%s6723_s26 + $0x48] sm:$0xf]  ;;  %v2247_v8 = vor.u32 %v2246_v35, %v7430_v51 }
  0x82   : > { %6321 = vmatprep.subr.bf16.mxu1 %v7392_v36  ;;  %v2294_v1 = vrot.slane %v2292_v12, 4  ;;  %v7472_v46 = vrot.slane %v2223_v14, 4  ;;  %v2195_v62 = vsel %vm6754_vm2, %v7420_v4, %v7354_v19  ;;  %v2205_v35 = vsel %vm6754_vm2, %v7422_v7, %v7406_v25  ;;  %v5488_v4 = vld [vmem:[%s6723_s26 + $0x54] sm:$0xf] }
  0x83   : > { %v7470_v60 = vrot.slane %v2288_v47, 5  ;;  %v2306_v14 = vshll.u32 %v5485_v10, 16  ;;  %v2298_v49 = vshll.u32 %v7447_v45, 16  ;;  %v2316_v19 = vshrl.u32 %v7468_v39, 16 }
  0x84   : > { %6162 = vmatmul.mubr.bf16.gmra.mxu1 %v5327_v54  ;;  %v7458_v54 = vsel %vm7065_vm5, %v9444_v57, %v9443_v16  ;;  %v7474_v16 = vrot.slane %v2237_v58, 4  ;;  %v7476_v57 = vrot.slane %v2250_v34, 5  ;;  %v2312_v58 = vshll.u32 %v7468_v39, 16 }
  0x85   : > { %6165 = vmatprep.mubr.bf16.mxu1 %v5328_v33  ;;  %v9445_v33 = vrot.slane %v9439_v5, 5  ;;  %v2303_v5 = vshrl.u32 %v5485_v10, 16  ;;  %v9447_v34 = vcombine.low %v7249_v44, %v7265_v41  ;;  %v7497_v47 = vrot.slane %v2247_v8, 4  ;;  %v7503_v10 = vld [vmem:[%s6723_s26 + $0x58] sm:$0xf] }
  0x86   : > { %v7499_v12 = vrot.slane %v2274_v17, 5  ;;  %v2285_v25 = vor.u32 %v2284_v20, %v2281_v59  ;;  %v2295_v7 = vor.u32 %v2294_v1, %v7470_v60  ;;  %v9448_v44 = vcombine.low %v6844_v13, %v6851_v22  ;;  %v7509_v41 = vld [vmem:[%s6723_s26 + $0x50] sm:$0x1] }
  0x87   : > { %v7464_v3 = vsel %vm7065_vm5, %v1422_v55, %v9445_v33  ;;  %v9446_v55 = vcombine.low %v7229_v6, %v7241_v21  ;;  %v2261_v6 = vor.u32 %v2260_v63, %v2257_v53  ;;  %v2271_v21 = vor.u32 %v2270_v48, %v7444_v50 }
  0x88   : > { %v2305_v48 = vrot.slane %v2303_v5, 4  ;;  %v2308_v53 = vrot.slane %v2306_v14, 5  ;;  %v7511_v63 = vrot.slane %v2312_v58, 5  ;;  %v2318_v17 = vrot.slane %v2316_v19, 4  ;;  %v5491_v5 = vld [vmem:[%s6723_s26 + $0x60] sm:$0xf] }
  0x89   : > { %6214 = vmatmul.mubr.bf16.gmra.mxu0 %v9446_v55  ;;  %v9449_v33 = vcombine.low %v6896_v18, %v6902_v31  ;;  %v2327_v8 = vshrl.u32 %v5488_v4, 16  ;;  %v2330_v59 = vshll.u32 %v5488_v4, 16  ;;  %v7516_v20 = vrot.slane %v2261_v6, 4  ;;  %v7533_v31 = vld [vmem:[%s6723_s26 + $0x64] sm:$0xf] }
  0x8a   : > { %6217 = vmatprep.mubr.bf16.mxu0 %v9447_v34  ;;  %v7518_v1 = vrot.slane %v2271_v21, 4  ;;  %v7520_v13 = vrot.slane %v2298_v49, 5  ;;  %v2336_v22 = vshll.u32 %v7503_v10, 16  ;;  %v5389_v55 = vcombine.low %v7458_v54, %v7464_v3  ;;  %v7529_v34 = vld [vmem:[%s6723_s26 + $0x5c] sm:$0x1] }
  0x8b   : > { %v5534_v14 = vcombine.low %v2195_v62, %v2205_v35  ;;  %v7526_v58 = vrot.slane %v2285_v25, 4  ;;  %v2340_v18 = vshrl.u32 %v7503_v10, 16  ;;  %v7535_v6 = vrot.slane %v2295_v7, 4 }
  0x8c   : > { %6166 = vmatmul.mubr.bf16.gmra.mxu1 %v9448_v44  ;;  %v2322_v21 = vshll.u32 %v7509_v41, 16  ;;  %v2351_v49 = vshrl.u32 %v5491_v5, 16  ;;  %v2354_v19 = vshll.u32 %v5491_v5, 16  ;;  %v9450_v4 = vcombine.low %v7269_v26, %v7297_v37 }
  0x8d   : > { %6169 = vmatprep.mubr.bf16.mxu1 %v9449_v33  ;;  %v2309_v54 = vor.u32 %v2308_v53, %v2305_v48  ;;  %v2319_v3 = vor.u32 %v2318_v17, %v7511_v63  ;;  %v2329_v62 = vrot.slane %v2327_v8, 4  ;;  %v2332_v35 = vrot.slane %v2330_v59, 5  ;;  %v7573_v8 = vld [vmem:[%s6723_s26 + $0x70] sm:$0xf] }
  0x8e   : > { %v9451_v25 = vcombine.low %v7279_v2, %v7309_v29  ;;  %v7545_v7 = vrot.slane %v2336_v22, 5  ;;  %v2342_v44 = vrot.slane %v2340_v18, 4  ;;  %v2346_v33 = vshll.u32 %v7529_v34, 16 }
  0x8f   : > { %v2360_v26 = vshll.u32 %v7533_v31, 16  ;;  %v2219_v37 = vsel %vm6754_vm2, %v7428_v30, %v7415_v11  ;;  %v2229_v2 = vsel %vm6754_vm2, %v7472_v46, %v7424_v38  ;;  %v2353_v29 = vrot.slane %v2351_v49, 4  ;;  %v5494_v46 = vld [vmem:[%s6723_s26 + $0x6c] sm:$0xf] }
  0x90   : > { %v2356_v48 = vrot.slane %v2354_v19, 5  ;;  %v9452_v53 = vcombine.low %v6938_v9, %v6947_v28  ;;  %v2243_v17 = vsel %vm6754_vm2, %v7474_v16, %v7430_v51  ;;  %v2253_v11 = vsel %vm6754_vm2, %v7497_v47, %v7476_v57  ;;  %v7581_v16 = vld [vmem:[%s6723_s26 + $0x68] sm:$0x1] }
  0x91   : > { %6218 = vmatmul.mubr.bf16.gmra.mxu0 %v9450_v4  ;;  %v7568_v30 = vrot.slane %v2322_v21, 5  ;;  %v2364_v38 = vshrl.u32 %v7533_v31, 16  ;;  %v9453_v9 = vcombine.low %v9434_v24, %v7002_v52  ;;  %v7578_v28 = vrot.slane %v2309_v54, 4  ;;  %v6594_v52 = vld [vmem:[%s6723_s26 + $0xc] sm:$0xff]  }
  0x92   : > { %6221 = vmatprep.mubr.bf16.mxu0 %v9451_v25  ;;  %v2333_v51 = vor.u32 %v2332_v35, %v2329_v62  ;;  %v2375_v59 = vshrl.u32 %v5494_v46, 16  ;;  %v2378_v57 = vshll.u32 %v5494_v46, 16  ;;  %v7583_v47 = vrot.slane %v2319_v3, 4  ;;  %v7594_v62 = vld [vmem:[%s6723_s26 + $0x74] sm:$0x1] }
  0x93   : > { %v2343_v22 = vor.u32 %v2342_v44, %v7545_v7  ;;  %v7586_v5 = vrot.slane %v2346_v33, 5  ;;  %v2384_v18 = vshll.u32 %v7573_v8, 16  ;;  %v2357_v24 = vor.u32 %v2356_v48, %v2353_v29  ;;  %v5497_v25 = vld [vmem:[%s6723_s26 + $0x78] sm:$0xf]  ;;  %v7598_v44 = vld [vmem:[%s6723_s26 + $0x7c] sm:$0xf] }
  0x94   : > { %6170 = vmatmul.mubr.bf16.gmra.mxu1 %v9452_v53  ;;  %v7590_v21 = vrot.slane %v2360_v26, 5  ;;  %v2366_v49 = vrot.slane %v2364_v38, 4  ;;  %v2388_v19 = vshrl.u32 %v7573_v8, 16  ;;  %v5535_v4 = vcombine.low %v2219_v37, %v2229_v2  ;;  %v7605_v26 = vld [vmem:[%s6723_s26 + $0x80] sm:$0x1] }
  0x95   : > { %6173 = vmatprep.mubr.bf16.mxu1 %v9453_v9  ;;  %v5536_v54 = vcombine.low %v2243_v17, %v2253_v11  ;;  %v2377_v3 = vrot.slane %v2375_v59, 4  ;;  %v2380_v35 = vrot.slane %v2378_v57, 5  ;;  %v7600_v33 = vrot.slane %v2333_v51, 4 }
  0x96   : > { %v7602_v53 = vrot.slane %v2384_v18, 5  ;;  %v2390_v29 = vrot.slane %v2388_v19, 4  ;;  %v2399_v48 = vshrl.u32 %v5497_v25, 16  ;;  %v2370_v37 = vshll.u32 %v7581_v16, 16  ;;  %v5500_v19 = vld [vmem:[%s6723_s26 + $0x84] sm:$0xf] }
  0x97   : > { %v2402_v2 = vshll.u32 %v5497_v25, 16  ;;  %v2408_v17 = vshll.u32 %v7598_v44, 16  ;;  %v2412_v11 = vshrl.u32 %v7598_v44, 16  ;;  %v7610_v38 = vrot.slane %v2343_v22, 4  ;;  %v6598_v25 = vld [vmem:[%s6723_s26 + $0x24] sm:$0xff]  }
  0x98   : > { %v7612_v46 = vrot.slane %v2357_v24, 4  ;;  %v2401_v9 = vrot.slane %v2399_v48, 4  ;;  %v9454_v51 = vcombine.low %v9437_v43, %v9436_v40  ;;  %v2267_v22 = vsel %vm6754_vm2, %v7516_v20, %v7444_v50 }
  0x99   : > { %6222 = vmatmul.mubr.bf16.gmra.mxu0 %v5389_v55  ;;  %v2367_v55 = vor.u32 %v2366_v49, %v7590_v21  ;;  %v2404_v59 = vrot.slane %v2402_v2, 5  ;;  %v7618_v57 = vrot.slane %v2408_v17, 5  ;;  %v2414_v18 = vrot.slane %v2412_v11, 4  ;;  %v7667_v17 = vld [vmem:[%s6723_s26 + $0x8c] sm:$0x1] }
  0x9a   : > { %6289 = vmatprep.mubr.bf16.mxu0 %v5534_v14  ;;  %v2381_v14 = vor.u32 %v2380_v35, %v2377_v3  ;;  %v2391_v24 = vor.u32 %v2390_v29, %v7602_v53  ;;  %v2394_v49 = vshll.u32 %v7594_v62, 16  ;;  %v2418_v40 = vshll.u32 %v7605_v26, 16  ;;  %v7641_v3 = vld [vmem:[%s6723_s26 + $0x88] sm:$0xf]  ;;  %v6595_v35 = vld [vmem:[%s6723_s26 + $0x18] sm:$0xff]  }
  0x9b   : > { %v2277_v43 = vsel %vm6754_vm2, %v7518_v1, %v7499_v12  ;;  %v2301_v50 = vsel %vm6754_vm2, %v7535_v6, %v7520_v13  ;;  %v2405_v20 = vor.u32 %v2404_v59, %v2401_v9  ;;  %v6601_v12 = vld [vmem:[%s9394_s1 + $0x1b0] sm:$0xff]   ;;  %v7648_v1 = vrot.slane %v2370_v37, 5  ;;  %v7672_v11 = vld [vmem:[%s9394_s1 + $0x1a8] sm:$0xff]  }
  0x9c   : > { %6174 = vmatmul.mubr.bf16.gmra.mxu1 %v9454_v51  ;;  %v2426_v29 = vshll.u32 %v5500_v19, 16  ;;  %v6600_v13 = vld [vmem:[%s9394_s1 + $0x170] sm:$0xff]   ;;  %v2315_v6 = vsel %vm6754_vm2, %v7578_v28, %v7511_v63  ;;  %v2325_v48 = vsel %vm6754_vm2, %v7583_v47, %v7568_v30  ;;  %v7662_v37 = vrot.slane %v2367_v55, 4 }
  0x9d   : > { %6241 = vmatprep.mubr.bf16.mxu1 %v6594_v52  ;;  %v2291_v52 = vsel %vm6754_vm2, %v7526_v58, %v7470_v60  ;;  %v2415_v60 = vor.u32 %v2414_v18, %v7618_v57  ;;  %v2423_v58 = vshrl.u32 %v5500_v19, 16  ;;  %v7664_v2 = vrot.slane %v2381_v14, 4  ;;  %v5503_v14 = vld [vmem:[%s6723_s26 + $0x90] sm:$0xf]  ;;  %v7695_v59 = vld [vmem:[%s6723_s26 + $0x94] sm:$0xf] }
  0x9e   : > { %v7674_v63 = vrot.slane %v2391_v24, 4  ;;  %v7676_v28 = vrot.slane %v2394_v49, 5  ;;  %v2432_v30 = vshll.u32 %v7641_v3, 16  ;;  %v2436_v47 = vshrl.u32 %v7641_v3, 16  ;;  %9455 = vst [vmem:[#allocation6_spill] sm:$0xff] %v7695_v59 }
  0x9f   : > { %v2349_v55 = vsel %vm6754_vm2, %v7610_v38, %v7586_v5  ;;  %v7689_v9 = vrot.slane %v2405_v20, 4  ;;  %v7691_v51 = vrot.slane %v2418_v40, 5  ;;  %v2428_v18 = vrot.slane %v2426_v29, 5  ;;  %v6604_v5 = vld [vmem:[%s9394_s1 + $0x168] sm:$0xff]  }
  0xa0   : > { %v2450_v38 = vshll.u32 %v5503_v14, 16  ;;  %v2456_v24 = vshll.u32 %v7695_v59, 16  ;;  %v2460_v49 = vshrl.u32 %v7695_v59, 16  ;;  %v5537_v40 = vcombine.low %v2267_v22, %v2277_v43 }
  0xa1   : > { %6290 = vmatmul.mubr.bf16.vlgmr.msra.gmra.mxu0 %v5535_v4  ;;  %v2339_v4 = vsel %vm6754_vm2, %v7600_v33, %v7545_v7  ;;  %v2442_v7 = vshll.u32 %v7667_v17, 16  ;;  %v2447_v33 = vshrl.u32 %v5503_v14, 16  ;;  %v5538_v20 = vcombine.low %v2291_v52, %v2301_v50 }
  0xa2   : > { %6370 = vmatpush3.bf16.msra.mxu0 %v7397_v15  ;;  %6293 = vmatprep.mubr.bf16.mxu0 %v5536_v54  ;;  %v7697_v15 = vrot.slane %v2415_v60, 4  ;;  %v2425_v54 = vrot.slane %v2423_v58, 4  ;;  %v7706_v19 = vrot.slane %v2432_v30, 5  ;;  %v6599_v60 = vld [vmem:[%s6723_s26 + $0x30] sm:$0xff]   ;;  %v6609_v58 = vld [vmem:[%s9394_s1 + $0x1a0] sm:$0xff]   ;;  %v2452_v14 = vrot.slane %v2450_v38, 5 }
  0xa3   : > { %6371 = vmatprep.subr.bf16.mxu0 %v6601_v12  ;;  %v2449_v29 = vrot.slane %v2447_v33, 4  ;;  %v2462_v22 = vrot.slane %v2460_v49, 4  ;;  %v7714_v43 = vcombine.low %v2315_v6, %v2325_v48  ;;  %v7717_v52 = vcombine.low %v2339_v4, %v2349_v55  ;;  %v5506_v30 = vld [vmem:[%s6723_s26 + $0x9c] sm:$0xf]  ;;  %v7739_v4 = vld [vmem:[%s6723_s26 + $0xa4] sm:$0x1] }
  0xa4   : > { %6242 = vmatmul.mubr.bf16.vlgmr.msra.gmra.mxu1 %v6595_v35  ;;  %v2438_v35 = vrot.slane %v2436_v47, 4  ;;  %v2429_v48 = vor.u32 %v2428_v18, %v2425_v54  ;;  %v7736_v47 = vld [vmem:[%s6723_s26 + $0xa0] sm:$0xf]  ;;  %9458 = vst [vmem:[#allocation9_spill] sm:$0xff] %v7739_v4  ;;  %v2471_v55 = vshrl.u32 %v5506_v30, 16  ;;  %v2474_v33 = vshll.u32 %v5506_v30, 16 }
  0xa5   : > { %6322 = vmatpush3.bf16.msra.mxu1 %v7392_v36  ;;  %6245 = vmatprep.mubr.bf16.mxu1 %v6598_v25  ;;  %v7712_v36 = vrot.slane %v2456_v24, 5  ;;  %v2373_v25 = vsel %vm6754_vm2, %v7662_v37, %v7648_v1  ;;  %9457 = vst [vmem:[#allocation8_spill] sm:$0xff] %v7736_v47  ;;  %v6602_v38 = vld [vmem:[%s6723_s26 + $0x3c] sm:$0xff]   ;;  %v2480_v37 = vshll.u32 %v7736_v47, 16  ;;  %v2484_v24 = vshrl.u32 %v7736_v47, 16 }
  0xa6   : > { %6323 = vmatprep.subr.bf16.mxu1 %v6600_v13  ;;  %6372 = vmatpush3.bf16.msra.mxu0 %v6601_v12  ;;  %v7728_v12 = vld [vmem:[%s6723_s26 + $0x98] sm:$0x1]  ;;  %v2439_v1 = vor.u32 %v2438_v35, %v7706_v19  ;;  %v6608_v54 = vld [vmem:[%s9394_s1 + $0x160] sm:$0xff]   ;;  %v2453_v18 = vor.u32 %v2452_v14, %v2449_v29  ;;  %v2473_v30 = vrot.slane %v2471_v55, 4  ;;  %v2476_v49 = vrot.slane %v2474_v33, 5 }
  0xa7   : > { %6373 = vmatprep.subr.bf16.mxu0 %v7672_v11  ;;  %9456 = vst [vmem:[#allocation7_spill] sm:$0xff] %v7728_v12  ;;  %v2466_v35 = vshll.u32 %v7728_v12, 16  ;;  %v2486_v6 = vrot.slane %v2484_v24, 4  ;;  %v2490_v50 = vshll.u32 %v7739_v4, 16  ;;  %v5509_v47 = vld [vmem:[%s6723_s26 + $0xa8] sm:$0xf] }
  0xa8   : > { %v6612_v29 = vld [vmem:[%s9394_s1 + $0x158] sm:$0xff]   ;;  %v7762_v14 = vrot.slane %v2429_v48, 4  ;;  %v2495_v55 = vshrl.u32 %v5509_v47, 16  ;;  %v2498_v33 = vshll.u32 %v5509_v47, 16  ;;  %v7775_v4 = vld [vmem:[%s6723_s26 + $0xb0] sm:$0x1] }
  0xa9   : > { %6294 = vmatmul.mubr.bf16.gmra.mxu0 %v5537_v40  ;;  %6324 = vmatpush3.bf16.msra.mxu1 %v6600_v13  ;;  %v6613_v13 = vld [vmem:[%s9394_s1 + $0x198] sm:$0xff]   ;;  %v2463_v40 = vor.u32 %v2462_v22, %v7712_v36  ;;  %v7764_v22 = vrot.slane %v2442_v7, 5  ;;  %v6603_v48 = vld [vmem:[%s6723_s26 + $0x48] sm:$0xff]   ;;  %v7778_v7 = vrot.slane %v2439_v1, 4  ;;  %v7780_v12 = vrot.slane %v2453_v18, 4 }
  0xaa   : > { %6297 = vmatprep.mubr.bf16.mxu0 %v5538_v20  ;;  %6325 = vmatprep.subr.bf16.mxu1 %v6604_v5  ;;  %v7755_v20 = vrot.slane %v2480_v37, 5  ;;  %v2477_v37 = vor.u32 %v2476_v49, %v2473_v30  ;;  %v7782_v59 = vrot.slane %v2466_v35, 5  ;;  %v6616_v49 = vld [vmem:[%s9394_s1 + $0x150] sm:$0xff]   ;;  %v7799_v18 = vrot.slane %v2498_v33, 5 }
  0xab   : > { %6374 = vmatpush3.bf16.msra.mxu0 %v7672_v11  ;;  %v7767_v11 = vld [vmem:[%s6723_s26 + $0xac] sm:$0xf]  ;;  %v2514_v35 = vshll.u32 %v7775_v4, 16 }
  0xac   : > { %6246 = vmatmul.mubr.bf16.gmra.mxu1 %v6599_v60  ;;  %6375 = vmatprep.subr.bf16.mxu0 %v6609_v58  ;;  %9459 = vst [vmem:[#allocation10_spill] sm:$0xff] %v7767_v11  ;;  %v2397_v60 = vsel %vm6754_vm2, %v7674_v63, %v7676_v28  ;;  %v2487_v24 = vor.u32 %v2486_v6, %v7755_v20  ;;  %v2504_v47 = vshll.u32 %v7767_v11, 16  ;;  %v6606_v63 = vld [vmem:[%s6723_s26 + $0x54] sm:$0xff]   ;;  %v7789_v28 = vrot.slane %v2463_v40, 4 }
  0xad   : > { %6249 = vmatprep.mubr.bf16.mxu1 %v6602_v38  ;;  %6326 = vmatpush3.bf16.msra.mxu1 %v6604_v5  ;;  %v6617_v5 = vld [vmem:[%s9394_s1 + $0x190] sm:$0xff]   ;;  %v7791_v6 = vrot.slane %v2490_v50, 5  ;;  %v7793_v38 = vrot.slane %v2495_v55, 4  ;;  %v2508_v1 = vshrl.u32 %v7767_v11, 16  ;;  %v7808_v40 = vrot.slane %v2477_v37, 4 }
  0xae   : > { %6327 = vmatprep.subr.bf16.mxu1 %v6608_v54  ;;  %v7810_v30 = vrot.slane %v2487_v24, 4  ;;  %v5512_v55 = vld [vmem:[%s6723_s26 + $0xb4] sm:$0xf]  ;;  %v7814_v11 = vld [vmem:[%s6723_s26 + $0xb8] sm:$0xf]  ;;  %v6620_v24 = vld [vmem:[%s9394_s1 + $0x148] sm:$0xff]  }
  0xaf   : > { %6376 = vmatpush3.bf16.msra.mxu0 %v6609_v58  ;;  %v9460_v58 = vsel %vm6754_vm2, %v7612_v46, %v7590_v21  ;;  %9461 = vst [vmem:[#allocation11_spill] sm:$0xff] %v7814_v11  ;;  %v2411_v21 = vsel %vm6754_vm2, %v7689_v9, %v7618_v57  ;;  %v7826_v46 = vrot.slane %v2504_v47, 5  ;;  %v5515_v37 = vld [vmem:[%s6723_s26 + $0xc0] sm:$0xf]  ;;  %v2421_v57 = vsel %vm6754_vm2, %v7697_v15, %v7691_v51  ;;  %v7853_v47 = vld [vmem:[%s6723_s26 + $0xc4] sm:$0xf] }
  0xb0   : > { %6377 = vmatprep.subr.bf16.mxu0 %v6613_v13  ;;  %v5541_v50 = vcombine.low %v9460_v58, %v2373_v25  ;;  %v2519_v25 = vshrl.u32 %v5512_v55, 16  ;;  %v2435_v9 = vsel %vm6754_vm2, %v7762_v14, %v7706_v19  ;;  %9464 = vst [vmem:[#allocation13_spill] sm:$0xff] %v7853_v47  ;;  %v7856_v51 = vld [vmem:[%s6723_s26 + $0xc8] sm:$0x1]  ;;  %v2552_v58 = vshll.u32 %v7853_v47, 16 }
  0xb1   : > { %6298 = vmatmul.mubr.bf16.gmra.mxu0 %v7714_v43  ;;  %6328 = vmatpush3.bf16.msra.mxu1 %v6608_v54  ;;  %v9462_v43 = vsel %vm6754_vm2, %v7664_v2, %v7602_v53  ;;  %v2510_v54 = vrot.slane %v2508_v1, 4  ;;  %v2522_v53 = vshll.u32 %v5512_v55, 16  ;;  %v2528_v2 = vshll.u32 %v7814_v11, 16 }
  0xb2   : > { %6301 = vmatprep.mubr.bf16.mxu0 %v7717_v52  ;;  %v5542_v33 = vcombine.low %v9462_v43, %v2397_v60  ;;  %6329 = vmatprep.subr.bf16.mxu1 %v6612_v29  ;;  %v6621_v52 = vld [vmem:[%s9394_s1 + $0x188] sm:$0xff]   ;;  %v2532_v60 = vshrl.u32 %v7814_v11, 16  ;;  %v2521_v15 = vrot.slane %v2519_v25, 4  ;;  %v9465_v55 = vrot.slane %v7261_v32, 5 }
  0xb3   : > { %6378 = vmatpush3.bf16.msra.mxu0 %v6613_v13  ;;  %v2445_v13 = vsel %vm6754_vm2, %v7778_v7, %v7764_v22  ;;  %v2524_v19 = vrot.slane %v2522_v53, 5  ;;  %v7858_v14 = vrot.slane %v2528_v2, 5  ;;  %v2543_v22 = vshrl.u32 %v5515_v37, 16  ;;  %v6607_v2 = vld [vmem:[%s6723_s26 + $0x60] sm:$0xff]  }
  0xb4   : > { %6250 = vmatmul.mubr.bf16.gmra.mxu1 %v6603_v48  ;;  %6379 = vmatprep.subr.bf16.mxu0 %v6617_v5  ;;  %v7850_v48 = vld [vmem:[%s6723_s26 + $0xbc] sm:$0x1]  ;;  %v2534_v1 = vrot.slane %v2532_v60, 4  ;;  %v2546_v7 = vshll.u32 %v5515_v37, 16  ;;  %v7863_v43 = vrot.slane %v9465_v55, 4  ;;  %v7868_v25 = vrot.slane %v2514_v35, 5 }
  0xb5   : > { %9463 = vst [vmem:[#allocation12_spill] sm:$0xff] %v7850_v48  ;;  %6253 = vmatprep.mubr.bf16.mxu1 %v6606_v63  ;;  %6330 = vmatpush3.bf16.msra.mxu1 %v6612_v29  ;;  %v2501_v63 = vor.u32 %v7799_v18, %v7793_v38  ;;  %v2511_v29 = vor.u32 %v2510_v54, %v7826_v46  ;;  %v2556_v53 = vshrl.u32 %v7853_v47, 16  ;;  %v2538_v60 = vshll.u32 %v7850_v48, 16  ;;  %v6610_v38 = vld [vmem:[%s6723_s26 + $0x6c] sm:$0xff]   ;;  %v7888_v48 = vld [vmem:[%s6723_s26 + $0x18] sm:$0xe] }
  0xb6   : > { %6331 = vmatprep.subr.bf16.mxu1 %v6616_v49  ;;  %v2545_v37 = vrot.slane %v2543_v22, 4  ;;  %v2548_v11 = vrot.slane %v2546_v7, 5  ;;  %v7873_v55 = vrot.slane %v2552_v58, 5  ;;  %v2525_v18 = vor.u32 %v2524_v19, %v2521_v15  ;;  %v6624_v22 = vld [vmem:[%s9394_s1 + $0x140] sm:$0xff]   ;;  %v7885_v58 = vld [vmem:[%s6723_s26 + $0xc] sm:$0xe] }
  0xb7   : > { %6380 = vmatpush3.bf16.msra.mxu0 %v6617_v5  ;;  %v6625_v5 = vld [vmem:[%s9394_s1 + $0x180] sm:$0xff]   ;;  %v2535_v35 = vor.u32 %v2534_v1, %v7858_v14  ;;  %v2558_v54 = vrot.slane %v2556_v53, 4  ;;  %v2562_v47 = vshll.u32 %v7856_v51, 16  ;;  %v5543_v15 = vcombine.low %v2411_v21, %v2421_v57 }
  0xb8   : > { %6381 = vmatprep.subr.bf16.mxu0 %v6621_v52  ;;  %v2549_v7 = vor.u32 %v2548_v11, %v2545_v37  ;;  %v5544_v19 = vcombine.low %v2435_v9, %v2445_v13  ;;  %v7896_v1 = vrot.slane %v2501_v63, 4  ;;  %v7898_v11 = vrot.slane %v2511_v29, 4  ;;  %v6611_v9 = vld [vmem:[%s6723_s26 + $0x78] sm:$0xff]   ;;  %v6614_v37 = vld [vmem:[%s6723_s26 + $0x84] sm:$0xff]  }
  0xb9   : > { %6302 = vmatmul.mubr.bf16.gmra.mxu0 %v5541_v50  ;;  %6332 = vmatpush3.bf16.msra.mxu1 %v6616_v49  ;;  %v7893_v49 = vld [vmem:[%s9394_s1 + $0x238] sm:$0xff]   ;;  %v2559_v50 = vor.u32 %v2558_v54, %v7873_v55  ;;  %v7907_v53 = vrot.slane %v2535_v35, 4  ;;  %v7909_v21 = vrot.slane %v2538_v60, 5  ;;  %v7915_v63 = vrot.slane %v2562_v47, 5  ;;  %v5561_v60 = vld [vmem:[%s6723_s26 + $0x30] sm:$0xe] }
  0xba   : > { %6305 = vmatprep.mubr.bf16.mxu0 %v5542_v33  ;;  %6333 = vmatprep.subr.bf16.mxu1 %v6620_v24  ;;  %v7903_v33 = vld [vmem:[%s9394_s1 + $0x1f8] sm:$0xff]   ;;  %v7913_v13 = vrot.slane %v2549_v7, 4  ;;  %v2957_v29 = vrot.slane %v7335_v42, 5  ;;  %v9466_v35 = vld [vmem:[#allocation2_spill] sm:$0xff]  ;;  %v5577_v47 = vrot.slane %v5561_v60, 9  ;;  %v9469_v60 = vld [vmem:[#allocation3_spill] sm:$0xff] }
  0xbb   : > { %6382 = vmatpush3.bf16.msra.mxu0 %v6621_v52  ;;  %v7905_v52 = vrot.slane %v2525_v18, 4  ;;  %v9467_v7 = vld [vmem:[#allocation5_spill] sm:$0xff]  ;;  %v2978_v18 = vrot.slane %v7418_v0, 5  ;;  %v2493_v0 = vsel %vm6754_vm2, %v7810_v30, %v7791_v6  ;;  %v2992_v30 = vrot.slane %v7509_v41, 5 }
  0xbc   : > { %6254 = vmatmul.mubr.bf16.gmra.mxu1 %v6607_v2  ;;  %6383 = vmatprep.subr.bf16.mxu0 %v6625_v5  ;;  %v2975_v57 = vrot.slane %v9467_v7, 5  ;;  %v9468_v2 = vld [vmem:[#allocation4_spill] sm:$0xff] }
  0xbd   : > { %6257 = vmatprep.mubr.bf16.mxu1 %v6610_v38  ;;  %6334 = vmatpush3.bf16.msra.mxu1 %v6620_v24  ;;  %v7920_v24 = vrot.slane %v2559_v50, 4  ;;  %v2961_v38 = vrot.slane %v7352_v61, 5  ;;  %v2459_v50 = vsel %vm6754_vm2, %v7780_v12, %v7712_v36  ;;  %v2982_v54 = vrot.slane %v9468_v2, 5  ;;  %v5562_v12 = vld [vmem:[%s6723_s26 + $0x3c] sm:$0xe] }
  0xbe   : > { %6335 = vmatprep.subr.bf16.mxu1 %v6624_v22  ;;  %v7942_v7 = vsel %vm7065_vm5, %v5577_v47, %v2975_v57  ;;  %v2977_v36 = vrot.slane %v2975_v57, 4  ;;  %v5578_v2 = vrot.slane %v5562_v12, 9  ;;  %v6615_v47 = vld [vmem:[%s6723_s26 + $0x90] sm:$0xff]   ;;  %v2999_v12 = vrot.slane %v7529_v34, 5 }
  0xbf   : > { %6384 = vmatpush3.bf16.msra.mxu0 %v6625_v5  ;;  %v2469_v5 = vsel %vm6754_vm2, %v7789_v28, %v7782_v59  ;;  %v2483_v59 = vsel %vm6754_vm2, %v7808_v40, %v7755_v20  ;;  %v2984_v28 = vrot.slane %v2982_v54, 4  ;;  %v2989_v20 = vrot.slane %v7468_v39, 5 }
  0xc0   : > { %6465 = vmatprep.subr.bf16.mxu0 %v7893_v49  ;;  %v7956_v57 = vsel %vm7065_vm5, %v2977_v36, %v2978_v18  ;;  %v5546_v18 = vcombine.low %v2483_v59, %v2493_v0  ;;  %v7971_v39 = vsel %vm7065_vm5, %v5578_v2, %v2982_v54  ;;  %v2507_v36 = vsel %vm6754_vm2, %v7896_v1, %v7826_v46  ;;  %v5564_v54 = vld [vmem:[%s6723_s26 + $0x54] sm:$0xe] }
  0xc1   : > { %6306 = vmatmul.mubr.bf16.gmra.mxu0 %v5543_v15  ;;  %6336 = vmatpush3.bf16.msra.mxu1 %v6624_v22  ;;  %v2971_v15 = vrot.slane %v9469_v60, 5  ;;  %v2985_v22 = vrot.slane %v7447_v45, 5  ;;  %v5609_v40 = vcombine.low %v7942_v7, %v7956_v57  ;;  %v5563_v45 = vld [vmem:[%s6723_s26 + $0x48] sm:$0xe]  ;;  %v2517_v46 = vsel %vm6754_vm2, %v7898_v11, %v7868_v25  ;;  %v6635_v7 = vld [vmem:[%s6723_s26 + $0x54] sm:$0xff]  }
  0xc2   : > { %6309 = vmatprep.mubr.bf16.mxu0 %v5544_v19  ;;  %6417 = vmatprep.subr.bf16.mxu1 %v7903_v33  ;;  %v5545_v19 = vcombine.low %v2459_v50, %v2469_v5  ;;  %v2991_v50 = vrot.slane %v2989_v20, 4  ;;  %v6618_v5 = vld [vmem:[%s6723_s26 + $0x9c] sm:$0xff]   ;;  %v3003_v2 = vrot.slane %v7533_v31, 5  ;;  %v2531_v34 = vsel %vm6754_vm2, %v7905_v52, %v7858_v14 }
  0xc3   : > { %v7963_v6 = vsel %vm7065_vm5, %v2984_v28, %v2985_v22  ;;  %v5580_v28 = vrot.slane %v5564_v54, 9  ;;  %v5565_v22 = vld [vmem:[%s6723_s26 + $0x60] sm:$0xe]  ;;  %v3006_v25 = vrot.slane %v7581_v16, 5  ;;  %v2541_v11 = vsel %vm6754_vm2, %v7907_v53, %v7909_v21 }
  0xc4   : > { %6258 = vmatmul.mubr.bf16.gmra.mxu1 %v6611_v9  ;;  %v2996_v9 = vrot.slane %v7503_v10, 5  ;;  %v5610_v41 = vcombine.low %v7971_v39, %v7963_v6  ;;  %v7986_v59 = vsel %vm7065_vm5, %v2991_v50, %v2992_v30  ;;  %v3010_v14 = vrot.slane %v7573_v8, 5  ;;  %v5791_v6 = vld [vmem:[%s6723_s26 + $0x24] sm:$0xe] }
  0xc5   : > { %6261 = vmatprep.mubr.bf16.mxu1 %v6614_v37  ;;  %v5579_v37 = vrot.slane %v5563_v45, 9  ;;  %v3005_v45 = vrot.slane %v3003_v2, 4  ;;  %v5547_v52 = vcombine.low %v2507_v36, %v2517_v46  ;;  %v3013_v8 = vrot.slane %v7594_v62, 5  ;;  %v5567_v36 = vld [vmem:[%s6723_s26 + $0x78] sm:$0xe] }
  0xc6   : > { %v2998_v0 = vrot.slane %v2996_v9, 4  ;;  %v8013_v31 = vsel %vm7065_vm5, %v5580_v28, %v2996_v9  ;;  %v3012_v9 = vrot.slane %v3010_v14, 4  ;;  %v3017_v54 = vrot.slane %v7598_v44, 5 }
  0xc7   : > { %v7982_v10 = vsel %vm7065_vm5, %v5579_v37, %v2989_v20  ;;  %v5581_v20 = vrot.slane %v5565_v22, 9  ;;  %v8025_v53 = vsel %vm7065_vm5, %v3005_v45, %v3006_v25  ;;  %v5548_v37 = vcombine.low %v2531_v34, %v2541_v11 }
  0xc8   : > { %v8041_v46 = vsel %vm7065_vm5, %v3012_v9, %v3013_v8  ;;  %v5583_v62 = vrot.slane %v5567_v36, 9  ;;  %v3024_v28 = vrot.slane %v7641_v3, 5  ;;  %v3019_v44 = vrot.slane %v3017_v54, 4  ;;  %v6626_v8 = vld [vmem:[%s6723_s26 + $0x18] sm:$0xff]   ;;  %v9474_v36 = vld [vmem:[#allocation8_spill] sm:$0xff] }
  0xc9   : > { %6310 = vmatmul.mubr.bf16.gmra.mxu0 %v5545_v19  ;;  %v8004_v19 = vsel %vm7065_vm5, %v2998_v0, %v2999_v12  ;;  %v8020_v16 = vsel %vm7065_vm5, %v5581_v20, %v3003_v2  ;;  %v3020_v0 = vrot.slane %v7605_v26, 5  ;;  %v3027_v26 = vrot.slane %v7667_v17, 5  ;;  %v5568_v20 = vld [vmem:[%s6723_s26 + $0x84] sm:$0xe] }
  0xca   : > { %6313 = vmatprep.mubr.bf16.mxu0 %v5546_v18  ;;  %v5566_v18 = vld [vmem:[%s6723_s26 + $0x6c] sm:$0xe]  ;;  %v2555_v2 = vsel %vm6754_vm2, %v7913_v13, %v7873_v55  ;;  %v8053_v34 = vsel %vm7065_vm5, %v5583_v62, %v3017_v54  ;;  %v2565_v3 = vsel %vm6754_vm2, %v7920_v24, %v7915_v63  ;;  %v5584_v25 = vrot.slane %v5568_v20, 9  ;;  %v9472_v63 = vld [vmem:[#allocation6_spill] sm:$0xff] }
  0xcb   : > { %v5582_v21 = vrot.slane %v5566_v18, 9  ;;  %v8062_v17 = vsel %vm7065_vm5, %v3019_v44, %v3020_v0  ;;  %v3026_v11 = vrot.slane %v3024_v28, 4  ;;  %v9470_v45 = vrot.slane %v7261_v32, 5  ;;  %v5569_v18 = vld [vmem:[%s6723_s26 + $0x90] sm:$0xe]  ;;  %v6638_v62 = vld [vmem:[%s6723_s26 + $0x60] sm:$0xff]  }
  0xcc   : > { %6262 = vmatmul.mubr.bf16.gmra.mxu1 %v6615_v47  ;;  %v6619_v47 = vld [vmem:[%s6723_s26 + $0xa8] sm:$0xff]   ;;  %v9471_v55 = vrot.slane %v7885_v58, 9  ;;  %v3031_v24 = vrot.slane %v9472_v63, 5  ;;  %v8079_v32 = vsel %vm7065_vm5, %v5584_v25, %v3024_v28  ;;  %v3038_v54 = vrot.slane %v9474_v36, 5 }
  0xcd   : > { %6265 = vmatprep.mubr.bf16.mxu1 %v6618_v5  ;;  %v6622_v5 = vld [vmem:[%s6723_s26 + $0xb4] sm:$0xff]   ;;  %v8037_v12 = vsel %vm7065_vm5, %v5582_v21, %v3010_v14  ;;  %v5560_v14 = vld [vmem:[%s6723_s26 + $0x24] sm:$0xe]  ;;  %v9473_v21 = vld [vmem:[#allocation7_spill] sm:$0xff]  ;;  %v8083_v58 = vsel %vm7065_vm5, %v3026_v11, %v3027_v26  ;;  %v5549_v0 = vcombine.low %v2555_v2, %v2565_v3  ;;  %v2958_v28 = vsel %vm7065_vm5, %v7863_v43, %v2957_v29 }
  0xce   : > { %v2955_v13 = vsel %vm7065_vm5, %v9471_v55, %v9470_v45  ;;  %v3034_v9 = vrot.slane %v9473_v21, 5  ;;  %v3033_v44 = vrot.slane %v3031_v24, 4  ;;  %v6623_v45 = vld [vmem:[%s6723_s26 + $0xc0] sm:$0xff]   ;;  %v2963_v26 = vrot.slane %v2961_v38, 4  ;;  %v5570_v2 = vld [vmem:[%s6723_s26 + $0x9c] sm:$0xe] }
  0xcf   : > { %v3040_v3 = vrot.slane %v3038_v54, 4  ;;  %v5586_v11 = vrot.slane %v5570_v2, 9  ;;  %v9476_v55 = vld [vmem:[#allocation10_spill] sm:$0xff]  ;;  %v5571_v63 = vld [vmem:[%s6723_s26 + $0xa8] sm:$0xe]  ;;  %v5606_v21 = vcombine.low %v2955_v13, %v2958_v28  ;;  %v9480_v28 = vrot.slane %v7888_v48, 9 }
  0xd0   : > { %v8104_v25 = vsel %vm7065_vm5, %v3033_v44, %v3034_v9  ;;  %v3045_v42 = vrot.slane %v9476_v55, 5  ;;  %v8227_v43 = vld [vmem:[%s6723_s26 + $0x34] sm:$0xf] }
  0xd1   : > { %6314 = vmatmul.mubr.bf16.gmra.mxu0 %v5547_v52  ;;  %v8117_v9 = vsel %vm7065_vm5, %v5586_v11, %v3038_v54  ;;  %v5572_v54 = vld [vmem:[%s6723_s26 + $0xb4] sm:$0xe]  ;;  %v3879_v39 = vshll.u32 %v8227_v43, 16 }
  0xd2   : > { %6317 = vmatprep.mubr.bf16.mxu0 %v5548_v37  ;;  %v5585_v37 = vrot.slane %v5569_v18, 9  ;;  %v5576_v18 = vrot.slane %v5560_v14, 9  ;;  %v3047_v36 = vrot.slane %v3045_v42, 4  ;;  %v9477_v14 = vrot.slane %v9466_v35, 5 }
  0xd3   : > { %v5588_v55 = vrot.slane %v5572_v54, 9 }
  0xd4   : > { %6266 = vmatmul.mubr.bf16.gmra.mxu1 %v6619_v47  ;;  %v9475_v47 = vld [vmem:[#allocation9_spill] sm:$0xff]  ;;  %v2970_v44 = vrot.slane %v9477_v14, 4  ;;  %v9482_v61 = vmov %v9477_v14  ;;  %v3062_v14 = vrot.slane %v7856_v51, 5  ;;  %v5708_v51 = vld [vmem:[%s6723_s26 + $0x30] sm:$0xf] }
  0xd5   : > { %6269 = vmatprep.mubr.bf16.mxu1 %v6622_v5  ;;  %v3041_v20 = vrot.slane %v9475_v47, 5  ;;  %v8099_v5 = vsel %vm7065_vm5, %v5585_v37, %v3031_v24  ;;  %v3048_v24 = vrot.slane %v7775_v4, 5  ;;  %v5587_v37 = vrot.slane %v5571_v63, 9 }
  0xd6   : > { %v9481_v63 = vrot.slane %v7366_v23, 5  ;;  %v2969_v48 = vsel %vm7065_vm5, %v5576_v18, %v9482_v61  ;;  %v2972_v23 = vsel %vm7065_vm5, %v2970_v44, %v2971_v15  ;;  %v8197_v61 = vld [vmem:[%s6723_s26 + $0x28] sm:$0xf] }
  0xd7   : > { %v8111_v29 = vsel %vm7065_vm5, %v3040_v3, %v3041_v20  ;;  %v9478_v20 = vld [vmem:[#allocation11_spill] sm:$0xff]  ;;  %v8126_v4 = vsel %vm7065_vm5, %v5587_v37, %v3045_v42  ;;  %v8130_v13 = vsel %vm7065_vm5, %v3047_v36, %v3048_v24  ;;  %v2962_v3 = vsel %vm7065_vm5, %v9480_v28, %v2961_v38  ;;  %v5573_v37 = vld [vmem:[%s6723_s26 + $0xc0] sm:$0xe]  ;;  %v9483_v38 = vld [vmem:[#allocation13_spill] sm:$0xff] }
  0xd8   : > { %v3052_v2 = vrot.slane %v9478_v20, 5  ;;  %v2965_v24 = vsel %vm7065_vm5, %v2963_v26, %v9481_v63  ;;  %v3059_v36 = vrot.slane %v9483_v38, 5  ;;  %v5589_v18 = vrot.slane %v5573_v37, 9  ;;  %v6633_v20 = vld [vmem:[%s9394_s1 + $0x230] sm:$0xff]   ;;  %v5705_v63 = vld [vmem:[%s6723_s26 + $0x24] sm:$0xf] }
  0xd9   : > { %6318 = vmatmul.mubr.bf16.gmra.mxu0 %v5549_v0  ;;  %v5607_v15 = vcombine.low %v2962_v3, %v2965_v24  ;;  %v5608_v54 = vcombine.low %v2969_v48, %v2972_v23  ;;  %v6632_v28 = vld [vmem:[%s9394_s1 + $0x1f0] sm:$0xff]   ;;  %v6631_v48 = vld [vmem:[%s6723_s26 + $0x3c] sm:$0xff]   ;;  %v3846_v37 = vshrl.u32 %v5705_v63, 16  ;;  %v6634_v38 = vld [vmem:[%s6723_s26 + $0x48] sm:$0xff]   ;;  %v3855_v23 = vshll.u32 %v8197_v61, 16 }
  0xda   : > { %6385 = vmatprep.mubr.bf16.mxu0 %v6626_v8  ;;  %v9479_v8 = vld [vmem:[#allocation12_spill] sm:$0xff]  ;;  %v3054_v42 = vrot.slane %v3052_v2, 4  ;;  %v8161_v26 = vsel %vm7065_vm5, %v5588_v55, %v3052_v2  ;;  %v3061_v60 = vrot.slane %v3059_v36, 4  ;;  %v8174_v44 = vsel %vm7065_vm5, %v5589_v18, %v3059_v36  ;;  %v5702_v2 = vld [vmem:[%s6723_s26 + $0x18] sm:$0xf]  ;;  %v6637_v55 = vld [vmem:[%s9394_s1 + $0x228] sm:$0xff]  }
  0xdb   : > { %v3055_v0 = vrot.slane %v9479_v8, 5  ;;  %v3825_v24 = vshll.u32 %v5702_v2, 16  ;;  %v6636_v36 = vld [vmem:[%s9394_s1 + $0x1e8] sm:$0xff]   ;;  %v5704_v18 = vld [vmem:[%s6723_s26 + $0x20] sm:$0x1]  ;;  %v3848_v11 = vrot.slane %v3846_v37, 4 }
  0xdc   : > { %6270 = vmatmul.mubr.bf16.gmra.mxu1 %v6623_v45  ;;  %v6627_v45 = vld [vmem:[%s6723_s26 + $0x24] sm:$0xff]   ;;  %v8179_v8 = vsel %vm7065_vm5, %v3061_v60, %v3062_v14  ;;  %v3849_v14 = vshll.u32 %v5705_v63, 16  ;;  %v8217_v63 = vld [vmem:[%s6723_s26 + $0x2c] sm:$0x1]  ;;  %v3870_v37 = vshrl.u32 %v5708_v51, 16 }
  0xdd   : > { %6337 = vmatprep.mubr.bf16.mxu1 %v5606_v21  ;;  %v6630_v21 = vld [vmem:[%s6723_s26 + $0x30] sm:$0xff]   ;;  %v8165_v35 = vsel %vm7065_vm5, %v3054_v42, %v3055_v0  ;;  %v8182_v0 = vld [vmem:[%s6723_s26 + $0x1c] sm:$0xf]  ;;  %v3822_v42 = vshrl.u32 %v5702_v2, 16 }
  0xde   : > { %v4593_v3 = vrot.slane %v8182_v0, 5  ;;  %v3851_v47 = vrot.slane %v3849_v14, 5 }
  0xdf   : > { %v3824_v60 = vrot.slane %v3822_v42, 4  ;;  %v6640_v42 = vld [vmem:[%s9394_s1 + $0x1e0] sm:$0xff]  }
  0xe1   : > { %6386 = vmatmul.mubr.bf16.vlgmr.msra.gmra.mxu0 %v6627_v45  ;;  %v3835_v45 = vshrl.u32 %v8182_v0, 16 }
  0xe2   : > { %6466 = vmatpush3.bf16.msra.mxu0 %v7893_v49  ;;  %6389 = vmatprep.mubr.bf16.mxu0 %v6630_v21  ;;  %v3831_v49 = vshll.u32 %v8182_v0, 16  ;;  %v3859_v21 = vshrl.u32 %v8197_v61, 16 }
  0xe3   : > { %6467 = vmatprep.subr.bf16.mxu0 %v6633_v20 }
  0xe4   : > { %6338 = vmatmul.mubr.bf16.vlgmr.msra.gmra.mxu1 %v5607_v15  ;;  %v5790_v15 = vld [vmem:[%s6723_s26 + $0x18] sm:$0xe]  ;;  %v8212_v2 = vrot.slane %v3831_v49, 5  ;;  %v3841_v49 = vshll.u32 %v5704_v18, 16  ;;  %v3861_v0 = vrot.slane %v3859_v21, 4 }
  0xe5   : > { %6418 = vmatpush3.bf16.msra.mxu1 %v7903_v33  ;;  %6341 = vmatprep.mubr.bf16.mxu1 %v5608_v54  ;;  %v6641_v33 = vld [vmem:[%s9394_s1 + $0x220] sm:$0xff]   ;;  %v3837_v54 = vrot.slane %v3835_v45, 4  ;;  %v8224_v45 = vrot.slane %v3855_v23, 5  ;;  %v6645_v23 = vld [vmem:[%s9394_s1 + $0x218] sm:$0xff]  }
  0xe6   : > { %6419 = vmatprep.subr.bf16.mxu1 %v6632_v28  ;;  %6468 = vmatpush3.bf16.msra.mxu0 %v6633_v20  ;;  %v3827_v20 = vrot.slane %v3825_v24, 5 }
  0xe7   : > { %6469 = vmatprep.subr.bf16.mxu0 %v6637_v55  ;;  %v3838_v21 = vor.u32 %v3837_v54, %v8212_v2  ;;  %v3862_v54 = vor.u32 %v3861_v0, %v8224_v45 }
  0xe9   : > { %6390 = vmatmul.mubr.bf16.gmra.mxu0 %v6631_v48  ;;  %6420 = vmatpush3.bf16.msra.mxu1 %v6632_v28  ;;  %v5806_v48 = vrot.slane %v5790_v15, 9  ;;  %v4596_v28 = vrot.slane %v5704_v18, 5  ;;  %v4595_v18 = vrot.slane %v4593_v3, 4  ;;  %v3865_v15 = vshll.u32 %v8217_v63, 16 }
  0xea   : > { %6393 = vmatprep.mubr.bf16.mxu0 %v6634_v38  ;;  %6421 = vmatprep.subr.bf16.mxu1 %v6636_v36  ;;  %v3873_v38 = vshll.u32 %v5708_v51, 16  ;;  %v4600_v51 = vrot.slane %v8197_v61, 5  ;;  %v3883_v61 = vshrl.u32 %v8227_v43, 16 }
  0xeb   : > { %6470 = vmatpush3.bf16.msra.mxu0 %v6637_v55  ;;  %v3828_v55 = vor.u32 %v3827_v20, %v3824_v60  ;;  %v6644_v60 = vld [vmem:[%s9394_s1 + $0x1d8] sm:$0xff]   ;;  %v8250_v20 = vrot.slane %v3841_v49, 5  ;;  %v6649_v49 = vld [vmem:[%s9394_s1 + $0x210] sm:$0xff]  }
  0xec   : > { %v8222_v24 = vpop.f32.mrf.mxu0  ;;  %6342 = vmatmul.mubr.bf16.gmra.mxu1 %v5609_v40  ;;  %6471 = vmatprep.subr.bf16.mxu0 %v6641_v33  ;;  %v8232_v14 = vpop.f32.mrf.mxu1  ;;  %v3852_v40 = vor.u32 %v3851_v47, %v3848_v11  ;;  %v3872_v47 = vrot.slane %v3870_v37, 4  ;;  %v3875_v11 = vrot.slane %v3873_v38, 5  ;;  %v8277_v37 = vld [vmem:[%s6723_s26 + $0x40] sm:$0xf]  ;;  %v4602_v50 = vrot.slane %v4600_v51, 4 }
  0xed   : > { %9484 = vst [vmem:[#allocation2_spill] sm:$0xff] %v8232_v14  ;;  %6345 = vmatprep.mubr.bf16.mxu1 %v5610_v41  ;;  %6422 = vmatpush3.bf16.msra.mxu1 %v6636_v36  ;;  %v8257_v41 = vsel %vm7065_vm5, %v5806_v48, %v4593_v3  ;;  %v5711_v36 = vld [vmem:[%s6723_s26 + $0x3c] sm:$0xf]  ;;  %v8266_v0 = vrot.slane %v3828_v55, 4  ;;  %v8272_v3 = vsel %vm7065_vm5, %v4595_v18, %v4596_v28  ;;  %v8274_v48 = vrot.slane %v3865_v15, 5  ;;  %v6648_v55 = vld [vmem:[%s9394_s1 + $0x1d0] sm:$0xff]  }
  0xee   : > { %v8243_v57 = vpop.f32.mrf.mxu0  ;;  %6423 = vmatprep.subr.bf16.mxu1 %v6640_v42  ;;  %v8261_v52 = vpop.f32.mrf.mxu1  ;;  %v8284_v22 = vrot.slane %v3852_v40, 4  ;;  %v4603_v28 = vrot.slane %v8217_v63, 5  ;;  %v3863_v18 = vrot.slane %v3862_v54, 4  ;;  %v8288_v15 = vld [vmem:[%s6723_s26 + $0x38] sm:$0x1]  ;;  %v3897_v30 = vshll.u32 %v5711_v36, 16 }
  0xef   : > { %6472 = vmatpush3.bf16.msra.mxu0 %v6641_v33  ;;  %9485 = vst [vmem:[#allocation5_spill] sm:$0xff] %v8261_v52  ;;  %v8268_v33 = vrot.slane %v3838_v21, 4  ;;  %v5807_v21 = vrot.slane %v5791_v6, 9  ;;  %v3876_v1 = vor.u32 %v3875_v11, %v3872_v47  ;;  %v8292_v52 = vrot.slane %v3883_v61, 4  ;;  %v5792_v40 = vld [vmem:[%s6723_s26 + $0x30] sm:$0xe] }
  0xf0   : > { %6473 = vmatprep.subr.bf16.mxu0 %v6645_v23  ;;  %v8279_v38 = vpop.f32.mrf.mxu0  ;;  %v3903_v6 = vshll.u32 %v8277_v37, 16  ;;  %v3907_v63 = vshrl.u32 %v8277_v37, 16  ;;  %v8300_v54 = vpop.f32.mrf.mxu1  ;;  %v9488_v11 = vcombine.low %v8013_v31, %v8004_v19  ;;  %v6639_v61 = vld [vmem:[%s6723_s26 + $0x6c] sm:$0xff]   ;;  %v8333_v19 = vsel %vm7065_vm5, %v4602_v50, %v4603_v28  ;;  %v8351_v28 = vld [vmem:[%s6723_s26 + $0x44] sm:$0x1] }
  0xf1   : > { %6394 = vmatmul.mubr.bf16.gmra.mxu0 %v6635_v7  ;;  %6424 = vmatpush3.bf16.msra.mxu1 %v6640_v42  ;;  %v8290_v7 = vrot.slane %v3879_v39, 5  ;;  %v3894_v42 = vshrl.u32 %v5711_v36, 16  ;;  %9487 = vst [vmem:[#allocation4_spill] sm:$0xff] %v8300_v54  ;;  %v3834_v39 = vsel %vm6754_vm2, %v8266_v0, %v8212_v2  ;;  %v3844_v47 = vsel %vm6754_vm2, %v8268_v33, %v8250_v20  ;;  %v6642_v36 = vld [vmem:[%s6723_s26 + $0x78] sm:$0xff]   ;;  %v8344_v33 = vld [vmem:[%s6723_s26 + $0x4c] sm:$0xf] }
  0xf2   : > { %6397 = vmatprep.mubr.bf16.mxu0 %v6638_v62  ;;  %6425 = vmatprep.subr.bf16.mxu1 %v6644_v60  ;;  %v9486_v62 = vcombine.low %v7982_v10, %v7986_v59  ;;  %v4607_v59 = vrot.slane %v8227_v43, 5  ;;  %v3858_v2 = vsel %vm6754_vm2, %v8284_v22, %v8224_v45  ;;  %v8329_v20 = vsel %vm7065_vm5, %v5807_v21, %v4600_v51  ;;  %v5714_v43 = vld [vmem:[%s6723_s26 + $0x48] sm:$0xf]  ;;  %v8355_v54 = vpop.f32.mrf.mxu1  ;;  %v5793_v14 = vld [vmem:[%s6723_s26 + $0x3c] sm:$0xe] }
  0xf3   : > { %6474 = vmatpush3.bf16.msra.mxu0 %v6645_v23  ;;  %v6653_v23 = vld [vmem:[%s9394_s1 + $0x208] sm:$0xff]   ;;  %v3889_v31 = vshll.u32 %v8288_v15, 16  ;;  %v3868_v22 = vsel %vm6754_vm2, %v3863_v18, %v8274_v48  ;;  %v5808_v45 = vrot.slane %v5792_v40, 9  ;;  %v3896_v0 = vrot.slane %v3894_v42, 4  ;;  %9490 = vst [vmem:[#allocation6_spill] sm:$0xff] %v8355_v54  ;;  %v6656_v42 = vld [vmem:[%s9394_s1 + $0x1c0] sm:$0xff]  }
  0xf4   : > { %6346 = vmatmul.mubr.bf16.gmra.mxu1 %v9486_v62  ;;  %6475 = vmatprep.subr.bf16.mxu0 %v6649_v49  ;;  %v8321_v62 = vpop.f32.mrf.mxu0  ;;  %v3899_v51 = vrot.slane %v3897_v30, 5  ;;  %v8346_v50 = vrot.slane %v3876_v1, 4  ;;  %v3886_v21 = vor.u32 %v8292_v52, %v8290_v7  ;;  %v3909_v10 = vrot.slane %v3907_v63, 4  ;;  %v6657_v30 = vld [vmem:[%s9394_s1 + $0x200] sm:$0xff]  }
  0xf5   : > { %6349 = vmatprep.mubr.bf16.mxu1 %v9488_v11  ;;  %6426 = vmatpush3.bf16.msra.mxu1 %v6644_v60  ;;  %9489 = vst [vmem:[#allocation3_spill] sm:$0xff] %v8321_v62  ;;  %v6652_v60 = vld [vmem:[%s9394_s1 + $0x1c8] sm:$0xff]   ;;  %v8353_v11 = vrot.slane %v3903_v6, 5  ;;  %v4609_v48 = vrot.slane %v4607_v59, 4  ;;  %v3918_v1 = vshrl.u32 %v5714_v43, 16  ;;  %v3921_v18 = vshll.u32 %v5714_v43, 16 }
  0xf6   : > { %6427 = vmatprep.subr.bf16.mxu1 %v6648_v55  ;;  %v8366_v40 = vcombine.low %v3834_v39, %v3844_v47  ;;  %v3931_v63 = vshrl.u32 %v8344_v33, 16  ;;  %v8374_v43 = vrot.slane %v3889_v31, 5  ;;  %v3913_v54 = vshll.u32 %v8351_v28, 16  ;;  %v5717_v39 = vld [vmem:[%s6723_s26 + $0x54] sm:$0xf]  ;;  %v6643_v6 = vld [vmem:[%s6723_s26 + $0x84] sm:$0xff]  }
  0xf7   : > { %6476 = vmatpush3.bf16.msra.mxu0 %v6649_v49  ;;  %v4610_v49 = vrot.slane %v8288_v15, 5  ;;  %v8361_v52 = vpop.f32.mrf.mxu0  ;;  %v3927_v15 = vshll.u32 %v8344_v33, 16  ;;  %v4614_v31 = vrot.slane %v8277_v37, 5  ;;  %v9494_v37 = vcombine.low %v8037_v12, %v8041_v46  ;;  %v6646_v47 = vld [vmem:[%s6723_s26 + $0x90] sm:$0xff]  }
  0xf8   : > { %6477 = vmatprep.subr.bf16.mxu0 %v6653_v23  ;;  %9491 = vst [vmem:[#allocation7_spill] sm:$0xff] %v8361_v52 }
  0xf9   : > { %6398 = vmatmul.mubr.bf16.gmra.mxu0 %v6639_v61  ;;  %6428 = vmatpush3.bf16.msra.mxu1 %v6648_v55  ;;  %v8372_v61 = vcombine.low %v3858_v2, %v3868_v22  ;;  %v3900_v55 = vor.u32 %v3899_v51, %v3896_v0  ;;  %v3910_v2 = vor.u32 %v3909_v10, %v8353_v11  ;;  %v8390_v22 = vld [vmem:[%s6723_s26 + $0x58] sm:$0xf]  ;;  %v8397_v51 = vrot.slane %v3886_v21, 4 }
  0xfa   : > { %6401 = vmatprep.mubr.bf16.mxu0 %v6642_v36  ;;  %6429 = vmatprep.subr.bf16.mxu1 %v6652_v60  ;;  %v8385_v36 = vsel %vm7065_vm5, %v5808_v45, %v4607_v59  ;;  %v9492_v0 = vcombine.low %v8020_v16, %v8025_v53  ;;  %v8401_v59 = vsel %vm7065_vm5, %v4609_v48, %v4610_v49  ;;  %v3920_v45 = vrot.slane %v3918_v1, 4  ;;  %v8408_v16 = vpop.f32.mrf.mxu0  ;;  %v5716_v1 = vld [vmem:[%s6723_s26 + $0x50] sm:$0x1] }
  0xfb   : > { %6478 = vmatpush3.bf16.msra.mxu0 %v6653_v23  ;;  %v8395_v23 = vpop.f32.mrf.mxu1  ;;  %v3923_v10 = vrot.slane %v3921_v18, 5  ;;  %9495 = vst [vmem:[#allocation9_spill] sm:$0xff] %v8408_v16  ;;  %v5809_v53 = vrot.slane %v5793_v14, 9  ;;  %v3933_v21 = vrot.slane %v3931_v63, 4  ;;  %v3901_v48 = vrot.slane %v3900_v55, 4 }
  0xfc   : > { %6350 = vmatmul.mubr.bf16.gmra.mxu1 %v9492_v0  ;;  %9493 = vst [vmem:[#allocation8_spill] sm:$0xff] %v8395_v23  ;;  %6479 = vmatprep.subr.bf16.mxu0 %v6657_v30  ;;  %v8410_v0 = vrot.slane %v3927_v15, 5  ;;  %v3942_v23 = vshrl.u32 %v5717_v39, 16  ;;  %v3915_v49 = vrot.slane %v3913_v54, 5  ;;  %v3945_v18 = vshll.u32 %v5717_v39, 16  ;;  %v8426_v39 = vpop.f32.mrf.mxu0 }
  0xfd   : > { %6353 = vmatprep.mubr.bf16.mxu1 %v9494_v37  ;;  %6430 = vmatpush3.bf16.msra.mxu1 %v6652_v60  ;;  %v3951_v52 = vshll.u32 %v8390_v22, 16  ;;  %v3911_v12 = vrot.slane %v3910_v2, 4  ;;  %v4616_v46 = vrot.slane %v4614_v31, 4  ;;  %v4617_v37 = vrot.slane %v8351_v28, 5  ;;  %v8416_v60 = vpop.f32.mrf.mxu1  ;;  %v5720_v55 = vld [vmem:[%s6723_s26 + $0x60] sm:$0xf] }
  0xfe   : > { %6431 = vmatprep.subr.bf16.mxu1 %v6656_v42  ;;  %v3955_v14 = vshrl.u32 %v8390_v22, 16  ;;  %9496 = vst [vmem:[#allocation10_spill] sm:$0xff] %v8416_v60  ;;  %v3892_v15 = vsel %vm6754_vm2, %v8397_v51, %v8374_v43  ;;  %v3924_v63 = vor.u32 %v3923_v10, %v3920_v45  ;;  %v3934_v28 = vor.u32 %v3933_v21, %v8410_v0  ;;  %v5794_v60 = vld [vmem:[%s6723_s26 + $0x48] sm:$0xe] }
  0xff   : > { %6480 = vmatpush3.bf16.msra.mxu0 %v6657_v30  ;;  %v4621_v30 = vrot.slane %v8344_v33, 5  ;;  %v3937_v2 = vshll.u32 %v5716_v1, 16  ;;  %v3944_v16 = vrot.slane %v3942_v23, 4  ;;  %v3947_v62 = vrot.slane %v3945_v18, 5  ;;  %v8451_v10 = vpop.f32.mrf.mxu1 }
 0x100   : > { %v3906_v43 = vsel %vm6754_vm2, %v3901_v48, %v8353_v11  ;;  %v8435_v33 = vsel %vm7065_vm5, %v5809_v53, %v4614_v31  ;;  %v3916_v51 = vsel %vm6754_vm2, %v3911_v12, %v3915_v49  ;;  %v8443_v23 = vsel %vm7065_vm5, %v4616_v46, %v4617_v37  ;;  %9498 = vst [vmem:[#allocation11_spill] sm:$0xff] %v8451_v10  ;;  %v8454_v49 = vld [vmem:[%s6723_s26 + $0x64] sm:$0xf]  ;;  %v6647_v12 = vld [vmem:[%s6723_s26 + $0x9c] sm:$0xff]   ;;  %v8460_v46 = vpop.f32.mrf.mxu0 }
 0x101   : > { %6402 = vmatmul.mubr.bf16.gmra.mxu0 %v6643_v6  ;;  %6432 = vmatpush3.bf16.msra.mxu1 %v6656_v42  ;;  %v8437_v6 = vrot.slane %v3951_v52, 5  ;;  %v3957_v42 = vrot.slane %v3955_v14, 4  ;;  %v3966_v45 = vshrl.u32 %v5720_v55, 16  ;;  %v3969_v11 = vshll.u32 %v5720_v55, 16  ;;  %v6650_v55 = vld [vmem:[%s6723_s26 + $0xa8] sm:$0xff]  }
 0x102   : > { %6405 = vmatprep.mubr.bf16.mxu0 %v6646_v47  ;;  %v8446_v47 = vld [vmem:[%s6723_s26 + $0x5c] sm:$0x1]  ;;  %v9497_v31 = vcombine.low %v8053_v34, %v8062_v17  ;;  %v3925_v52 = vrot.slane %v3924_v63, 4  ;;  %v5810_v53 = vrot.slane %v5794_v60, 9  ;;  %v4623_v21 = vrot.slane %v4621_v30, 4 }
 0x103   : > { %v4624_v48 = vrot.slane %v5716_v1, 5  ;;  %v9499_v18 = vcombine.low %v8079_v32, %v8083_v58  ;;  %v3935_v37 = vrot.slane %v3934_v28, 4  ;;  %v3939_v14 = vrot.slane %v3937_v2, 5  ;;  %v5795_v63 = vld [vmem:[%s6723_s26 + $0x54] sm:$0xe]  ;;  %v8478_v28 = vpop.f32.mrf.mxu1 }
 0x104   : > { %6354 = vmatmul.mubr.bf16.gmra.mxu1 %v9497_v31  ;;  %v3948_v34 = vor.u32 %v3947_v62, %v3944_v16  ;;  %v4628_v17 = vrot.slane %v8390_v22, 5  ;;  %v3958_v60 = vor.u32 %v3957_v42, %v8437_v6  ;;  %v3961_v1 = vshll.u32 %v8446_v47, 16  ;;  %9501 = vst [vmem:[#allocation12_spill] sm:$0xff] %v8478_v28  ;;  %v5796_v62 = vld [vmem:[%s6723_s26 + $0x60] sm:$0xe] }
 0x105   : > { %6357 = vmatprep.mubr.bf16.mxu1 %v9499_v18  ;;  %v3968_v31 = vrot.slane %v3966_v45, 4  ;;  %v3971_v54 = vrot.slane %v3969_v11, 5  ;;  %v9500_v32 = vsel %vm6754_vm2, %v8346_v50, %v8290_v7  ;;  %v3975_v22 = vshll.u32 %v8454_v49, 16 }
 0x106   : > { %v8472_v58 = vcombine.low %v9500_v32, %v3892_v15  ;;  %v3979_v16 = vshrl.u32 %v8454_v49, 16  ;;  %v8480_v2 = vcombine.low %v3906_v43, %v3916_v51  ;;  %v3930_v42 = vsel %vm6754_vm2, %v3925_v52, %v8410_v0  ;;  %v5723_v15 = vld [vmem:[%s6723_s26 + $0x6c] sm:$0xf]  ;;  %v8498_v32 = vld [vmem:[%s6723_s26 + $0x70] sm:$0xf] }
 0x107   : > { %v8487_v7 = vsel %vm7065_vm5, %v5810_v53, %v4621_v30  ;;  %v8491_v50 = vsel %vm7065_vm5, %v4623_v21, %v4624_v48  ;;  %v8494_v45 = vpop.f32.mrf.mxu0  ;;  %v3949_v43 = vrot.slane %v3948_v34, 4  ;;  %v5811_v51 = vrot.slane %v5795_v63, 9  ;;  %v5722_v53 = vld [vmem:[%s6723_s26 + $0x68] sm:$0x1] }
 0x108   : > { %9502 = vst [vmem:[#allocation13_spill] sm:$0xff] %v8494_v45  ;;  %v4630_v11 = vrot.slane %v4628_v17, 4  ;;  %v4631_v18 = vrot.slane %v8446_v47, 5  ;;  %v3940_v0 = vsel %vm6754_vm2, %v3935_v37, %v3939_v14  ;;  %v3959_v30 = vrot.slane %v3958_v60, 4  ;;  %v5798_v45 = vld [vmem:[%s6723_s26 + $0x78] sm:$0xe] }
 0x109   : > { %6406 = vmatmul.mubr.bf16.gmra.mxu0 %v6647_v12  ;;  %v3963_v52 = vrot.slane %v3961_v1, 5  ;;  %v3972_v21 = vor.u32 %v3971_v54, %v3968_v31  ;;  %v8503_v48 = vrot.slane %v3975_v22, 5  ;;  %v3981_v12 = vrot.slane %v3979_v16, 4  ;;  %v6651_v31 = vld [vmem:[%s6723_s26 + $0xb4] sm:$0xff]  }
 0x10a   : > { %6409 = vmatprep.mubr.bf16.mxu0 %v6650_v55  ;;  %v3990_v34 = vshrl.u32 %v5723_v15, 16  ;;  %v3993_v63 = vshll.u32 %v5723_v15, 16  ;;  %v9503_v47 = vcombine.low %v8099_v5, %v8104_v25  ;;  %v4635_v14 = vrot.slane %v8454_v49, 5  ;;  %v8520_v5 = vpop.f32.mrf.mxu0 }
 0x10b   : > { %v3999_v54 = vshll.u32 %v8498_v32, 16  ;;  %v4003_v60 = vshrl.u32 %v8498_v32, 16  ;;  %v9505_v1 = vcombine.low %v8117_v9, %v8111_v29  ;;  %9506 = vst [vmem:[#allocation15_spill] sm:$0xff] %v8520_v5  ;;  %v8522_v25 = vcombine.low %v3930_v42, %v3940_v0  ;;  %v5726_v29 = vld [vmem:[%s6723_s26 + $0x78] sm:$0xf]  ;;  %v6654_v9 = vld [vmem:[%s6723_s26 + $0xc0] sm:$0xff]  }
 0x10c   : > { %6358 = vmatmul.mubr.bf16.gmra.mxu1 %v9503_v47  ;;  %v8509_v55 = vpop.f32.mrf.mxu1  ;;  %v3954_v22 = vsel %vm6754_vm2, %v3949_v43, %v8437_v6  ;;  %v8529_v49 = vsel %vm7065_vm5, %v5811_v51, %v4628_v17  ;;  %v8533_v16 = vsel %vm7065_vm5, %v4630_v11, %v4631_v18  ;;  %v3964_v15 = vsel %vm6754_vm2, %v3959_v30, %v3963_v52  ;;  %v8546_v43 = vld [vmem:[%s6723_s26 + $0x74] sm:$0x1]  ;;  %v8603_v5 = vld [vmem:[%s6723_s26 + $0x8c] sm:$0x1] }
 0x10d   : > { %9504 = vst [vmem:[#allocation14_spill] sm:$0xff] %v8509_v55  ;;  %6361 = vmatprep.mubr.bf16.mxu1 %v9505_v1  ;;  %v8539_v47 = vrot.slane %v3972_v21, 4  ;;  %v3985_v42 = vshll.u32 %v5722_v53, 16  ;;  %v5812_v0 = vrot.slane %v5796_v62, 9  ;;  %v8542_v1 = vld [vmem:[%s6723_s26 + $0x7c] sm:$0xf]  ;;  %v3982_v6 = vor.u32 %v3981_v12, %v8503_v48  ;;  %v8552_v21 = vpop.f32.mrf.mxu0 }
 0x10e   : > { %v4638_v17 = vrot.slane %v5722_v53, 5  ;;  %v3992_v51 = vrot.slane %v3990_v34, 4  ;;  %v3995_v11 = vrot.slane %v3993_v63, 5  ;;  %v8548_v18 = vpop.f32.mrf.mxu1  ;;  %v4637_v37 = vrot.slane %v4635_v14, 4  ;;  %9508 = vst [vmem:[#allocation17_spill] sm:$0xff] %v8552_v21 }
 0x10f   : > { %9507 = vst [vmem:[#allocation16_spill] sm:$0xff] %v8548_v18  ;;  %v8550_v55 = vrot.slane %v3999_v54, 5  ;;  %v4005_v30 = vrot.slane %v4003_v60, 4  ;;  %v4014_v52 = vshrl.u32 %v5726_v29, 16  ;;  %v5797_v53 = vld [vmem:[%s6723_s26 + $0x6c] sm:$0xe]  ;;  %v8559_v18 = vcombine.low %v3954_v22, %v3964_v15 }
 0x110   : > { %v4017_v12 = vshll.u32 %v5726_v29, 16  ;;  %v4023_v34 = vshll.u32 %v8542_v1, 16  ;;  %v4027_v63 = vshrl.u32 %v8542_v1, 16  ;;  %v8561_v54 = vrot.slane %v3985_v42, 5  ;;  %v5729_v62 = vld [vmem:[%s6723_s26 + $0x84] sm:$0xf]  ;;  %v8582_v42 = vpop.f32.mrf.mxu1 }
 0x111   : > { %6410 = vmatmul.mubr.bf16.gmra.mxu0 %v6651_v31  ;;  %9509 = vst [vmem:[#allocation18_spill] sm:$0xff] %v8559_v18  ;;  %v8565_v60 = vsel %vm7065_vm5, %v5812_v0, %v4635_v14  ;;  %v4009_v31 = vshll.u32 %v8546_v43, 16  ;;  %v8573_v28 = vrot.slane %v3982_v6, 4  ;;  %v4642_v22 = vrot.slane %v8498_v32, 5  ;;  %v8577_v15 = vld [vmem:[%s6723_s26 + $0x88] sm:$0xf] }
 0x112   : > { %6413 = vmatprep.mubr.bf16.mxu0 %v6654_v9  ;;  %v3996_v9 = vor.u32 %v3995_v11, %v3992_v51  ;;  %v9510_v14 = vcombine.low %v8126_v4, %v8130_v13  ;;  %9511 = vst [vmem:[#allocation19_spill] sm:$0xff] %v8582_v42  ;;  %v6655_v0 = vld [vmem:[%s6723_s26 + $0xcc] sm:$0xff]   ;;  %v8587_v10 = vsel %vm7065_vm5, %v4637_v37, %v4638_v17  ;;  %v5813_v6 = vrot.slane %v5797_v53, 9  ;;  %v8590_v11 = vpop.f32.mrf.mxu0  ;;  %v8596_v4 = vld [vmem:[%s6723_s26 + $0x80] sm:$0x1] }
 0x113   : > { %v4006_v29 = vor.u32 %v4005_v30, %v8550_v55  ;;  %v4016_v51 = vrot.slane %v4014_v52, 4  ;;  %9512 = vst [vmem:[#allocation20_spill] sm:$0xff] %v8590_v11  ;;  %v9513_v32 = vcombine.low %v8161_v26, %v8165_v35  ;;  %v4019_v13 = vrot.slane %v4017_v12, 5 }
 0x114   : > { %6362 = vmatmul.mubr.bf16.gmra.mxu1 %v9510_v14  ;;  %v8598_v14 = vrot.slane %v4023_v34, 5  ;;  %v4029_v42 = vrot.slane %v4027_v63, 4  ;;  %v4038_v21 = vshrl.u32 %v5729_v62, 16  ;;  %v4011_v37 = vrot.slane %v4009_v31, 5 }
 0x115   : > { %6365 = vmatprep.mubr.bf16.mxu1 %v9513_v32  ;;  %v4645_v17 = vrot.slane %v8546_v43, 5  ;;  %v4041_v30 = vshll.u32 %v5729_v62, 16  ;;  %v4047_v52 = vshll.u32 %v8577_v15, 16  ;;  %v3997_v53 = vrot.slane %v3996_v9, 4  ;;  %v8606_v32 = vpop.f32.mrf.mxu1 }
 0x116   : > { %v4644_v11 = vrot.slane %v4642_v22, 4  ;;  %v4040_v26 = vrot.slane %v4038_v21, 4  ;;  %v4051_v35 = vshrl.u32 %v8577_v15, 16  ;;  %v4007_v12 = vrot.slane %v4006_v29, 4 }
 0x117   : > { %v4033_v34 = vshll.u32 %v8596_v4, 16  ;;  %v4043_v63 = vrot.slane %v4041_v30, 5  ;;  %v8609_v31 = vrot.slane %v4047_v52, 5  ;;  %v4020_v62 = vor.u32 %v4019_v13, %v4016_v51  ;;  %v5799_v52 = vld [vmem:[%s6723_s26 + $0x84] sm:$0xe] }
 0x118   : > { %v8611_v43 = vpop.f32.mrf.mxu0  ;;  %v4030_v9 = vor.u32 %v4029_v42, %v8598_v14  ;;  %v4649_v21 = vrot.slane %v8542_v1, 5  ;;  %v4053_v18 = vrot.slane %v4051_v35, 4  ;;  %v9514_v29 = vcombine.low %v8257_v41, %v8272_v3 }
 0x119   : > { %6414 = vmatmul.mubr.bf16.gmra.mxu0 %v6655_v0  ;;  %v3988_v30 = vsel %vm6754_vm2, %v8573_v28, %v8561_v54  ;;  %v8627_v51 = vsel %vm7065_vm5, %v5813_v6, %v4642_v22  ;;  %v4057_v42 = vshll.u32 %v8603_v5, 16  ;;  %v4002_v41 = vsel %vm6754_vm2, %v3997_v53, %v8550_v55  ;;  %v5732_v54 = vld [vmem:[%s6723_s26 + $0x90] sm:$0xf] }
 0x11a   : > { %6481 = vmatprep.mubr.bf16.mxu0 %v9514_v29  ;;  %v8630_v1 = vpop.f32.mrf.mxu0  ;;  %v4044_v3 = vor.u32 %v4043_v63, %v4040_v26  ;;  %v4054_v13 = vor.u32 %v4053_v18, %v8609_v31  ;;  %v4656_v28 = vrot.slane %v8577_v15, 5  ;;  %v9516_v22 = vcombine.low %v8174_v44, %v8179_v8 }
 0x11b   : > { %v4012_v6 = vsel %vm6754_vm2, %v4007_v12, %v4011_v37  ;;  %v8648_v55 = vsel %vm7065_vm5, %v4644_v11, %v4645_v17  ;;  %v4035_v53 = vrot.slane %v4033_v34, 5  ;;  %v5814_v18 = vrot.slane %v5798_v45, 9  ;;  %v8657_v12 = vld [vmem:[%s6723_s26 + $0x94] sm:$0xf] }
 0x11c   : > { %v8639_v35 = vpop.f32.mrf.mxu1  ;;  %6366 = vmatmul.mubr.bf16.gmra.mxu1 %v9516_v22  ;;  %v8650_v26 = vpop.f32.mrf.mxu0  ;;  %v4021_v15 = vrot.slane %v4020_v62, 4  ;;  %v4031_v63 = vrot.slane %v4030_v9, 4  ;;  %v4651_v29 = vrot.slane %v4649_v21, 4  ;;  %v4652_v0 = vrot.slane %v8596_v4, 5 }
 0x11d   : > { %9515 = vst [vmem:[#allocation21_spill] sm:$0xff] %v8639_v35  ;;  %6433 = vmatprep.mubr.bf16.mxu1 %v8366_v40  ;;  %v4059_v8 = vrot.slane %v4057_v42, 5  ;;  %v5815_v37 = vrot.slane %v5799_v52, 9  ;;  %v4062_v11 = vshrl.u32 %v5732_v54, 16  ;;  %v4065_v17 = vshll.u32 %v5732_v54, 16 }
 0x11e   : > { %v8654_v44 = vpop.f32.mrf.mxu1  ;;  %v8659_v34 = vpop.f32.mrf.mxu0  ;;  %v4045_v45 = vrot.slane %v4044_v3, 4  ;;  %v4055_v22 = vrot.slane %v4054_v13, 4  ;;  %v4658_v40 = vrot.slane %v4656_v28, 4  ;;  %v4659_v62 = vrot.slane %v8603_v5, 5  ;;  %v8680_v54 = vld [vmem:[%s6723_s26 + $0x98] sm:$0x1] }
 0x11f   : > { %9517 = vst [vmem:[#allocation22_spill] sm:$0xff] %v8654_v44  ;;  %v9519_v4 = vsel %vm6754_vm2, %v8539_v47, %v8503_v48  ;;  %v8671_v52 = vcombine.low %v4002_v41, %v4012_v6  ;;  %v8677_v13 = vsel %vm7065_vm5, %v5814_v18, %v4649_v21  ;;  %v4026_v48 = vsel %vm6754_vm2, %v4021_v15, %v8598_v14  ;;  %v5735_v41 = vld [vmem:[%s6723_s26 + $0x9c] sm:$0xf]  ;;  %v8697_v6 = vld [vmem:[%s6723_s26 + $0xa0] sm:$0xf] }
 0x120   : > { %v8662_v9 = vpop.f32.mrf.mxu1  ;;  %v8669_v42 = vcombine.low %v9519_v4, %v3988_v30  ;;  %v6195_v5 = vpop.f32.mrf.mxu0  ;;  %v4036_v47 = vsel %vm6754_vm2, %v4031_v63, %v4035_v53  ;;  %v8692_v30 = vsel %vm7065_vm5, %v4651_v29, %v4652_v0  ;;  %v4071_v21 = vshll.u32 %v8657_v12, 16  ;;  %v8784_v35 = vld [vmem:[%s6723_s26 + $0xb0] sm:$0x1] }
 0x121   : > { %9518 = vst [vmem:[#allocation23_spill] sm:$0xff] %v8662_v9  ;;  %v9520_v9 = vcombine.low %v8329_v20, %v8333_v19  ;;  %v9522_v20 = vcombine.low %v8385_v36, %v8401_v59  ;;  %v8706_v19 = vsel %vm7065_vm5, %v5815_v37, %v4656_v28  ;;  %v4064_v14 = vrot.slane %v4062_v11, 4  ;;  %v8721_v37 = vld [vmem:[%s6723_s26 + $0x90] sm:$0xe] }
 0x122   : > { %v8699_v18 = vpop.f32.mrf.mxu1  ;;  %v4067_v53 = vrot.slane %v4065_v17, 5  ;;  %v4075_v0 = vshrl.u32 %v8657_v12, 16  ;;  %v1588_v15 = vpop.f32.mrf.mxu0  ;;  %v4050_v63 = vsel %vm6754_vm2, %v4045_v45, %v8609_v31  ;;  %v4060_v29 = vsel %vm6754_vm2, %v4055_v22, %v4059_v8 }
 0x123   : > { %6482 = vmatmul.mubr.bf16.vlgmr.msra.gmra.mxu0 %v9520_v9  ;;  %9521 = vst [vmem:[#allocation24_spill] sm:$0xff] %v8699_v18  ;;  %v8716_v36 = vsel %vm7065_vm5, %v4658_v40, %v4659_v62  ;;  %v4081_v59 = vshll.u32 %v8680_v54, 16  ;;  %v4086_v11 = vshrl.u32 %v5735_v41, 16  ;;  %v4089_v17 = vshll.u32 %v5735_v41, 16 }
 0x124   : > { %6485 = vmatprep.mubr.bf16.mxu0 %v9522_v20  ;;  %v6147_v28 = vpop.f32.mrf.mxu1  ;;  %6434 = vmatmul.mubr.bf16.vlgmr.msra.gmra.mxu1 %v8372_v61  ;;  %v4095_v9 = vshll.u32 %v8697_v6, 16  ;;  %v4099_v31 = vshrl.u32 %v8697_v6, 16  ;;  %v6196_v45 = vpop.f32.mrf.mxu0  ;;  %v8727_v22 = vcombine.low %v4026_v48, %v4036_v47  ;;  %v8731_v40 = vrot.slane %v4071_v21, 5  ;;  %v8745_v61 = vld [vmem:[%s6723_s26 + $0xa4] sm:$0x1] }
 0x125   : > { %v1144_v8 = vadd.f32 %v6147_v28, %v8222_v24  ;;  %6437 = vmatprep.mubr.bf16.mxu1 %v8472_v58  ;;  %v8733_v4 = vcombine.low %v4050_v63, %v4060_v29  ;;  %v4068_v20 = vor.u32 %v4067_v53, %v4064_v14  ;;  %v4077_v24 = vrot.slane %v4075_v0, 4  ;;  %v5738_v28 = vld [vmem:[%s6723_s26 + $0xa8] sm:$0xf]  ;;  %v8750_v14 = vld [vmem:[%s6723_s26 + $0xac] sm:$0xf] }
 0x126   : > { %v1135_v62 = vpop.f32.mrf.mxu1  ;;  %v1591_v48 = vpop.f32.mrf.mxu0  ;;  %v8741_v47 = vrot.slane %v4081_v59, 5  ;;  %v5816_v21 = vrot.slane %v8721_v37, 9  ;;  %v4088_v29 = vrot.slane %v4086_v11, 4  ;;  %v4091_v18 = vrot.slane %v4089_v17, 5 }
 0x127   : > { %v8738_v3 = vadd.f32 %v6195_v5, %v1144_v8  ;;  %v1136_v58 = vadd.f32 %v1135_v62, %v8243_v57  ;;  %v8747_v44 = vrot.slane %v4095_v9, 5  ;;  %v4101_v41 = vrot.slane %v4099_v31, 4  ;;  %v9528_v62 = vld [vmem:[#allocation3_spill] sm:$0xff] }
 0x128   : > { %v6148_v63 = vpop.f32.mrf.mxu1  ;;  %v6199_v5 = vpop.f32.mrf.mxu0  ;;  %v9525_v0 = vcombine.low %v8435_v33, %v8443_v23  ;;  %v4110_v59 = vshrl.u32 %v5738_v28, 16  ;;  %v4113_v37 = vshll.u32 %v5738_v28, 16  ;;  %v9526_v11 = vcombine.low %v8487_v7, %v8491_v50 }
 0x129   : > { %9523 = vst [vmem:[#allocation25_spill] sm:$0xff] %v8738_v3  ;;  %v8752_v53 = vadd.f32 %v1588_v15, %v1136_v58  ;;  %v1147_v57 = vadd.f32 %v6148_v63, %v8279_v38  ;;  %v8761_v17 = vrot.slane %v4068_v20, 4  ;;  %v4078_v15 = vor.u32 %v4077_v24, %v8731_v40  ;;  %v5801_v58 = vld [vmem:[%s6723_s26 + $0x9c] sm:$0xe] }
 0x12a   : > { %v1138_v8 = vpop.f32.mrf.mxu1  ;;  %v4663_v9 = vrot.slane %v8657_v12, 5  ;;  %v4105_v38 = vshll.u32 %v8745_v61, 16  ;;  %v1604_v23 = vpop.f32.mrf.mxu0  ;;  %v4666_v28 = vrot.slane %v8680_v54, 5  ;;  %v4119_v63 = vshll.u32 %v8750_v14, 16 }
 0x12b   : > { %9524 = vst [vmem:[#allocation26_spill] sm:$0xff] %v8752_v53  ;;  %6486 = vmatmul.mubr.bf16.gmra.mxu0 %v9525_v0  ;;  %v8766_v31 = vadd.f32 %v6196_v45, %v1147_v57  ;;  %v1139_v33 = vadd.f32 %v1138_v8, %v9528_v62  ;;  %v4092_v50 = vor.u32 %v4091_v18, %v4088_v29  ;;  %v4670_v12 = vrot.slane %v8697_v6, 5  ;;  %v9529_v57 = vld [vmem:[#allocation7_spill] sm:$0xff]  ;;  %v9530_v6 = vld [vmem:[#allocation9_spill] sm:$0xff] }
 0x12c   : > { %6489 = vmatprep.mubr.bf16.mxu0 %v9526_v11  ;;  %v6151_v7 = vpop.f32.mrf.mxu1  ;;  %6438 = vmatmul.mubr.bf16.gmra.mxu1 %v8480_v2  ;;  %v4102_v20 = vor.u32 %v4101_v41, %v8747_v44  ;;  %v4123_v45 = vshrl.u32 %v8750_v14, 16  ;;  %v6200_v8 = vpop.f32.mrf.mxu0  ;;  %v4112_v54 = vrot.slane %v4110_v59, 4  ;;  %v4115_v11 = vrot.slane %v4113_v37, 5 }
 0x12d   : > { %9527 = vst [vmem:[#allocation27_spill] sm:$0xff] %v8766_v31  ;;  %v8776_v24 = vadd.f32 %v1591_v48, %v1139_v33  ;;  %v1160_v0 = vadd.f32 %v6151_v7, %v9529_v57  ;;  %6441 = vmatprep.mubr.bf16.mxu1 %v8522_v25  ;;  %v4079_v31 = vrot.slane %v4078_v15, 4  ;;  %v4665_v2 = vrot.slane %v4663_v9, 4 }
 0x12e   : > { %v1151_v62 = vpop.f32.mrf.mxu1  ;;  %v4107_v18 = vrot.slane %v4105_v38, 5  ;;  %v5817_v29 = vrot.slane %v5801_v58, 9  ;;  %v1607_v3 = vpop.f32.mrf.mxu0  ;;  %v8786_v48 = vrot.slane %v4119_v63, 5  ;;  %v4125_v33 = vrot.slane %v4123_v45, 4 }
 0x12f   : > { %v8780_v41 = vadd.f32 %v6199_v5, %v1160_v0  ;;  %v1152_v53 = vadd.f32 %v1151_v62, %v9530_v6  ;;  %v4093_v57 = vrot.slane %v4092_v50, 4  ;;  %v4103_v25 = vrot.slane %v4102_v20, 4 }
 0x130   : > { %v6152_v7 = vpop.f32.mrf.mxu1  ;;  %v4672_v59 = vrot.slane %v4670_v12, 4  ;;  %v4673_v37 = vrot.slane %v8745_v61, 5  ;;  %v6203_v38 = vpop.f32.mrf.mxu0  ;;  %v9531_v58 = vcombine.low %v8529_v49, %v8533_v16  ;;  %v8797_v63 = vsel %vm7065_vm5, %v5816_v21, %v4663_v9  ;;  %v5802_v21 = vld [vmem:[%s6723_s26 + $0xa8] sm:$0xe] }
 0x131   : > { %v8789_v15 = vadd.f32 %v1604_v23, %v1152_v53  ;;  %v1163_v5 = vadd.f32 %v6152_v7, %v8426_v39  ;;  %v4116_v50 = vor.u32 %v4115_v11, %v4112_v54  ;;  %v9532_v20 = vcombine.low %v8565_v60, %v8587_v10 }
 0x132   : > { %v1154_v45 = vpop.f32.mrf.mxu1  ;;  %v4074_v39 = vsel %vm6754_vm2, %v8761_v17, %v8731_v40  ;;  %v4084_v49 = vsel %vm6754_vm2, %v4079_v31, %v8741_v47  ;;  %v8811_v16 = vsel %vm7065_vm5, %v4665_v2, %v4666_v28  ;;  %v4129_v61 = vshll.u32 %v8784_v35, 16  ;;  %v1620_v60 = vpop.f32.mrf.mxu0  ;;  %v5741_v17 = vld [vmem:[%s6723_s26 + $0xb4] sm:$0xf]  ;;  %v9533_v47 = vld [vmem:[#allocation18_spill] sm:$0xff]  ;;  %v8840_v2 = vld [vmem:[%s6723_s26 + $0xb8] sm:$0xf] }
 0x133   : > { %6490 = vmatmul.mubr.bf16.gmra.mxu0 %v9531_v58  ;;  %v8815_v53 = vadd.f32 %v6200_v8, %v1163_v5  ;;  %v1155_v10 = vadd.f32 %v1154_v45, %v8460_v46  ;;  %v4126_v9 = vor.u32 %v4125_v33, %v8786_v48  ;;  %v4677_v40 = vrot.slane %v8750_v14, 5  ;;  %v9534_v8 = vld [vmem:[#allocation13_spill] sm:$0xff] }
 0x134   : > { %6493 = vmatprep.mubr.bf16.mxu0 %v9532_v20  ;;  %v6155_v23 = vpop.f32.mrf.mxu1  ;;  %6442 = vmatmul.mubr.bf16.gmra.mxu1 %v9533_v47  ;;  %v4098_v31 = vsel %vm6754_vm2, %v4093_v57, %v8747_v44  ;;  %v4108_v28 = vsel %vm6754_vm2, %v4103_v25, %v4107_v18  ;;  %v8829_v46 = vsel %vm7065_vm5, %v5817_v29, %v4670_v12  ;;  %v6204_v11 = vpop.f32.mrf.mxu0  ;;  %v4117_v62 = vrot.slane %v4116_v50, 4  ;;  %v9535_v57 = vld [vmem:[#allocation15_spill] sm:$0xff]  ;;  %v9539_v47 = vld [vmem:[#allocation20_spill] sm:$0xff] }
 0x135   : > { %v8833_v0 = vsel %vm7065_vm5, %v4672_v59, %v4673_v37  ;;  %v8835_v14 = vadd.f32 %v1607_v3, %v1155_v10  ;;  %v1176_v54 = vadd.f32 %v6155_v23, %v9534_v8  ;;  %6445 = vmatprep.mubr.bf16.mxu1 %v8669_v42  ;;  %v5818_v44 = vrot.slane %v5802_v21, 9 }
 0x136   : > { %v1167_v18 = vpop.f32.mrf.mxu1  ;;  %v4131_v6 = vrot.slane %v4129_v61, 5  ;;  %v4680_v12 = vrot.slane %v8784_v35, 5  ;;  %v4134_v29 = vshrl.u32 %v5741_v17, 16  ;;  %v4137_v33 = vshll.u32 %v5741_v17, 16  ;;  %v1623_v25 = vpop.f32.mrf.mxu0 }
 0x137   : > { %v8843_v7 = vadd.f32 %v6203_v38, %v1176_v54  ;;  %v1168_v3 = vadd.f32 %v1167_v18, %v9535_v57  ;;  %v4127_v59 = vrot.slane %v4126_v9, 4  ;;  %v4679_v37 = vrot.slane %v4677_v40, 4  ;;  %v9536_v38 = vld [vmem:[#allocation17_spill] sm:$0xff] }
 0x138   : > { %v6156_v42 = vpop.f32.mrf.mxu1  ;;  %v8846_v5 = vcombine.low %v4074_v39, %v4084_v49  ;;  %v5848_v58 = vcombine.low %v8797_v63, %v8811_v16  ;;  %v8850_v50 = vcombine.low %v4098_v31, %v4108_v28  ;;  %v4143_v35 = vshll.u32 %v8840_v2, 16  ;;  %v6207_v61 = vpop.f32.mrf.mxu0  ;;  %v5744_v49 = vld [vmem:[%s6723_s26 + $0xc0] sm:$0xf]  ;;  %v8864_v16 = vld [vmem:[%s6723_s26 + $0xc4] sm:$0xf] }
 0x139   : > { %v8853_v45 = vadd.f32 %v1620_v60, %v1168_v3  ;;  %v1179_v20 = vadd.f32 %v6156_v42, %v9536_v38  ;;  %v9537_v21 = vcombine.low %v8627_v51, %v8648_v55  ;;  %v5849_v39 = vcombine.low %v8829_v46, %v8833_v0  ;;  %v9544_v46 = vld [vmem:[#allocation6_spill] sm:$0xff] }
 0x13a   : > { %v4147_v63 = vshrl.u32 %v8840_v2, 16  ;;  %v1170_v10 = vpop.f32.mrf.mxu1  ;;  %v9538_v60 = vcombine.low %v8677_v13, %v8692_v30  ;;  %v4122_v51 = vsel %vm6754_vm2, %v4117_v62, %v8786_v48  ;;  %v8874_v55 = vsel %vm7065_vm5, %v5818_v44, %v4677_v40  ;;  %v1636_v28 = vpop.f32.mrf.mxu0  ;;  %v8886_v30 = vld [vmem:[%s6723_s26 + $0xbc] sm:$0x1]  ;;  %v5803_v48 = vld [vmem:[%s6723_s26 + $0xb4] sm:$0xe] }
 0x13b   : > { %6494 = vmatmul.mubr.bf16.gmra.mxu0 %v9537_v21  ;;  %v4136_v9 = vrot.slane %v4134_v29, 4  ;;  %v4139_v17 = vrot.slane %v4137_v33, 5  ;;  %v8876_v23 = vadd.f32 %v6204_v11, %v1179_v20  ;;  %v1171_v31 = vadd.f32 %v1170_v10, %v9539_v47  ;;  %v8908_v20 = vld [vmem:[%s6723_s26 + $0xc8] sm:$0x1] }
 0x13c   : > { %6497 = vmatprep.mubr.bf16.mxu0 %v9538_v60  ;;  %v4132_v8 = vsel %vm6754_vm2, %v4127_v59, %v4131_v6  ;;  %v8883_v13 = vsel %vm7065_vm5, %v4679_v37, %v4680_v12  ;;  %v6159_v54 = vpop.f32.mrf.mxu1  ;;  %6446 = vmatmul.mubr.bf16.gmra.mxu1 %v8671_v52  ;;  %v8890_v40 = vrot.slane %v4143_v35, 5  ;;  %v4158_v11 = vshrl.u32 %v5744_v49, 16  ;;  %v6208_v29 = vpop.f32.mrf.mxu0 }
 0x13d   : > { %v4161_v62 = vshll.u32 %v5744_v49, 16  ;;  %v4167_v44 = vshll.u32 %v8864_v16, 16  ;;  %v8893_v18 = vadd.f32 %v1623_v25, %v1171_v31  ;;  %v1192_v6 = vadd.f32 %v6159_v54, %v8611_v43  ;;  %6449 = vmatprep.mubr.bf16.mxu1 %v8727_v22 }
 0x13e   : > { %v4149_v12 = vrot.slane %v4147_v63, 4  ;;  %v4171_v33 = vshrl.u32 %v8864_v16, 16  ;;  %v1183_v57 = vpop.f32.mrf.mxu1  ;;  %v4140_v3 = vor.u32 %v4139_v17, %v4136_v9  ;;  %v4153_v52 = vshll.u32 %v8886_v30, 16  ;;  %v1639_v43 = vpop.f32.mrf.mxu0  ;;  %v5747_v9 = vld [vmem:[%s6723_s26 + $0xcc] sm:$0xf] }
 0x13f   : > { %v5819_v59 = vrot.slane %v5803_v48, 9  ;;  %v4684_v37 = vrot.slane %v8840_v2, 5  ;;  %v8900_v42 = vadd.f32 %v6207_v61, %v1192_v6  ;;  %v1184_v25 = vadd.f32 %v1183_v57, %v8630_v1  ;;  %v5804_v48 = vld [vmem:[%s6723_s26 + $0xc0] sm:$0xe] }
 0x140   : > { %v8903_v35 = vcombine.low %v4122_v51, %v4132_v8  ;;  %v5850_v22 = vcombine.low %v8874_v55, %v8883_v13  ;;  %v6160_v38 = vpop.f32.mrf.mxu1  ;;  %v4160_v21 = vrot.slane %v4158_v11, 4  ;;  %v4163_v63 = vrot.slane %v4161_v62, 5  ;;  %v6211_v10 = vpop.f32.mrf.mxu0  ;;  %v8930_v8 = vld [vmem:[%s6723_s26 + $0xd0] sm:$0xf] }
 0x141   : > { %v8910_v49 = vrot.slane %v4167_v44, 5  ;;  %v4173_v2 = vrot.slane %v4171_v33, 4  ;;  %v8912_v61 = vadd.f32 %v1636_v28, %v1184_v25  ;;  %v1195_v1 = vadd.f32 %v6160_v38, %v8650_v26 }
 0x142   : > { %v9540_v60 = vcombine.low %v8706_v19, %v8716_v36  ;;  %v4150_v51 = vor.u32 %v4149_v12, %v8890_v40  ;;  %v4687_v55 = vrot.slane %v8886_v30, 5  ;;  %v1186_v17 = vpop.f32.mrf.mxu1  ;;  %v8921_v47 = vrot.slane %v4140_v3, 4  ;;  %v1652_v13 = vpop.f32.mrf.mxu0 }
 0x143   : > { %v8923_v31 = vrot.slane %v4153_v52, 5  ;;  %v8927_v26 = vsel %vm7065_vm5, %v5819_v59, %v4684_v37  ;;  %v4686_v28 = vrot.slane %v4684_v37, 4  ;;  %v8932_v19 = vadd.f32 %v6208_v29, %v1195_v1  ;;  %v9541_v29 = vld [vmem:[#allocation2_spill] sm:$0xff] }
 0x144   : > { %6498 = vmatmul.mubr.bf16.gmra.mxu0 %v9540_v60  ;;  %v1187_v36 = vadd.f32 %v1186_v17, %v8659_v34  ;;  %v4177_v30 = vshll.u32 %v8908_v20, 16  ;;  %v6163_v54 = vpop.f32.mrf.mxu1  ;;  %6450 = vmatmul.mubr.bf16.gmra.mxu1 %v8733_v4  ;;  %v4164_v11 = vor.u32 %v4163_v63, %v4160_v21  ;;  %v4174_v62 = vor.u32 %v4173_v2, %v8910_v49  ;;  %v6212_v57 = vpop.f32.mrf.mxu0 }
 0x145   : > { %6501 = vmatprep.mubr.bf16.mxu0 %v5848_v58  ;;  %v4691_v58 = vrot.slane %v8864_v16, 5  ;;  %v4182_v44 = vshrl.u32 %v5747_v9, 16  ;;  %v4185_v6 = vshll.u32 %v5747_v9, 16  ;;  %v1208_v33 = vadd.f32 %v6163_v54, %v9541_v29  ;;  %6453 = vmatprep.mubr.bf16.mxu1 %v8846_v5 }
 0x146   : > { %v8940_v12 = vadd.f32 %v1639_v43, %v1187_v36  ;;  %v4191_v34 = vshll.u32 %v8930_v8, 16  ;;  %v4195_v3 = vshrl.u32 %v8930_v8, 16  ;;  %v1199_v16 = vpop.f32.mrf.mxu1  ;;  %v4151_v52 = vrot.slane %v4150_v51, 4  ;;  %v9542_v43 = vld [vmem:[#allocation5_spill] sm:$0xff]  ;;  %v1655_v21 = vpop.f32.mrf.mxu0  ;;  %v9543_v36 = vld [vmem:[#allocation4_spill] sm:$0xff] }
 0x147   : > { %v4688_v4 = vsel %vm7065_vm5, %v4686_v28, %v4687_v55  ;;  %v5820_v59 = vrot.slane %v5804_v48, 9  ;;  %v4694_v37 = vrot.slane %v8908_v20, 5  ;;  %v8949_v25 = vadd.f32 %v6211_v10, %v1208_v33  ;;  %v5749_v20 = vld [vmem:[%s6723_s26 + $0xd4] sm:$0x1] }
 0x148   : > { %v1200_v38 = vadd.f32 %v1199_v16, %v9542_v43  ;;  %v4179_v63 = vrot.slane %v4177_v30, 5  ;;  %v4693_v5 = vrot.slane %v4691_v58, 4  ;;  %v6164_v2 = vpop.f32.mrf.mxu1  ;;  %v4165_v1 = vrot.slane %v4164_v11, 4 }
 0x149   : > { %v4175_v60 = vrot.slane %v4174_v62, 4  ;;  %v4184_v9 = vrot.slane %v4182_v44, 4  ;;  %v4187_v17 = vrot.slane %v4185_v6, 5  ;;  %v1211_v55 = vadd.f32 %v6164_v2, %v9543_v36  ;;  %v6215_v28 = vpop.f32.mrf.mxu0  ;;  %v5805_v6 = vld [vmem:[%s6723_s26 + $0xcc] sm:$0xe]  ;;  %s5864_s26 = sshll.u32 %s9644_s16, 8 }
 0x14a   : > { %v8952_v51 = vadd.f32 %v1652_v13, %v1200_v38  ;;  %v8959_v10 = vrot.slane %v4191_v34, 5  ;;  %v4197_v30 = vrot.slane %v4195_v3, 4  ;;  %v1202_v48 = vpop.f32.mrf.mxu1  ;;  %v4146_v13 = vsel %vm6754_vm2, %v8921_v47, %v8890_v40  ;;  %s9262_s29 = scalar_lea.vmem %s9395_s2, %s5864_s26 }
 0x14b   : > { %v4156_v54 = vsel %vm6754_vm2, %v4151_v52, %v8923_v31  ;;  %v4698_v11 = vrot.slane %v8930_v8, 5  ;;  %v8969_v62 = vadd.f32 %v6212_v57, %v1211_v55  ;;  %v1203_v0 = vadd.f32 %v1202_v48, %v9544_v46  ;;  %v9545_v57 = vld [vmem:[#allocation8_spill] sm:$0xff] }
 0x14c   : > { %6502 = vmatmul.mubr.bf16.gmra.mxu0 %v5849_v39  ;;  %v1668_v39 = vpop.f32.mrf.mxu0  ;;  %v4692_v44 = vsel %vm7065_vm5, %v5820_v59, %v4691_v58  ;;  %v6167_v29 = vpop.f32.mrf.mxu1  ;;  %6454 = vmatmul.mubr.bf16.gmra.mxu1 %v8850_v50  ;;  %v5851_v40 = vcombine.low %v8927_v26, %v4688_v4  ;;  %v4170_v47 = vsel %vm6754_vm2, %v4165_v1, %v8910_v49  ;;  %v4201_v8 = vshll.u32 %v5749_v20, 16  ;;  %v9548_v48 = vld [vmem:[#allocation12_spill] sm:$0xff] }
 0x14d   : > { %6505 = vmatprep.mubr.bf16.mxu0 %v5850_v22  ;;  %v4695_v22 = vsel %vm7065_vm5, %v4693_v5, %v4694_v37  ;;  %v4188_v31 = vor.u32 %v4187_v17, %v4184_v9  ;;  %v8982_v33 = vadd.f32 %v1655_v21, %v1203_v0  ;;  %v1224_v34 = vadd.f32 %v6167_v29, %v9545_v57  ;;  %v9546_v37 = vld [vmem:[#allocation10_spill] sm:$0xff]  ;;  %v9547_v9 = vld [vmem:[#allocation11_spill] sm:$0xff] }
 0x14e   : > { %v6216_v58 = vpop.f32.mrf.mxu0  ;;  %6457 = vmatprep.mubr.bf16.mxu1 %v8903_v35  ;;  %v4180_v3 = vsel %vm6754_vm2, %v4175_v60, %v4179_v63  ;;  %v4198_v50 = vor.u32 %v4197_v30, %v8959_v10  ;;  %v1215_v16 = vpop.f32.mrf.mxu1  ;;  %v5852_v26 = vcombine.low %v4692_v44, %v4695_v22  ;;  %v5821_v52 = vrot.slane %v5805_v6, 9  ;;  %v9549_v44 = vld [vmem:[#allocation14_spill] sm:$0xff] }
 0x14f   : > { %v4700_v4 = vrot.slane %v4698_v11, 4  ;;  %v4701_v59 = vrot.slane %v5749_v20, 5  ;;  %v8989_v49 = vadd.f32 %v6215_v28, %v1224_v34  ;;  %v1216_v43 = vadd.f32 %v1215_v16, %v9546_v37  ;;  %v9552_v37 = vld [vmem:[#allocation21_spill] sm:$0xff] }
 0x150   : > { %v1671_v38 = vpop.f32.mrf.mxu0  ;;  %v6168_v21 = vpop.f32.mrf.mxu1  ;;  %v5779_v5 = vcombine.low %v4146_v13, %v4156_v54  ;;  %v5780_v2 = vcombine.low %v4170_v47, %v4180_v3  ;;  %v4189_v1 = vrot.slane %v4188_v31, 4  ;;  %v4199_v17 = vrot.slane %v4198_v50, 4  ;;  %v9550_v47 = vld [vmem:[#allocation16_spill] sm:$0xff] }
 0x151   : > { %v8992_v35 = vadd.f32 %v1668_v39, %v1216_v43  ;;  %v1227_v63 = vadd.f32 %v6168_v21, %v9547_v9  ;;  %v4203_v36 = vrot.slane %v4201_v8, 5  ;;  %v4699_v28 = vsel %vm7065_vm5, %v5821_v52, %v4698_v11 }
 0x152   : > { %v6219_v60 = vpop.f32.mrf.mxu0  ;;  %v1218_v55 = vpop.f32.mrf.mxu1  ;;  %v4702_v20 = vsel %vm7065_vm5, %v4700_v4, %v4701_v59  ;;  %v4194_v0 = vsel %vm6754_vm2, %v4189_v1, %v8959_v10  ;;  %v9551_v10 = vld [vmem:[#allocation19_spill] sm:$0xff] }
 0x153   : > { %v8999_v30 = vadd.f32 %v6216_v58, %v1227_v63  ;;  %v1219_v13 = vadd.f32 %v1218_v55, %v9548_v48  ;;  %v4204_v56 = vsel %vm6754_vm2, %v4199_v17, %v4203_v36  ;;  %v5853_v11 = vcombine.low %v4699_v28, %v4702_v20  ;;  %v9554_v17 = vld [vmem:[#allocation23_spill] sm:$0xff]  ;;  %v9555_v20 = vld [vmem:[#allocation24_spill] sm:$0xff] }
 0x154   : > { %6506 = vmatmul.mubr.bf16.gmra.mxu0 %v5851_v40  ;;  %v1684_v54 = vpop.f32.mrf.mxu0  ;;  %v6171_v46 = vpop.f32.mrf.mxu1  ;;  %6458 = vmatmul.mubr.bf16.gmra.mxu1 %v5779_v5  ;;  %v5781_v34 = vcombine.low %v4194_v0, %v4204_v56  ;;  %v9556_v0 = vld [vmem:[#allocation25_spill] sm:$0xff] }
 0x155   : > { %6509 = vmatprep.mubr.bf16.mxu0 %v5852_v26  ;;  %v9005_v39 = vadd.f32 %v1671_v38, %v1219_v13  ;;  %v1240_v22 = vadd.f32 %v6171_v46, %v9549_v44  ;;  %6461 = vmatprep.mubr.bf16.mxu1 %v5780_v2  ;;  %v9553_v2 = vld [vmem:[#allocation22_spill] sm:$0xff] }
 0x156   : > { %v6220_v6 = vpop.f32.mrf.mxu0  ;;  %v1231_v29 = vpop.f32.mrf.mxu1 }
 0x157   : > { %v9010_v40 = vadd.f32 %v6219_v60, %v1240_v22  ;;  %v1232_v31 = vadd.f32 %v1231_v29, %v9550_v47 }
 0x158   : > { %v1687_v8 = vpop.f32.mrf.mxu0  ;;  %v6172_v57 = vpop.f32.mrf.mxu1 }
 0x159   : > { %v9013_v58 = vadd.f32 %v1684_v54, %v1232_v31  ;;  %v1243_v3 = vadd.f32 %v6172_v57, %v9551_v10  ;;  %v9558_v57 = vld [vmem:[#allocation27_spill] sm:$0xff] }
 0x15a   : > { %v6223_v50 = vpop.f32.mrf.mxu0  ;;  %v1234_v16 = vpop.f32.mrf.mxu1 }
 0x15b   : > { %v9016_v26 = vadd.f32 %v6220_v6, %v1243_v3  ;;  %v1235_v27 = vadd.f32 %v1234_v16, %v8606_v32 }
 0x15c   : > { %6510 = vmatmul.mubr.bf16.gmra.mxu0 %v5853_v11  ;;  %v1700_v52 = vpop.f32.mrf.mxu0  ;;  %v6175_v4 = vpop.f32.mrf.mxu1  ;;  %6462 = vmatmul.mubr.bf16.gmra.mxu1 %v5781_v34  ;;  %v9557_v11 = vld [vmem:[#allocation26_spill] sm:$0xff] }
 0x15d   : > { %v9019_v59 = vadd.f32 %v1687_v8, %v1235_v27  ;;  %v1256_v43 = vadd.f32 %v6175_v4, %v9552_v37 }
 0x15e   : > { %v6224_v38 = vpop.f32.mrf.mxu0  ;;  %v1247_v21 = vpop.f32.mrf.mxu1 }
 0x15f   : > { %v9022_v5 = vadd.f32 %v6223_v50, %v1256_v43  ;;  %v1248_v1 = vadd.f32 %v1247_v21, %v9553_v2 }
 0x160   : > { %v1703_v9 = vpop.f32.mrf.mxu0  ;;  %v6176_v63 = vpop.f32.mrf.mxu1 }
 0x161   : > { %v9025_v60 = vadd.f32 %v1700_v52, %v1248_v1  ;;  %v1259_v36 = vadd.f32 %v6176_v63, %v9554_v17 }
 0x162   : > { %v6291_v32 = vpop.f32.mrf.mxu0  ;;  %v1250_v55 = vpop.f32.mrf.mxu1 }
 0x163   : > { %v9028_v28 = vadd.f32 %v6224_v38, %v1259_v36  ;;  %v1251_v48 = vadd.f32 %v1250_v55, %v9555_v20 }
 0x164   : > { %v2729_v13 = vpop.f32.mrf.mxu0  ;;  %v6243_v54 = vpop.f32.mrf.mxu1 }
 0x165   : > { %v9031_v46 = vadd.f32 %v1703_v9, %v1251_v48  ;;  %v2104_v44 = vadd.f32 %v6243_v54, %v9556_v0 }
 0x166   : > { %v6292_v22 = vpop.f32.mrf.mxu0  ;;  %v1975_v6 = vpop.f32.mrf.mxu1 }
 0x167   : > { %v9034_v56 = vadd.f32 %v6291_v32, %v2104_v44  ;;  %v2102_v29 = vadd.f32 %v1975_v6, %v9557_v11 }
 0x168   : > { %v2732_v47 = vpop.f32.mrf.mxu0  ;;  %v6244_v31 = vpop.f32.mrf.mxu1 }
 0x169   : > { %v9037_v8 = vadd.f32 %v2729_v13, %v2102_v29  ;;  %v2105_v34 = vadd.f32 %v6244_v31, %v9558_v57 }
 0x16a   : > { %v6295_v10 = vpop.f32.mrf.mxu0  ;;  %v1978_v3 = vpop.f32.mrf.mxu1 }
 0x16b   : > { %v9040_v50 = vadd.f32 %v6292_v22, %v2105_v34  ;;  %v2103_v16 = vadd.f32 %v1978_v3, %v8776_v24 }
 0x16c   : > { %v2745_v27 = vpop.f32.mrf.mxu0  ;;  %v6247_v52 = vpop.f32.mrf.mxu1 }
 0x16d   : > { %v9043_v4 = vadd.f32 %v2732_v47, %v2103_v16  ;;  %v2108_v37 = vadd.f32 %v6247_v52, %v8780_v41 }
 0x16e   : > { %v6296_v43 = vpop.f32.mrf.mxu0  ;;  %v1991_v38 = vpop.f32.mrf.mxu1 }
 0x16f   : > { %v9046_v21 = vadd.f32 %v6295_v10, %v2108_v37  ;;  %v2106_v2 = vadd.f32 %v1991_v38, %v8789_v15 }
 0x170   : > { %v2748_v1 = vpop.f32.mrf.mxu0  ;;  %v6248_v9 = vpop.f32.mrf.mxu1 }
 0x171   : > { %v9049_v63 = vadd.f32 %v2745_v27, %v2106_v2  ;;  %v2109_v17 = vadd.f32 %v6248_v9, %v8815_v53 }
 0x172   : > { %v6299_v36 = vpop.f32.mrf.mxu0  ;;  %v1994_v24 = vpop.f32.mrf.mxu1 }
 0x173   : > { %v9052_v32 = vadd.f32 %v6296_v43, %v2109_v17  ;;  %v2107_v55 = vadd.f32 %v1994_v24, %v8835_v14 }
 0x174   : > { %v2761_v20 = vpop.f32.mrf.mxu0  ;;  %v6251_v41 = vpop.f32.mrf.mxu1 }
 0x175   : > { %v9055_v48 = vadd.f32 %v2748_v1, %v2107_v55  ;;  %v2112_v13 = vadd.f32 %v6251_v41, %v8843_v7 }
 0x176   : > { %v6300_v54 = vpop.f32.mrf.mxu0  ;;  %v2007_v15 = vpop.f32.mrf.mxu1 }
 0x177   : > { %v9058_v0 = vadd.f32 %v6299_v36, %v2112_v13  ;;  %v2110_v44 = vadd.f32 %v2007_v15, %v8853_v45 }
 0x178   : > { %v2764_v22 = vpop.f32.mrf.mxu0  ;;  %v6252_v53 = vpop.f32.mrf.mxu1 }
 0x179   : > { %v9061_v6 = vadd.f32 %v2761_v20, %v2110_v44  ;;  %v2113_v11 = vadd.f32 %v6252_v53, %v8876_v23 }
 0x17a   : > { %v6303_v29 = vpop.f32.mrf.mxu0  ;;  %v2010_v14 = vpop.f32.mrf.mxu1 }
 0x17b   : > { %v9064_v47 = vadd.f32 %v6300_v54, %v2113_v11  ;;  %v2111_v31 = vadd.f32 %v2010_v14, %v8893_v18 }
 0x17c   : > { %v2777_v57 = vpop.f32.mrf.mxu0  ;;  %v6255_v7 = vpop.f32.mrf.mxu1 }
 0x17d   : > { %v9067_v34 = vadd.f32 %v2764_v22, %v2111_v31  ;;  %v2116_v10 = vadd.f32 %v6255_v7, %v8900_v42 }
 0x17e   : > { %v6304_v3 = vpop.f32.mrf.mxu0  ;;  %v2023_v45 = vpop.f32.mrf.mxu1 }
 0x17f   : > { %v9070_v16 = vadd.f32 %v6303_v29, %v2116_v10  ;;  %v2114_v27 = vadd.f32 %v2023_v45, %v8912_v61 }
 0x180   : > { %v2780_v52 = vpop.f32.mrf.mxu0  ;;  %v6256_v23 = vpop.f32.mrf.mxu1 }
 0x181   : > { %v9073_v37 = vadd.f32 %v2777_v57, %v2114_v27  ;;  %v2117_v43 = vadd.f32 %v6256_v23, %v8932_v19 }
 0x182   : > { %v6307_v38 = vpop.f32.mrf.mxu0  ;;  %v2026_v18 = vpop.f32.mrf.mxu1 }
 0x183   : > { %v9076_v2 = vadd.f32 %v6304_v3, %v2117_v43  ;;  %v2115_v1 = vadd.f32 %v2026_v18, %v8940_v12 }
 0x184   : > { %v2793_v9 = vpop.f32.mrf.mxu0  ;;  %v6259_v42 = vpop.f32.mrf.mxu1 }
 0x185   : > { %v9079_v17 = vadd.f32 %v2780_v52, %v2115_v1  ;;  %v2120_v36 = vadd.f32 %v6259_v42, %v8949_v25 }
 0x186   : > { %v6308_v24 = vpop.f32.mrf.mxu0  ;;  %v2039_v61 = vpop.f32.mrf.mxu1 }
 0x187   : > { %v9082_v55 = vadd.f32 %v6307_v38, %v2120_v36  ;;  %v2118_v20 = vadd.f32 %v2039_v61, %v8952_v51 }
 0x188   : > { %v2796_v41 = vpop.f32.mrf.mxu0  ;;  %v6260_v19 = vpop.f32.mrf.mxu1 }
 0x189   : > { %v9085_v13 = vadd.f32 %v2793_v9, %v2118_v20  ;;  %v2121_v54 = vadd.f32 %v6260_v19, %v8969_v62 }
 0x18a   : > { %v6311_v15 = vpop.f32.mrf.mxu0  ;;  %v2042_v12 = vpop.f32.mrf.mxu1 }
 0x18b   : > { %v9088_v44 = vadd.f32 %v6308_v24, %v2121_v54  ;;  %v2119_v22 = vadd.f32 %v2042_v12, %v8982_v33 }
 0x18c   : > { %v2809_v53 = vpop.f32.mrf.mxu0  ;;  %v6263_v25 = vpop.f32.mrf.mxu1 }
 0x18d   : > { %9559 = vst [vmem:[#allocation3_spill] sm:$0xff] %v9088_v44  ;;  %v9091_v11 = vadd.f32 %v2796_v41, %v2119_v22  ;;  %v2124_v29 = vadd.f32 %v6263_v25, %v8989_v49 }
 0x18e   : > { %v6312_v14 = vpop.f32.mrf.mxu0  ;;  %v2055_v51 = vpop.f32.mrf.mxu1 }
 0x18f   : > { %9560 = vst [vmem:[#allocation7_spill] sm:$0xff] %v9091_v11  ;;  %v9094_v31 = vadd.f32 %v6311_v15, %v2124_v29  ;;  %v2122_v57 = vadd.f32 %v2055_v51, %v8992_v35 }
 0x190   : > { %v2812_v7 = vpop.f32.mrf.mxu0  ;;  %v6264_v62 = vpop.f32.mrf.mxu1 }
 0x191   : > { %9561 = vst [vmem:[#allocation9_spill] sm:$0xff] %v9094_v31  ;;  %v9097_v10 = vadd.f32 %v2809_v53, %v2122_v57  ;;  %v2125_v3 = vadd.f32 %v6264_v62, %v8999_v30 }
 0x192   : > { %v6315_v45 = vpop.f32.mrf.mxu0  ;;  %v2058_v33 = vpop.f32.mrf.mxu1 }
 0x193   : > { %9562 = vst [vmem:[#allocation18_spill] sm:$0xff] %v9097_v10  ;;  %v9100_v27 = vadd.f32 %v6312_v14, %v2125_v3  ;;  %v2123_v52 = vadd.f32 %v2058_v33, %v9005_v39 }
 0x194   : > { %v2825_v23 = vpop.f32.mrf.mxu0  ;;  %v6267_v49 = vpop.f32.mrf.mxu1 }
 0x195   : > { %9563 = vst [vmem:[#allocation13_spill] sm:$0xff] %v9100_v27  ;;  %v9103_v43 = vadd.f32 %v2812_v7, %v2123_v52  ;;  %v2128_v38 = vadd.f32 %v6267_v49, %v9010_v40 }
 0x196   : > { %v6316_v18 = vpop.f32.mrf.mxu0  ;;  %v2071_v35 = vpop.f32.mrf.mxu1 }
 0x197   : > { %9564 = vst [vmem:[#allocation15_spill] sm:$0xff] %v9103_v43  ;;  %v9106_v1 = vadd.f32 %v6315_v45, %v2128_v38  ;;  %v2126_v9 = vadd.f32 %v2071_v35, %v9013_v58 }
 0x198   : > { %v2828_v42 = vpop.f32.mrf.mxu0  ;;  %v6268_v30 = vpop.f32.mrf.mxu1 }
 0x199   : > { %9565 = vst [vmem:[#allocation17_spill] sm:$0xff] %v9106_v1  ;;  %v9109_v36 = vadd.f32 %v2825_v23, %v2126_v9  ;;  %v2129_v24 = vadd.f32 %v6268_v30, %v9016_v26 }
 0x19a   : > { %v6319_v61 = vpop.f32.mrf.mxu0  ;;  %v2074_v39 = vpop.f32.mrf.mxu1 }
 0x19b   : > { %9566 = vst [vmem:[#allocation20_spill] sm:$0xff] %v9109_v36  ;;  %v9112_v20 = vadd.f32 %v6316_v18, %v2129_v24  ;;  %v2127_v41 = vadd.f32 %v2074_v39, %v9019_v59 }
 0x19c   : > { %v2841_v19 = vpop.f32.mrf.mxu0  ;;  %v6271_v40 = vpop.f32.mrf.mxu1 }
 0x19d   : > { %9567 = vst [vmem:[#allocation2_spill] sm:$0xff] %v9112_v20  ;;  %v9115_v54 = vadd.f32 %v2828_v42, %v2127_v41  ;;  %v2132_v15 = vadd.f32 %v6271_v40, %v9022_v5 }
 0x19e   : > { %v6320_v12 = vpop.f32.mrf.mxu0  ;;  %v2087_v58 = vpop.f32.mrf.mxu1 }
 0x19f   : > { %9568 = vst [vmem:[#allocation5_spill] sm:$0xff] %v9115_v54  ;;  %v9118_v22 = vadd.f32 %v6319_v61, %v2132_v15  ;;  %v2130_v53 = vadd.f32 %v2087_v58, %v9025_v60 }
 0x1a0   : > { %v2844_v25 = vpop.f32.mrf.mxu0  ;;  %v6272_v26 = vpop.f32.mrf.mxu1 }
 0x1a1   : > { %9569 = vst [vmem:[#allocation4_spill] sm:$0xff] %v9118_v22  ;;  %v9121_v29 = vadd.f32 %v2841_v19, %v2130_v53  ;;  %v2133_v14 = vadd.f32 %v6272_v26, %v9028_v28 }
 0x1a2   : > { %v9124_v51 = vpop.f32.mrf.mxu0  ;;  %v2090_v59 = vpop.f32.mrf.mxu1 }
 0x1a3   : > { %9570 = vst [vmem:[#allocation6_spill] sm:$0xff] %v9121_v29  ;;  %v9126_v57 = vadd.f32 %v6320_v12, %v2133_v14  ;;  %v2131_v7 = vadd.f32 %v2090_v59, %v9031_v46 }
 0x1a4   : > { %v9129_v5 = vpop.f32.mrf.mxu0  ;;  %v6339_v62 = vpop.f32.mrf.mxu1 }
 0x1a5   : > { %9571 = vst [vmem:[#allocation8_spill] sm:$0xff] %v9126_v57  ;;  %v9131_v3 = vadd.f32 %v2844_v25, %v2131_v7 }
 0x1a6   : > { %v9133_v45 = vpop.f32.mrf.mxu0  ;;  %v3227_v60 = vpop.f32.mrf.mxu1 }
 0x1a7   : > { %9572 = vst [vmem:[#allocation10_spill] sm:$0xff] %v9131_v3 }
 0x1a8   : > { %v9135_v33 = vpop.f32.mrf.mxu0  ;;  %v6340_v52 = vpop.f32.mrf.mxu1 }
 0x1aa   : > { %v9137_v23 = vpop.f32.mrf.mxu0  ;;  %v9139_v28 = vpop.f32.mrf.mxu1 }
 0x1ac   : > { %v9141_v49 = vpop.f32.mrf.mxu0  ;;  %v9143_v38 = vpop.f32.mrf.mxu1 }
 0x1ae   : > { %v9145_v46 = vpop.f32.mrf.mxu0  ;;  %v9147_v18 = vpop.f32.mrf.mxu1 }
 0x1b0   : > { %v9149_v35 = vpop.f32.mrf.mxu0  ;;  %v9151_v9 = vpop.f32.mrf.mxu1 }
 0x1b2   : > { %v9153_v42 = vpop.f32.mrf.mxu0  ;;  %v9155_v30 = vpop.f32.mrf.mxu1 }
 0x1b4   : > { %v9157_v24 = vpop.f32.mrf.mxu0  ;;  %v9159_v61 = vpop.f32.mrf.mxu1 }
 0x1b6   : > { %v9161_v39 = vpop.f32.mrf.mxu0  ;;  %v9163_v41 = vpop.f32.mrf.mxu1 }
 0x1b8   : > { %v9165_v19 = vpop.f32.mrf.mxu0  ;;  %v9167_v40 = vpop.f32.mrf.mxu1 }
 0x1ba   : > { %v9169_v15 = vpop.f32.mrf.mxu0  ;;  %v9171_v12 = vpop.f32.mrf.mxu1 }
 0x1bc   : > { %v9173_v58 = vpop.f32.mrf.mxu0  ;;  %v9175_v53 = vpop.f32.mrf.mxu1 }
 0x1be   : > { %v9177_v25 = vpop.f32.mrf.mxu0  ;;  %v9179_v26 = vpop.f32.mrf.mxu1 }
 0x1c0   : > { %v9181_v14 = vpop.f32.mrf.mxu0  ;;  %v9183_v59 = vpop.f32.mrf.mxu1 }
 0x1c2   : > { %v9185_v7 = vpop.f32.mrf.mxu0  ;;  %v9187_v3 = vpop.f32.mrf.mxu1 }
 0x1c4   : > { %v9189_v57 = vpop.f32.mrf.mxu0  ;;  %v9191_v29 = vpop.f32.mrf.mxu1 }
 0x1c5   : > { %9573 = vst [vmem:[#allocation11_spill] sm:$0xff] %v9189_v57 }
 0x1c6   : > { %v9193_v22 = vpop.f32.mrf.mxu0  ;;  %v9195_v54 = vpop.f32.mrf.mxu1 }
 0x1c7   : > { %9574 = vst [vmem:[#allocation12_spill] sm:$0xff] %v9193_v22 }
 0x1c8   : > { %v9197_v20 = vpop.f32.mrf.mxu0  ;;  %v9199_v36 = vpop.f32.mrf.mxu1 }
 0x1c9   : > { %9575 = vst [vmem:[#allocation14_spill] sm:$0xff] %v9197_v20  ;;  %9576 = vst [vmem:[#allocation16_spill] sm:$0xff] %v9199_v36 }
 0x1ca   : > { %v9201_v1 = vpop.f32.mrf.mxu0  ;;  %v9203_v43 = vpop.f32.mrf.mxu1 }
 0x1cb   : > { %9577 = vst [vmem:[#allocation19_spill] sm:$0xff] %v9201_v1  ;;  %9578 = vst [vmem:[#allocation21_spill] sm:$0xff] %v9203_v43 }
 0x1cc   : > { %v9205_v27 = vpop.f32.mrf.mxu0  ;;  %v9207_v10 = vpop.f32.mrf.mxu1 }
 0x1cd   : > { %9579 = vst [vmem:[#allocation22_spill] sm:$0xff] %v9205_v27  ;;  %9580 = vst [vmem:[#allocation23_spill] sm:$0xff] %v9207_v10 }
 0x1ce   : > { %v9209_v31 = vpop.f32.mrf.mxu0  ;;  %v9211_v11 = vpop.f32.mrf.mxu1 }
 0x1cf   : > { %9581 = vst [vmem:[#allocation24_spill] sm:$0xff] %v9209_v31  ;;  %9582 = vst [vmem:[#allocation25_spill] sm:$0xff] %v9211_v11 }
 0x1d0   : > { %v9213_v57 = vpop.f32.mrf.mxu0  ;;  %v9215_v22 = vpop.f32.mrf.mxu1 }
 0x1d1   : > { %9583 = vst [vmem:[#allocation26_spill] sm:$0xff] %v9213_v57  ;;  %9584 = vst [vmem:[#allocation27_spill] sm:$0xff] %v9215_v22 }
 0x1d2   : > { %v9217_v44 = vpop.f32.mrf.mxu0  ;;  %v9219_v20 = vpop.f32.mrf.mxu1 }
 0x1d3   : > { %9585 = vst [vmem:[#allocation28_spill] sm:$0xff] %v9217_v44  ;;  %9586 = vst [vmem:[#allocation29_spill] sm:$0xff] %v9219_v20 }
 0x1d4   : > { %v9221_v36 = vpop.f32.mrf.mxu0  ;;  %v9223_v1 = vpop.f32.mrf.mxu1 }
 0x1d5   : > { %9587 = vst [vmem:[#allocation30_spill] sm:$0xff] %v9221_v36  ;;  %9588 = vst [vmem:[#allocation31_spill] sm:$0xff] %v9223_v1 }
 0x1d6   : > { %v9225_v43 = vpop.f32.mrf.mxu0  ;;  %v9227_v27 = vpop.f32.mrf.mxu1 }
 0x1d7   : > { %9589 = vst [vmem:[#allocation32_spill] sm:$0xff] %v9225_v43  ;;  %9590 = vst [vmem:[#allocation33_spill] sm:$0xff] %v9227_v27  ;;  %v3356_v43 = vadd.f32 %v6339_v62, %v9034_v56  ;;  %v3355_v56 = vadd.f32 %v9139_v28, %v9043_v4 }
 0x1d8   : > { %v9229_v10 = vpop.f32.mrf.mxu0  ;;  %v9231_v31 = vpop.f32.mrf.mxu1 }
 0x1d9   : > { %9591 = vst [vmem:[#allocation34_spill] sm:$0xff] %v9229_v10  ;;  %9592 = vst [vmem:[#allocation35_spill] sm:$0xff] %v9231_v31  ;;  %v3354_v31 = vadd.f32 %v3227_v60, %v9037_v8  ;;  %v3742_v4 = vadd.f32 %v9135_v33, %v3355_v56  ;;  %v3359_v33 = vadd.f32 %v9155_v30, %v9055_v48 }
 0x1da   : > { %v9233_v57 = vpop.f32.mrf.mxu0  ;;  %v9235_v22 = vpop.f32.mrf.mxu1 }
 0x1db   : > { %9593 = vst [vmem:[#allocation36_spill] sm:$0xff] %v9233_v57  ;;  %9594 = vst [vmem:[#allocation37_spill] sm:$0xff] %v9235_v22  ;;  %v3743_v22 = vadd.f32 %v9124_v51, %v3356_v43  ;;  %v3360_v43 = vadd.f32 %v9143_v38, %v9046_v21 }
 0x1dc   : > { %v9237_v44 = vpop.f32.mrf.mxu0  ;;  %v9239_v20 = vpop.f32.mrf.mxu1 }
 0x1dd   : > { %9595 = vst [vmem:[#allocation38_spill] sm:$0xff] %v9237_v44  ;;  %9596 = vst [vmem:[#allocation39_spill] sm:$0xff] %v9239_v20  ;;  %v3357_v44 = vadd.f32 %v6340_v52, %v9040_v50 }
 0x1de   : > { %v9241_v36 = vpop.f32.mrf.mxu0  ;;  %v9243_v1 = vpop.f32.mrf.mxu1 }
 0x1df   : > { %9597 = vst [vmem:[#allocation40_spill] sm:$0xff] %v9241_v36  ;;  %9598 = vst [vmem:[#allocation41_spill] sm:$0xff] %v9243_v1  ;;  %v3741_v1 = vadd.f32 %v9129_v5, %v3354_v31  ;;  %v3744_v50 = vadd.f32 %v9133_v45, %v3357_v44  ;;  %v3747_v44 = vadd.f32 %v9137_v23, %v3360_v43 }
 0x1e0   : > { %v9246_v27 = vpop.f32.mrf.mxu0  ;;  %v9248_v10 = vpop.f32.mrf.mxu1  ;;  %v3361_v45 = vadd.f32 %v9151_v9, %v9052_v32  ;;  %v3364_v23 = vadd.f32 %v9159_v61, %v9058_v0 }
 0x1e1   : > { %9599 = vst [vmem:[#allocation42_spill] sm:$0xff] %v9246_v27 }
 0x1e2   : > { %v9251_v57 = vpop.f32.mrf.mxu1  ;;  %v3748_v48 = vadd.f32 %v9145_v46, %v3361_v45  ;;  %v3751_v61 = vadd.f32 %v9153_v42, %v3364_v23 }
 0x1e3   : > { %v6483_v11 = vpop.f32.mrf.mxu0  ;;  %9600 = vst [vmem:[#allocation43_spill] sm:$0xff] %v9251_v57 }
 0x1e4   : > { %v6435_v36 = vpop.f32.mrf.mxu1 }
 0x1e5   : > { %v4866_v20 = vpop.f32.mrf.mxu0  ;;  %v4497_v62 = vadd.f32 %v6435_v36, %v3743_v22  ;;  %v3358_v36 = vadd.f32 %v9147_v18, %v9049_v63 }
 0x1e6   : > { %v4368_v8 = vpop.f32.mrf.mxu1 }
 0x1e7   : > { %v6484_v27 = vpop.f32.mrf.mxu0  ;;  %v4995_v51 = vadd.f32 %v6483_v11, %v4497_v62  ;;  %v4495_v31 = vadd.f32 %v4368_v8, %v3741_v1  ;;  %v3745_v63 = vadd.f32 %v9141_v49, %v3358_v36  ;;  %v3746_v49 = vadd.f32 %v9149_v35, %v3359_v33 }
 0x1e8   : > { %v6436_v60 = vpop.f32.mrf.mxu1  ;;  %v3365_v36 = vadd.f32 %v9167_v40, %v9064_v47 }
 0x1e9   : > { %v4869_v5 = vpop.f32.mrf.mxu0  ;;  %5027 = vst [vmem:[%s9262_s29 + $0x10] sm:$0xff] %v4995_v51  ;;  %v4993_v22 = vadd.f32 %v4866_v20, %v4495_v31  ;;  %v4498_v52 = vadd.f32 %v6436_v60, %v3744_v50  ;;  %v5097_v43 = vmul.f32 %v4995_v51, %v4995_v51 }
 0x1ea   : > { %v4371_v57 = vpop.f32.mrf.mxu1 }
 0x1eb   : > { %v6487_v28 = vpop.f32.mrf.mxu0  ;;  %5025 = vst [vmem:[%s9262_s29] sm:$0xff] %v4993_v22  ;;  %v4996_v21 = vadd.f32 %v6484_v27, %v4498_v52  ;;  %v4496_v11 = vadd.f32 %v4371_v57, %v3742_v4  ;;  %v5095_v27 = vmul.f32 %v4993_v22, %v4993_v22  ;;  %v3362_v4 = vadd.f32 %v9163_v41, %v9061_v6 }
 0x1ec   : > { %v6439_v38 = vpop.f32.mrf.mxu1 }
 0x1ed   : > { %v4882_v1 = vpop.f32.mrf.mxu0  ;;  %5028 = vst [vmem:[%s9262_s29 + $0x18] sm:$0xff] %v4996_v21  ;;  %v4994_v20 = vadd.f32 %v4869_v5, %v4496_v11  ;;  %v4501_v18 = vadd.f32 %v6439_v38, %v3747_v44  ;;  %v5098_v52 = vmul.f32 %v4996_v21, %v4996_v21  ;;  %v3363_v11 = vadd.f32 %v9171_v12, %v9067_v34 }
 0x1ee   : > { %v4384_v57 = vpop.f32.mrf.mxu1  ;;  %v3749_v38 = vadd.f32 %v9157_v24, %v3362_v4 }
 0x1ef   : > { %v6488_v56 = vpop.f32.mrf.mxu0  ;;  %5026 = vst [vmem:[%s9262_s29 + $0x8] sm:$0xff] %v4994_v20  ;;  %v5057_v62 = vadd.f32 %v4994_v20, %v4993_v22  ;;  %v5096_v8 = vmul.f32 %v4994_v20, %v4994_v20  ;;  %v4999_v32 = vadd.f32 %v6487_v28, %v4501_v18  ;;  %v4499_v9 = vadd.f32 %v4384_v57, %v3745_v63 }
 0x1f0   : > { %v6440_v30 = vpop.f32.mrf.mxu1  ;;  %v3752_v63 = vadd.f32 %v9161_v39, %v3365_v36  ;;  %v3366_v57 = vadd.f32 %v9179_v26, %v9073_v37 }
 0x1f1   : > { %v4885_v50 = vpop.f32.mrf.mxu0  ;;  %v5058_v31 = vadd.f32 %v5057_v62, %v4995_v51  ;;  %v5127_v5 = vadd.f32 %v5096_v8, %v5095_v27  ;;  %5031 = vst [vmem:[%s9262_s29 + $0x30] sm:$0xff] %v4999_v32  ;;  %v4997_v60 = vadd.f32 %v4882_v1, %v4499_v9  ;;  %v4502_v22 = vadd.f32 %v6440_v30, %v3748_v48 }
 0x1f2   : > { %v4387_v46 = vpop.f32.mrf.mxu1  ;;  %v3368_v27 = vadd.f32 %v9175_v53, %v9070_v16  ;;  %v5101_v39 = vmul.f32 %v4999_v32, %v4999_v32 }
 0x1f3   : > { %v6491_v0 = vpop.f32.mrf.mxu0  ;;  %v5128_v28 = vadd.f32 %v5127_v5, %v5097_v43  ;;  %5029 = vst [vmem:[%s9262_s29 + $0x20] sm:$0xff] %v4997_v60  ;;  %v5059_v35 = vadd.f32 %v5058_v31, %v4996_v21  ;;  %v4500_v51 = vadd.f32 %v4387_v46, %v3746_v49  ;;  %v5099_v42 = vmul.f32 %v4997_v60, %v4997_v60 }
 0x1f4   : > { %v5000_v1 = vadd.f32 %v6488_v56, %v4502_v22  ;;  %v6443_v45 = vpop.f32.mrf.mxu1  ;;  %v3750_v56 = vadd.f32 %v9165_v19, %v3363_v11  ;;  %v3369_v49 = vadd.f32 %v9183_v59, %v9076_v2  ;;  %v3755_v5 = vadd.f32 %v9169_v15, %v3368_v27 }
 0x1f5   : > { %v4898_v44 = vpop.f32.mrf.mxu0  ;;  %v5060_v6 = vadd.f32 %v5059_v35, %v4997_v60  ;;  %v5129_v41 = vadd.f32 %v5128_v28, %v5098_v52  ;;  %v4998_v33 = vadd.f32 %v4885_v50, %v4500_v51  ;;  %v4505_v47 = vadd.f32 %v6443_v45, %v3751_v61 }
 0x1f6   : > { %5032 = vst [vmem:[%s9262_s29 + $0x38] sm:$0xff] %v5000_v1  ;;  %v4400_v21 = vpop.f32.mrf.mxu1  ;;  %v5102_v19 = vmul.f32 %v5000_v1, %v5000_v1  ;;  %v3756_v36 = vadd.f32 %v9177_v25, %v3369_v49  ;;  %v3367_v22 = vadd.f32 %v9187_v3, %v9079_v17  ;;  %v3372_v46 = vadd.f32 %v9191_v29, %v9082_v55  ;;  %v9607_v49 = vld [vmem:[#allocation9_spill] sm:$0xff] }
 0x1f7   : > { %v6492_v40 = vpop.f32.mrf.mxu0  ;;  %v5130_v20 = vadd.f32 %v5129_v41, %v5099_v42  ;;  %5030 = vst [vmem:[%s9262_s29 + $0x28] sm:$0xff] %v4998_v33  ;;  %v5061_v18 = vadd.f32 %v5060_v6, %v4998_v33  ;;  %v5100_v23 = vmul.f32 %v4998_v33, %v4998_v33  ;;  %v5003_v34 = vadd.f32 %v6491_v0, %v4505_v47  ;;  %v9601_v33 = vld [vmem:[#allocation3_spill] sm:$0xff]  ;;  %v9602_v47 = vld [vmem:[#allocation16_spill] sm:$0xff] }
 0x1f8   : > { %v4503_v24 = vadd.f32 %v4400_v21, %v3749_v38  ;;  %v6444_v62 = vpop.f32.mrf.mxu1  ;;  %v3370_v11 = vadd.f32 %v9195_v54, %v9085_v13  ;;  %v3754_v6 = vadd.f32 %v9181_v14, %v3367_v22  ;;  %v3759_v41 = vadd.f32 %v9185_v7, %v3372_v46  ;;  %v9612_v22 = vld [vmem:[#allocation13_spill] sm:$0xff]  ;;  %v9613_v46 = vld [vmem:[#allocation27_spill] sm:$0xff] }
 0x1f9   : > { %v4901_v12 = vpop.f32.mrf.mxu0  ;;  %v5062_v8 = vadd.f32 %v5061_v18, %v4999_v32  ;;  %v5131_v9 = vadd.f32 %v5130_v20, %v5100_v23  ;;  %5035 = vst [vmem:[%s9262_s29 + $0x50] sm:$0xff] %v5003_v34  ;;  %v4506_v50 = vadd.f32 %v6444_v62, %v3752_v63  ;;  %v3753_v32 = vadd.f32 %v9173_v58, %v3366_v57  ;;  %v9603_v18 = vld [vmem:[#allocation11_spill] sm:$0xff] }
 0x1fa   : > { %v5001_v30 = vadd.f32 %v4898_v44, %v4503_v24  ;;  %v4403_v43 = vpop.f32.mrf.mxu1  ;;  %v5105_v25 = vmul.f32 %v5003_v34, %v5003_v34  ;;  %v3757_v23 = vadd.f32 %v9603_v18, %v3370_v11 }
 0x1fb   : > { %v6495_v48 = vpop.f32.mrf.mxu0  ;;  %v5132_v16 = vadd.f32 %v5131_v9, %v5101_v39  ;;  %v5063_v53 = vadd.f32 %v5062_v8, %v5000_v1  ;;  %v5004_v31 = vadd.f32 %v6492_v40, %v4506_v50  ;;  %v4504_v37 = vadd.f32 %v4403_v43, %v3750_v56  ;;  %v9606_v8 = vld [vmem:[#allocation12_spill] sm:$0xff] }
 0x1fc   : > { %5033 = vst [vmem:[%s9262_s29 + $0x40] sm:$0xff] %v5001_v30  ;;  %v6447_v60 = vpop.f32.mrf.mxu1  ;;  %v5103_v61 = vmul.f32 %v5001_v30, %v5001_v30  ;;  %v3373_v40 = vadd.f32 %v9602_v47, %v9601_v33  ;;  %v9617_v33 = vld [vmem:[#allocation29_spill] sm:$0xff] }
 0x1fd   : > { %v4914_v26 = vpop.f32.mrf.mxu0  ;;  %v5064_v0 = vadd.f32 %v5063_v53, %v5001_v30  ;;  %v5133_v4 = vadd.f32 %v5132_v16, %v5102_v19  ;;  %5036 = vst [vmem:[%s9262_s29 + $0x58] sm:$0xff] %v5004_v31  ;;  %v5002_v2 = vadd.f32 %v4901_v12, %v4504_v37  ;;  %v4509_v15 = vadd.f32 %v6447_v60, %v3755_v5  ;;  %v9605_v12 = vld [vmem:[#allocation21_spill] sm:$0xff]  ;;  %v9608_v19 = vld [vmem:[#allocation23_spill] sm:$0xff] }
 0x1fe   : > { %v4416_v52 = vpop.f32.mrf.mxu1  ;;  %v5106_v13 = vmul.f32 %v5004_v31, %v5004_v31  ;;  %v3760_v9 = vadd.f32 %v9606_v8, %v3373_v40  ;;  %v3376_v30 = vadd.f32 %v9608_v19, %v9607_v49 }
 0x1ff   : > { %v6496_v59 = vpop.f32.mrf.mxu0  ;;  %v5134_v28 = vadd.f32 %v5133_v4, %v5103_v61  ;;  %5034 = vst [vmem:[%s9262_s29 + $0x48] sm:$0xff] %v5002_v2  ;;  %v5065_v58 = vadd.f32 %v5064_v0, %v5002_v2  ;;  %v5104_v35 = vmul.f32 %v5002_v2, %v5002_v2  ;;  %v4507_v51 = vadd.f32 %v4416_v52, %v3753_v32  ;;  %v9609_v32 = vld [vmem:[#allocation14_spill] sm:$0xff]  ;;  %v9611_v61 = vld [vmem:[#allocation25_spill] sm:$0xff] }
 0x200   : > { %v5007_v42 = vadd.f32 %v6495_v48, %v4509_v15  ;;  %v6448_v1 = vpop.f32.mrf.mxu1  ;;  %v9610_v0 = vld [vmem:[#allocation18_spill] sm:$0xff]  ;;  %v3377_v15 = vadd.f32 %v9613_v46, %v9612_v22 }
 0x201   : > { %v4917_v44 = vpop.f32.mrf.mxu0  ;;  %v5066_v17 = vadd.f32 %v5065_v58, %v5003_v34  ;;  %v5135_v3 = vadd.f32 %v5134_v28, %v5104_v35  ;;  %v5005_v45 = vadd.f32 %v4914_v26, %v4507_v51  ;;  %v4510_v55 = vadd.f32 %v6448_v1, %v3756_v36  ;;  %v9604_v34 = vld [vmem:[#allocation7_spill] sm:$0xff] }
 0x202   : > { %5039 = vst [vmem:[%s9262_s29 + $0x70] sm:$0xff] %v5007_v42  ;;  %v4419_v38 = vpop.f32.mrf.mxu1  ;;  %v3371_v56 = vadd.f32 %v9605_v12, %v9604_v34  ;;  %v3374_v4 = vadd.f32 %v9611_v61, %v9610_v0  ;;  %v5109_v52 = vmul.f32 %v5007_v42, %v5007_v42  ;;  %v9614_v51 = vld [vmem:[#allocation19_spill] sm:$0xff]  ;;  %v9619_v34 = vld [vmem:[#allocation17_spill] sm:$0xff] }
 0x203   : > { %v5136_v54 = vadd.f32 %v5135_v3, %v5105_v25  ;;  %5037 = vst [vmem:[%s9262_s29 + $0x60] sm:$0xff] %v5005_v45  ;;  %v5067_v63 = vadd.f32 %v5066_v17, %v5004_v31  ;;  %v5008_v21 = vadd.f32 %v6496_v59, %v4510_v55  ;;  %v4508_v14 = vadd.f32 %v4419_v38, %v3754_v6  ;;  %v9620_v12 = vld [vmem:[#allocation31_spill] sm:$0xff] }
 0x204   : > { %v6499_v29 = vpop.f32.mrf.mxu0  ;;  %v6451_v7 = vpop.f32.mrf.mxu1  ;;  %v5107_v57 = vmul.f32 %v5005_v45, %v5005_v45  ;;  %v3758_v60 = vadd.f32 %v9609_v32, %v3371_v56 }
 0x205   : > { %v5068_v27 = vadd.f32 %v5067_v63, %v5005_v45  ;;  %v5137_v24 = vadd.f32 %v5136_v54, %v5106_v13  ;;  %5040 = vst [vmem:[%s9262_s29 + $0x78] sm:$0xff] %v5008_v21  ;;  %v4513_v62 = vadd.f32 %v6451_v7, %v3759_v41  ;;  %v5006_v50 = vadd.f32 %v4917_v44, %v4508_v14  ;;  %v9616_v41 = vld [vmem:[#allocation15_spill] sm:$0xff]  ;;  %v9618_v13 = vld [vmem:[#allocation24_spill] sm:$0xff] }
 0x206   : > { %v4930_v20 = vpop.f32.mrf.mxu0  ;;  %v4432_v48 = vpop.f32.mrf.mxu1  ;;  %v3763_v44 = vadd.f32 %v9614_v51, %v3376_v30  ;;  %v5110_v17 = vmul.f32 %v5008_v21, %v5008_v21  ;;  %v3375_v47 = vadd.f32 %v9617_v33, %v9616_v41  ;;  %v3764_v54 = vadd.f32 %v9618_v13, %v3377_v15  ;;  %v9627_v15 = vld [vmem:[#allocation30_spill] sm:$0xff] }
 0x207   : > { %v5138_v43 = vadd.f32 %v5137_v24, %v5107_v57  ;;  %v5011_v16 = vadd.f32 %v6499_v29, %v4513_v62  ;;  %v4511_v53 = vadd.f32 %v4432_v48, %v3757_v23  ;;  %5038 = vst [vmem:[%s9262_s29 + $0x68] sm:$0xff] %v5006_v50  ;;  %v5069_v37 = vadd.f32 %v5068_v27, %v5006_v50  ;;  %v9615_v29 = vld [vmem:[#allocation22_spill] sm:$0xff] }
 0x208   : > { %v6500_v39 = vpop.f32.mrf.mxu0  ;;  %v5108_v26 = vmul.f32 %v5006_v50, %v5006_v50  ;;  %v6452_v5 = vpop.f32.mrf.mxu1  ;;  %v3761_v6 = vadd.f32 %v9615_v29, %v3374_v4  ;;  %v9623_v50 = vld [vmem:[#allocation33_spill] sm:$0xff]  ;;  %v9631_v29 = vld [vmem:[#allocation4_spill] sm:$0xff] }
 0x209   : > { %5043 = vst [vmem:[%s9262_s29 + $0x90] sm:$0xff] %v5011_v16  ;;  %v5009_v2 = vadd.f32 %v4930_v20, %v4511_v53  ;;  %v4514_v59 = vadd.f32 %v6452_v5, %v3760_v9  ;;  %v5070_v28 = vadd.f32 %v5069_v37, %v5007_v42  ;;  %v9622_v9 = vld [vmem:[#allocation20_spill] sm:$0xff]  ;;  %v9625_v53 = vld [vmem:[#allocation35_spill] sm:$0xff]  ;;  %v5113_v37 = vmul.f32 %v5011_v16, %v5011_v16 }
 0x20a   : > { %v4933_v31 = vpop.f32.mrf.mxu0  ;;  %v5139_v58 = vadd.f32 %v5138_v43, %v5108_v26  ;;  %v4435_v35 = vpop.f32.mrf.mxu1  ;;  %v3378_v48 = vadd.f32 %v9623_v50, %v9622_v9  ;;  %v9624_v43 = vld [vmem:[#allocation2_spill] sm:$0xff] }
 0x20b   : > { %5041 = vst [vmem:[%s9262_s29 + $0x80] sm:$0xff] %v5009_v2  ;;  %v5012_v11 = vadd.f32 %v6500_v39, %v4514_v59  ;;  %v4512_v25 = vadd.f32 %v4435_v35, %v3758_v60  ;;  %v5071_v45 = vadd.f32 %v5070_v28, %v5008_v21  ;;  %v5111_v20 = vmul.f32 %v5009_v2, %v5009_v2  ;;  %v9621_v39 = vld [vmem:[#allocation26_spill] sm:$0xff]  ;;  %v9626_v60 = vld [vmem:[#allocation28_spill] sm:$0xff]  ;;  %v9628_v28 = vld [vmem:[#allocation5_spill] sm:$0xff] }
 0x20c   : > { %v6503_v36 = vpop.f32.mrf.mxu0  ;;  %v5140_v3 = vadd.f32 %v5139_v58, %v5109_v52  ;;  %v6455_v55 = vpop.f32.mrf.mxu1  ;;  %v3380_v21 = vadd.f32 %v9620_v12, %v9619_v34  ;;  %v3762_v8 = vadd.f32 %v9621_v39, %v3375_v47  ;;  %v3765_v52 = vadd.f32 %v9627_v15, %v3378_v48  ;;  %v9629_v58 = vld [vmem:[#allocation37_spill] sm:$0xff]  ;;  %v9637_v39 = vld [vmem:[#allocation8_spill] sm:$0xff] }
 0x20d   : > { %5044 = vst [vmem:[%s9262_s29 + $0x98] sm:$0xff] %v5012_v11  ;;  %v5010_v42 = vadd.f32 %v4933_v31, %v4512_v25  ;;  %v4517_v40 = vadd.f32 %v6455_v55, %v3763_v44  ;;  %v5072_v63 = vadd.f32 %v5071_v45, %v5009_v2  ;;  %v3381_v31 = vadd.f32 %v9625_v53, %v9624_v43  ;;  %v9630_v25 = vld [vmem:[#allocation32_spill] sm:$0xff]  ;;  %v9638_v53 = vld [vmem:[#allocation38_spill] sm:$0xff] }
 0x20e   : > { %v4946_v1 = vpop.f32.mrf.mxu0  ;;  %v5141_v18 = vadd.f32 %v5140_v3, %v5110_v17  ;;  %v4448_v23 = vpop.f32.mrf.mxu1  ;;  %v3767_v0 = vadd.f32 %v9626_v60, %v3380_v21  ;;  %v5114_v59 = vmul.f32 %v5012_v11, %v5012_v11  ;;  %v3379_v35 = vadd.f32 %v9629_v58, %v9628_v28  ;;  %v9642_v58 = vld [vmem:[#allocation42_spill] sm:$0xff] }
 0x20f   : > { %5042 = vst [vmem:[%s9262_s29 + $0x88] sm:$0xff] %v5010_v42  ;;  %v5112_v56 = vmul.f32 %v5010_v42, %v5010_v42  ;;  %v5015_v14 = vadd.f32 %v6503_v36, %v4517_v40  ;;  %v4515_v7 = vadd.f32 %v4448_v23, %v3761_v6  ;;  %v5073_v24 = vadd.f32 %v5072_v63, %v5010_v42  ;;  %v9632_v6 = vld [vmem:[#allocation39_spill] sm:$0xff] }
 0x210   : > { %v6504_v38 = vpop.f32.mrf.mxu0  ;;  %v5142_v57 = vadd.f32 %v5141_v18, %v5111_v20  ;;  %v6456_v62 = vpop.f32.mrf.mxu1  ;;  %v9634_v20 = vld [vmem:[#allocation6_spill] sm:$0xff]  ;;  %v9635_v18 = vld [vmem:[#allocation41_spill] sm:$0xff] }
 0x211   : > { %5047 = vst [vmem:[%s9262_s29 + $0xb0] sm:$0xff] %v5015_v14  ;;  %v5013_v49 = vadd.f32 %v4946_v1, %v4515_v7  ;;  %v4518_v19 = vadd.f32 %v6456_v62, %v3764_v54  ;;  %v5074_v26 = vadd.f32 %v5073_v24, %v5011_v16  ;;  %v3768_v1 = vadd.f32 %v9630_v25, %v3381_v31  ;;  %v9633_v54 = vld [vmem:[#allocation34_spill] sm:$0xff]  ;;  %v9636_v24 = vld [vmem:[#allocation36_spill] sm:$0xff] }
 0x212   : > { %v4949_v27 = vpop.f32.mrf.mxu0  ;;  %v5143_v5 = vadd.f32 %v5142_v57, %v5112_v56  ;;  %v4451_v32 = vpop.f32.mrf.mxu1  ;;  %v3766_v63 = vadd.f32 %v9633_v54, %v3379_v35  ;;  %v3382_v23 = vadd.f32 %v9635_v18, %v9634_v20  ;;  %v5117_v56 = vmul.f32 %v5015_v14, %v5015_v14 }
 0x213   : > { %5045 = vst [vmem:[%s9262_s29 + $0xa0] sm:$0xff] %v5013_v49  ;;  %v5016_v61 = vadd.f32 %v6504_v38, %v4518_v19  ;;  %v4516_v4 = vadd.f32 %v4451_v32, %v3762_v8  ;;  %v5075_v22 = vadd.f32 %v5074_v26, %v5012_v11  ;;  %v5115_v3 = vmul.f32 %v5013_v49, %v5013_v49 }
 0x214   : > { %v6507_v30 = vpop.f32.mrf.mxu0  ;;  %v5144_v36 = vadd.f32 %v5143_v5, %v5113_v37  ;;  %v6459_v46 = vpop.f32.mrf.mxu1  ;;  %v3384_v11 = vadd.f32 %v9632_v6, %v9631_v29  ;;  %v3385_v8 = vadd.f32 %v9248_v10, %v9637_v39  ;;  %v3769_v31 = vadd.f32 %v9638_v53, %v3382_v23  ;;  %v9639_v37 = vld [vmem:[#allocation10_spill] sm:$0xff] }
 0x215   : > { %5048 = vst [vmem:[%s9262_s29 + $0xb8] sm:$0xff] %v5016_v61  ;;  %v5014_v16 = vadd.f32 %v4949_v27, %v4516_v4  ;;  %v4521_v51 = vadd.f32 %v6459_v46, %v3767_v0  ;;  %v5076_v17 = vadd.f32 %v5075_v22, %v5013_v49  ;;  %v5118_v48 = vmul.f32 %v5016_v61, %v5016_v61 }
 0x216   : > { %v4962_v2 = vpop.f32.mrf.mxu0  ;;  %v5145_v45 = vadd.f32 %v5144_v36, %v5114_v59  ;;  %v4464_v55 = vpop.f32.mrf.mxu1  ;;  %v3771_v62 = vadd.f32 %v9636_v24, %v3384_v11 }
 0x217   : > { %5046 = vst [vmem:[%s9262_s29 + $0xa8] sm:$0xff] %v5014_v16  ;;  %v5116_v41 = vmul.f32 %v5014_v16, %v5014_v16  ;;  %v5019_v33 = vadd.f32 %v6507_v30, %v4521_v51  ;;  %v4519_v47 = vadd.f32 %v4464_v55, %v3765_v52  ;;  %v5077_v38 = vadd.f32 %v5076_v17, %v5014_v16 }
 0x218   : > { %v6508_v44 = vpop.f32.mrf.mxu0  ;;  %v5146_v40 = vadd.f32 %v5145_v45, %v5115_v3  ;;  %v6460_v13 = vpop.f32.mrf.mxu1 }
 0x219   : > { %5051 = vst [vmem:[%s9262_s29 + $0xd0] sm:$0xff] %v5019_v33  ;;  %v5017_v34 = vadd.f32 %v4962_v2, %v4519_v47  ;;  %v4522_v12 = vadd.f32 %v6460_v13, %v3768_v1  ;;  %v5078_v7 = vadd.f32 %v5077_v38, %v5015_v14  ;;  %v9640_v14 = vld [vmem:[#allocation43_spill] sm:$0xff]  ;;  %v9641_v2 = vld [vmem:[#allocation40_spill] sm:$0xff] }
 0x21a   : > { %v4965_v42 = vpop.f32.mrf.mxu0  ;;  %v5147_v27 = vadd.f32 %v5146_v40, %v5116_v41  ;;  %v4467_v57 = vpop.f32.mrf.mxu1  ;;  %v3383_v26 = vadd.f32 %v9640_v14, %v9639_v37  ;;  %v3772_v59 = vadd.f32 %v9641_v2, %v3385_v8 }
 0x21b   : > { %5049 = vst [vmem:[%s9262_s29 + $0xc0] sm:$0xff] %v5017_v34  ;;  %v5020_v9 = vadd.f32 %v6508_v44, %v4522_v12  ;;  %v4520_v50 = vadd.f32 %v4467_v57, %v3766_v63  ;;  %v5079_v19 = vadd.f32 %v5078_v7, %v5016_v61  ;;  %v5119_v10 = vmul.f32 %v5017_v34, %v5017_v34 }
 0x21c   : > { %v6511_v21 = vpop.f32.mrf.mxu0  ;;  %v5148_v49 = vadd.f32 %v5147_v27, %v5117_v56  ;;  %v6463_v30 = vpop.f32.mrf.mxu1  ;;  %v3770_v35 = vadd.f32 %v9642_v58, %v3383_v26  ;;  %v5121_v44 = vmul.f32 %v5019_v33, %v5019_v33 }
 0x21d   : > { %5052 = vst [vmem:[%s9262_s29 + $0xd8] sm:$0xff] %v5020_v9  ;;  %v5018_v5 = vadd.f32 %v4965_v42, %v4520_v50  ;;  %v4525_v32 = vadd.f32 %v6463_v30, %v3771_v62  ;;  %v5080_v60 = vadd.f32 %v5079_v19, %v5017_v34  ;;  %v5122_v55 = vmul.f32 %v5020_v9, %v5020_v9 }
 0x21e   : > { %v4978_v43 = vpop.f32.mrf.mxu0  ;;  %v5149_v0 = vadd.f32 %v5148_v49, %v5118_v48  ;;  %v4480_v4 = vpop.f32.mrf.mxu1 }
 0x21f   : > { %5050 = vst [vmem:[%s9262_s29 + $0xc8] sm:$0xff] %v5018_v5  ;;  %v5120_v61 = vmul.f32 %v5018_v5, %v5018_v5  ;;  %v5023_v36 = vadd.f32 %v6511_v21, %v4525_v32  ;;  %v4523_v22 = vadd.f32 %v4480_v4, %v3769_v31  ;;  %v5081_v15 = vadd.f32 %v5080_v60, %v5018_v5 }
 0x220   : > { %v5150_v46 = vadd.f32 %v5149_v0, %v5119_v10  ;;  %v6464_v52 = vpop.f32.mrf.mxu1  ;;  %v6512_v28 = vpop.f32.mrf.mxu0 }
 0x221   : > { %5055 = vst [vmem:[%s9262_s29 + $0xf0] sm:$0xff] %v5023_v36  ;;  %v5021_v16 = vadd.f32 %v4978_v43, %v4523_v22  ;;  %v4526_v51 = vadd.f32 %v6464_v52, %v3772_v59  ;;  %v5082_v25 = vadd.f32 %v5081_v15, %v5019_v33  ;;  %v5125_v63 = vmul.f32 %v5023_v36, %v5023_v36 }
 0x222   : > { %v5151_v1 = vadd.f32 %v5150_v46, %v5120_v61  ;;  %v4483_v17 = vpop.f32.mrf.mxu1  ;;  %v4981_v11 = vpop.f32.mrf.mxu0 }
 0x223   : > { %5053 = vst [vmem:[%s9262_s29 + $0xe0] sm:$0xff] %v5021_v16  ;;  %v5024_v3 = vadd.f32 %v6512_v28, %v4526_v51  ;;  %v4524_v45 = vadd.f32 %v4483_v17, %v3770_v35  ;;  %v5083_v6 = vadd.f32 %v5082_v25, %v5020_v9  ;;  %v5123_v42 = vmul.f32 %v5021_v16, %v5021_v16 }
 0x224   : > { %v5152_v29 = vadd.f32 %v5151_v1, %v5121_v44 }
 0x225   : > { %5056 = vst [vmem:[%s9262_s29 + $0xf8] sm:$0xff] %v5024_v3  ;;  %v5022_v41 = vadd.f32 %v4981_v11, %v4524_v45  ;;  %v5084_v47 = vadd.f32 %v5083_v6, %v5021_v16  ;;  %v5126_v18 = vmul.f32 %v5024_v3, %v5024_v3 }
 0x226   : > { %v5153_v40 = vadd.f32 %v5152_v29, %v5122_v55 }
 0x227   : > { %5054 = vst [vmem:[%s9262_s29 + $0xe8] sm:$0xff] %v5022_v41  ;;  %v5124_v38 = vmul.f32 %v5022_v41, %v5022_v41  ;;  %v5085_v54 = vadd.f32 %v5084_v47, %v5022_v41 }
 0x228   : > { %v5154_v13 = vadd.f32 %v5153_v40, %v5123_v42 }
 0x229   : > { %v5086_v33 = vadd.f32 %v5085_v54, %v5023_v36 }
 0x22a   : > { %v5155_v20 = vadd.f32 %v5154_v13, %v5124_v38 }
 0x22b   : > { %v5087_v23 = vadd.f32 %v5086_v33, %v5024_v3 }
 0x22c   : > { %v5156_v34 = vadd.f32 %v5155_v20, %v5125_v63 }
 0x22d   : > { %v5088_v12 = vrot.slane %v5087_v23, 4 }
 0x22e   : > { %v5157_v21 = vadd.f32 %v5156_v34, %v5126_v18 }
 0x22f   : > { %v5089_v56 = vadd.f32 %v5088_v12, %v5087_v23 }
 0x230   : > { %v5158_v7 = vrot.slane %v5157_v21, 4 }
 0x231   : > { %v5090_v27 = vrot.slane %v5089_v56, 2 }
 0x232   : > { %v5159_v57 = vadd.f32 %v5158_v7, %v5157_v21 }
 0x233   : > { %v5091_v24 = vadd.f32 %v5090_v27, %v5089_v56 }
 0x234   : > { %v5160_v62 = vrot.slane %v5159_v57, 2 }
 0x235   : > { %v5092_v39 = vrot.slane %v5091_v24, 1 }
 0x236   : > { %v5161_v8 = vadd.f32 %v5160_v62, %v5159_v57 }
 0x237   : > { %v5093_v9 = vadd.f32 %v5092_v39, %v5091_v24 }
 0x238   : > { %v5162_v50 = vrot.slane %v5161_v8, 1 }
 0x239   : > { %5094 = vst [vmem:[%s211_s6] sm:$0x1] %v5093_v9 }
 0x23a   : > { %v5163_v48 = vadd.f32 %v5162_v50, %v5161_v8 }
 0x23c   : > { %5164 = vst [vmem:[%s214_s9] sm:$0x1] %v5163_v48 }
 0x23d PF: > { %s15_s15 = sadd.s32 1, %s6673_s15  }
 0x23e   : > { %p12_p4 = scmp.ge.s32.totalorder %s15_s15, 4  }
 0x240   :  { %14 = sbr.rel (!%p12_p4) target bundleno = 1 (0x1), region = 92 }

</bundles_post_ra>
